<compile_context>
chip_gen: v7x
topology: tpu7x:2x2x1
jax: 0.10.0
libtpu: 0.0.40
codegen_flags: <defaults>
</compile_context>

<pallas_src>
import functools
import math

import jax
import jax.numpy as jnp
from jax.experimental import pallas as pl
from jax.experimental.pallas import tpu as pltpu


_VMEM_LIMIT_BYTES = 32 * 1024 * 1024  # safe on v5e/v6e/v7x


def _cparams(*sems):
    return pltpu.CompilerParams(
        dimension_semantics=tuple(sems),
        vmem_limit_bytes=_VMEM_LIMIT_BYTES,
    )


def _pick_tile(dim, target):
    """Largest of {target, dim} that evenly tiles dim (falls back to full dim)."""
    if dim >= target and dim % target == 0:
        return target
    return dim


# ----------------------------- Pallas kernels -----------------------------

def _matmul_bias_kernel(x_ref, w_ref, b_ref, o_ref, acc_ref):
    # Gridded (M, N, K) matmul with f32 VMEM accumulator; bias in the epilogue.
    @pl.when(pl.program_id(2) == 0)
    def _():
        acc_ref[...] = jnp.zeros_like(acc_ref)

    acc_ref[...] += jnp.dot(x_ref[...], w_ref[...],
                            preferred_element_type=jnp.float32)

    @pl.when(pl.program_id(2) == pl.num_programs(2) - 1)
    def _():
        o_ref[...] = (acc_ref[...] + b_ref[...]).astype(o_ref.dtype)


def _proj_add_ln_kernel(x_ref, w_ref, b_ref, r_ref, g_ref, be_ref, o_ref):
    # y = LayerNorm(x @ w + b + residual), eps=1e-12, biased variance.
    y = jnp.dot(x_ref[...], w_ref[...], preferred_element_type=jnp.float32)
    y = y + b_ref[...] + r_ref[...].astype(jnp.float32)
    mean = jnp.mean(y, axis=-1, keepdims=True)
    var = jnp.mean(jnp.square(y - mean), axis=-1, keepdims=True)
    yn = (y - mean) * jax.lax.rsqrt(var + 1e-12)
    o_ref[...] = (yn * g_ref[...] + be_ref[...]).astype(o_ref.dtype)


def _ffn_add_ln_kernel(x_ref, w1_ref, b1_ref, w2_ref, b2_ref, g_ref, be_ref,
                       o_ref):
    # y = LayerNorm(relu(x @ w1 + b1) @ w2 + b2 + x); intermediate stays on-chip.
    x = x_ref[...]
    h = jnp.dot(x, w1_ref[...], preferred_element_type=jnp.float32) + b1_ref[...]
    h = jnp.maximum(h, 0.0).astype(w2_ref.dtype)          # bf16 into the MXU
    y = jnp.dot(h, w2_ref[...], preferred_element_type=jnp.float32) + b2_ref[...]
    y = y + x.astype(jnp.float32)
    mean = jnp.mean(y, axis=-1, keepdims=True)
    var = jnp.mean(jnp.square(y - mean), axis=-1, keepdims=True)
    yn = (y - mean) * jax.lax.rsqrt(var + 1e-12)
    o_ref[...] = (yn * g_ref[...] + be_ref[...]).astype(o_ref.dtype)


def _mha_compute(q, k, v, keep, *, n_head, causal, out_dtype):
    """q:(Sq,d) k/v:(Sk,d) bf16, keep: bool broadcastable to (Sq,Sk)."""
    Sq, d = q.shape
    Sk = k.shape[0]
    dh = d // n_head
    scale = 1.0 / math.sqrt(dh)
    if causal:
        qi = jax.lax.broadcasted_iota(jnp.int32, (Sq, Sk), 0)
        ki = jax.lax.broadcasted_iota(jnp.int32, (Sq, Sk), 1)
        keep = jnp.logical_and(keep, ki <= qi)
    outs = []
    for h in range(n_head):
        lo = h * dh
        qh = q[:, lo:lo + dh] * scale          # fold scale into the small operand
        kh = k[:, lo:lo + dh]
        vh = v[:, lo:lo + dh]
        # contract last axis of both (no explicit K transpose)
        s = jax.lax.dot_general(qh, kh, (((1,), (1,)), ((), ())),
                                preferred_element_type=jnp.float32)
        s = jnp.where(keep, s, jnp.float32(-10000.0))
        m = jnp.max(s, axis=-1, keepdims=True)
        p = jnp.exp(s - m)
        denom = jnp.sum(p, axis=-1, keepdims=True)
        p = p * pl.reciprocal(denom, approx=True)          # EUP, ~free
        oh = jnp.dot(p.astype(vh.dtype), vh, preferred_element_type=jnp.float32)
        outs.append(oh)
    # single lane-dense (Sq, d_model) result
    return jnp.concatenate(outs, axis=-1).astype(out_dtype)


def _self_attn_kernel(valid_ref, qkv_ref, o_ref, *, n_head, causal):
    d = qkv_ref.shape[2] // 3
    qkv = qkv_ref[0]                 # (S, 3d)
    q = qkv[:, 0:d]
    k = qkv[:, d:2 * d]
    v = qkv[:, 2 * d:3 * d]
    keep = valid_ref[0] != 0.0       # (1, Sk) or (Sq, 1)
    o_ref[0] = _mha_compute(q, k, v, keep, n_head=n_head, causal=causal,
                            out_dtype=o_ref.dtype)


def _cross_attn_kernel(valid_ref, q_ref, kv_ref, o_ref, *, n_head):
    d = q_ref.shape[2]
    q = q_ref[0]                     # (Sq, d)
    kv = kv_ref[0]                   # (Sk, 2d)
    k = kv[:, 0:d]
    v = kv[:, d:2 * d]
    keep = valid_ref[0] != 0.0       # (1, Sk)
    o_ref[0] = _mha_compute(q, k, v, keep, n_head=n_head, causal=False,
                            out_dtype=o_ref.dtype)


# ----------------------------- kernel wrappers -----------------------------

def linear_tiled(x2d, w, b, *, out_dtype, tm_t=256, tn_t=256, tk_t=512):
    """x2d: (N, K) bf16, w: (K, M) bf16, b: (M,) f32 -> (N, M) out_dtype."""
    n, kdim = x2d.shape
    d_out = w.shape[1]
    tm = _pick_tile(n, tm_t)
    tn = _pick_tile(d_out, tn_t)
    tk = _pick_tile(kdim, tk_t)
    grid = (n // tm, d_out // tn, kdim // tk)
    return pl.pallas_call(
        _matmul_bias_kernel,
        grid=grid,
        in_specs=[
            pl.BlockSpec((tm, tk), lambda i, j, kk: (i, kk)),
            pl.BlockSpec((tk, tn), lambda i, j, kk: (kk, j)),
            pl.BlockSpec((1, tn), lambda i, j, kk: (0, j)),
        ],
        out_specs=pl.BlockSpec((tm, tn), lambda i, j, kk: (i, j)),
        out_shape=jax.ShapeDtypeStruct((n, d_out), out_dtype),
        scratch_shapes=[pltpu.VMEM((tm, tn), jnp.float32)],
        compiler_params=_cparams("parallel", "parallel", "arbitrary"),
    )(x2d, w, b.reshape(1, d_out))


def proj_add_layernorm(x2d, w, b, res2d, gamma, beta, *, tm_t=256):
    """LayerNorm(x2d @ w + b + res2d) over rows."""
    n, d_in = x2d.shape
    d_out = w.shape[1]
    tm = _pick_tile(n, tm_t)
    return pl.pallas_call(
        _proj_add_ln_kernel,
        grid=(n // tm,),
        in_specs=[
            pl.BlockSpec((tm, d_in), lambda i: (i, 0)),
            pl.BlockSpec((d_in, d_out), lambda i: (0, 0)),
            pl.BlockSpec((1, d_out), lambda i: (0, 0)),
            pl.BlockSpec((tm, d_out), lambda i: (i, 0)),
            pl.BlockSpec((1, d_out), lambda i: (0, 0)),
            pl.BlockSpec((1, d_out), lambda i: (0, 0)),
        ],
        out_specs=pl.BlockSpec((tm, d_out), lambda i: (i, 0)),
        out_shape=jax.ShapeDtypeStruct((n, d_out), x2d.dtype),
        compiler_params=_cparams("parallel"),
    )(x2d, w, b.reshape(1, d_out), res2d,
      gamma.reshape(1, d_out), beta.reshape(1, d_out))


def ffn_add_layernorm(x2d, w1, b1, w2, b2, gamma, beta, *, tm_t=256):
    n, d = x2d.shape
    ff = w1.shape[1]
    tm = _pick_tile(n, tm_t)
    return pl.pallas_call(
        _ffn_add_ln_kernel,
        grid=(n // tm,),
        in_specs=[
            pl.BlockSpec((tm, d), lambda i: (i, 0)),
            pl.BlockSpec((d, ff), lambda i: (0, 0)),
            pl.BlockSpec((1, ff), lambda i: (0, 0)),
            pl.BlockSpec((ff, d), lambda i: (0, 0)),
            pl.BlockSpec((1, d), lambda i: (0, 0)),
            pl.BlockSpec((1, d), lambda i: (0, 0)),
            pl.BlockSpec((1, d), lambda i: (0, 0)),
        ],
        out_specs=pl.BlockSpec((tm, d), lambda i: (i, 0)),
        out_shape=jax.ShapeDtypeStruct((n, d), x2d.dtype),
        compiler_params=_cparams("parallel"),
    )(x2d, w1, b1.reshape(1, ff), w2, b2.reshape(1, d),
      gamma.reshape(1, d), beta.reshape(1, d))


def fused_self_attention(qkv, valid, *, n_head, causal):
    """qkv: (B, S, 3d) bf16; valid: (B,1,S) key-mask or (B,S,1) query-mask."""
    B, S, d3 = qkv.shape
    d = d3 // 3
    Vm, Vn = valid.shape[1], valid.shape[2]
    kern = functools.partial(_self_attn_kernel, n_head=n_head, causal=causal)
    return pl.pallas_call(
        kern,
        grid=(B,),
        in_specs=[
            pl.BlockSpec((1, Vm, Vn), lambda b: (b, 0, 0)),
            pl.BlockSpec((1, S, d3), lambda b: (b, 0, 0)),
        ],
        out_specs=pl.BlockSpec((1, S, d), lambda b: (b, 0, 0)),
        out_shape=jax.ShapeDtypeStruct((B, S, d), qkv.dtype),
        compiler_params=_cparams("parallel"),
    )(valid, qkv)


def fused_cross_attention(q, kv, valid, *, n_head):
    """q: (B, Sq, d), kv: (B, Sk, 2d), valid: (B, 1, Sk) key-mask."""
    B, Sq, d = q.shape
    Sk = kv.shape[1]
    kern = functools.partial(_cross_attn_kernel, n_head=n_head)
    return pl.pallas_call(
        kern,
        grid=(B,),
        in_specs=[
            pl.BlockSpec((1, 1, Sk), lambda b: (b, 0, 0)),
            pl.BlockSpec((1, Sq, d), lambda b: (b, 0, 0)),
            pl.BlockSpec((1, Sk, 2 * d), lambda b: (b, 0, 0)),
        ],
        out_specs=pl.BlockSpec((1, Sq, d), lambda b: (b, 0, 0)),
        out_shape=jax.ShapeDtypeStruct((B, Sq, d), q.dtype),
        compiler_params=_cparams("parallel"),
    )(valid, q, kv)


# ----------------------------- model blocks -----------------------------

def _self_attn_block(p_attn, x, valid, ln_g, ln_b, *, n_head, causal):
    """QKV proj -> fused MHA -> out-proj + residual + LayerNorm. Returns (B*S, d)."""
    B, S, d = x.shape
    x2d = x.reshape(B * S, d)
    qkv = linear_tiled(x2d, p_attn["w_qkv"], p_attn["b_qkv"], out_dtype=x.dtype)
    attn = fused_self_attention(qkv.reshape(B, S, 3 * d), valid,
                                n_head=n_head, causal=causal)
    return proj_add_layernorm(attn.reshape(B * S, d), p_attn["wo"],
                              p_attn["bo"], x2d, ln_g, ln_b)


def encoder_layer(p, x, src_kv_valid, n_head):
    B, S, d = x.shape
    x1 = _self_attn_block(p["attn"], x, src_kv_valid, p["ln1_g"], p["ln1_b"],
                          n_head=n_head, causal=False)
    x2 = ffn_add_layernorm(x1, p["ff_w1"], p["ff_b1"], p["ff_w2"], p["ff_b2"],
                           p["ln2_g"], p["ln2_b"])
    return x2.reshape(B, S, d)


def decoder_layer(p, y, enc, trg_q_valid, src_kv_valid, n_head):
    B, St, d = y.shape
    Ss = enc.shape[1]
    # masked self-attention + Add&Norm
    x1_2d = _self_attn_block(p["self_attn"], y, trg_q_valid,
                             p["ln1_g"], p["ln1_b"], n_head=n_head, causal=True)
    # cross-attention (Q from decoder, fused K/V from encoder) + Add&Norm
    q = linear_tiled(x1_2d, p["cross_attn"]["wq"], p["cross_attn"]["bq"],
                     out_dtype=y.dtype).reshape(B, St, d)
    kv = linear_tiled(enc.reshape(B * Ss, d), p["cross_attn"]["w_kv"],
                      p["cross_attn"]["b_kv"], out_dtype=y.dtype).reshape(B, Ss, 2 * d)
    ca = fused_cross_attention(q, kv, src_kv_valid, n_head=n_head)
    x2_2d = proj_add_layernorm(ca.reshape(B * St, d), p["cross_attn"]["wo"],
                               p["cross_attn"]["bo"], x1_2d,
                               p["ln2_g"], p["ln2_b"])
    # FFN + Add&Norm (fully fused)
    x3 = ffn_add_layernorm(x2_2d, p["ff_w1"], p["ff_b1"], p["ff_w2"], p["ff_b2"],
                           p["ln3_g"], p["ln3_b"])
    return x3.reshape(B, St, d)


def sinusoid_pos_encoding(max_len, d_model):
    pos = jnp.arange(max_len, dtype=jnp.float32)[:, None]
    i2 = jnp.arange(0, d_model, 2, dtype=jnp.float32)[None, :]
    angle = pos / jnp.power(10000.0, i2 / d_model)
    pe = jnp.zeros((max_len, d_model), jnp.float32)
    pe = pe.at[:, 0::2].set(jnp.sin(angle))
    pe = pe.at[:, 1::2].set(jnp.cos(angle))
    return pe


def transformer_apply(params, src, trg, cfg):
    n_head = cfg["n_head"]
    d = cfg["d_model"]
    B, Ss = src.shape
    St = trg.shape[1]
    cdt = jnp.bfloat16

    # masks as tiny per-row validity vectors (causal part is built in-kernel)
    src_kv_valid = (src != cfg["src_pad_idx"]).astype(jnp.float32).reshape(B, 1, Ss)
    trg_q_valid = (trg != cfg["trg_pad_idx"]).astype(jnp.float32).reshape(B, St, 1)

    pe = params["pos_enc"]

    # encoder (embedding gather + PE add stay in XLA)
    x = (jnp.take(params["enc_tok_emb"], src, axis=0) + pe[:Ss][None]).astype(cdt)
    for lp in params["enc_layers"]:
        x = encoder_layer(lp, x, src_kv_valid, n_head)
    enc = x

    # decoder
    y = (jnp.take(params["dec_tok_emb"], trg, axis=0) + pe[:St][None]).astype(cdt)
    for lp in params["dec_layers"]:
        y = decoder_layer(lp, y, enc, trg_q_valid, src_kv_valid, n_head)

    logits = linear_tiled(y.reshape(B * St, d), params["out_w"], params["out_b"],
                          out_dtype=jnp.float32)
    return logits.reshape(B, St, cfg["dec_voc_size"])


# ----------------------------- parameter init -----------------------------

def init_params(key, cfg):
    d = cfg["d_model"]
    ff = cfg["ffn_hidden"]
    wdt = jnp.bfloat16
    keys = iter(jax.random.split(key, 256))

    def dense(din, dout):
        return (jax.random.normal(next(keys), (din, dout), jnp.float32) * 0.02
                ).astype(wdt)

    def zeros_b(dout):
        return jnp.zeros((dout,), jnp.float32)

    def ln():
        return jnp.ones((d,), jnp.float32), jnp.zeros((d,), jnp.float32)

    def attn_self():
        return {"w_qkv": dense(d, 3 * d), "b_qkv": zeros_b(3 * d),
                "wo": dense(d, d), "bo": zeros_b(d)}

    def attn_cross():
        return {"wq": dense(d, d), "bq": zeros_b(d),
                "w_kv": dense(d, 2 * d), "b_kv": zeros_b(2 * d),
                "wo": dense(d, d), "bo": zeros_b(d)}

    def enc_layer_p():
        g1, b1 = ln(); g2, b2 = ln()
        return {"attn": attn_self(),
                "ln1_g": g1, "ln1_b": b1,
                "ff_w1": dense(d, ff), "ff_b1": zeros_b(ff),
                "ff_w2": dense(ff, d), "ff_b2": zeros_b(d),
                "ln2_g": g2, "ln2_b": b2}

    def dec_layer_p():
        g1, b1 = ln(); g2, b2 = ln(); g3, b3 = ln()
        return {"self_attn": attn_self(), "cross_attn": attn_cross(),
                "ln1_g": g1, "ln1_b": b1,
                "ln2_g": g2, "ln2_b": b2,
                "ff_w1": dense(d, ff), "ff_b1": zeros_b(ff),
                "ff_w2": dense(ff, d), "ff_b2": zeros_b(d),
                "ln3_g": g3, "ln3_b": b3}

    params = {
        "enc_tok_emb": jax.random.normal(
            next(keys), (cfg["enc_voc_size"], d), jnp.float32) * 0.02,
        "dec_tok_emb": jax.random.normal(
            next(keys), (cfg["dec_voc_size"], d), jnp.float32) * 0.02,
        "pos_enc": sinusoid_pos_encoding(cfg["max_len"], d),
        "enc_layers": [enc_layer_p() for _ in range(cfg["n_layers"])],
        "dec_layers": [dec_layer_p() for _ in range(cfg["n_layers"])],
        "out_w": dense(d, cfg["dec_voc_size"]),
        "out_b": zeros_b(cfg["dec_voc_size"]),
    }
    return params


# ----------------------------- main -----------------------------

if __name__ == "__main__":
    cfg = dict(
        src_pad_idx=0,
        trg_pad_idx=0,
        trg_sos_idx=1,
        enc_voc_size=16,
        dec_voc_size=16,
        d_model=32,
        n_head=4,
        max_len=16,
        ffn_hidden=64,
        n_layers=2,
        drop_prob=0.0,
    )

    key = jax.random.PRNGKey(0)
    k_params, k_src, k_trg = jax.random.split(key, 3)
    params = init_params(k_params, cfg)

    B, Ss, St = 2, 8, 8
    src = jax.random.randint(k_src, (B, Ss), 0, cfg["enc_voc_size"], dtype=jnp.int32)
    trg = jax.random.randint(k_trg, (B, St), 0, cfg["dec_voc_size"], dtype=jnp.int32)

    fwd = jax.jit(functools.partial(transformer_apply, cfg=cfg))
    out = fwd(params, src, trg)
    out = jax.block_until_ready(out)

    assert out.shape == (B, St, cfg["dec_voc_size"])
    assert out.dtype == jnp.float32
    assert jnp.all(jnp.isfinite(out))
    print("KERNEL_OK")
</pallas_src>

<mosaic_0001>
module attributes {stable_mosaic.version = 11 : i64} {
  func.func @_matmul_bias_kernel(%arg0: i32, %arg1: i32, %arg2: i32, %arg3: memref<16x32xbf16, #tpu.memory_space<vmem>>, %arg4: memref<32x96xbf16, #tpu.memory_space<vmem>>, %arg5: memref<1x96xf32, #tpu.memory_space<vmem>>, %arg6: memref<16x96xbf16, #tpu.memory_space<vmem>>, %arg7: memref<16x96xf32, #tpu.memory_space<vmem>>) attributes {dimension_semantics = [#tpu.dimension_semantics<parallel>, #tpu.dimension_semantics<parallel>, #tpu.dimension_semantics<arbitrary>], iteration_bounds = array<i64: 1, 1, 1>, scalar_prefetch = 0 : i64, scratch_operands = 1 : i64, tpu.core_type = #tpu.core_type<tc>, window_params = [{transform_indices = @transform_0, window_bounds = array<i64: 16, 32>}, {transform_indices = @transform_1, window_bounds = array<i64: 32, 96>}, {transform_indices = @transform_2, window_bounds = array<i64: 1, 96>}, {transform_indices = @transform_3, window_bounds = array<i64: 16, 96>}]} {
    %c0_i32 = arith.constant 0 : i32
    %0 = arith.cmpi eq, %arg2, %c0_i32 : i32
    %1 = arith.extui %0 : i1 to i32
    %c0_i32_0 = arith.constant 0 : i32
    %2 = arith.cmpi ne, %1, %c0_i32_0 : i32
    scf.if %2 {
      %cst_10 = arith.constant 0.000000e+00 : f32
      %12 = vector.broadcast %cst_10 : f32 to vector<16x96xf32>
      %c0_11 = arith.constant 0 : index
      %c0_12 = arith.constant 0 : index
      %13 = vector.load %arg7[%c0_11, %c0_12] : memref<16x96xf32, #tpu.memory_space<vmem>>, vector<16x96xf32>
      tpu.vector_store %arg7[%c0_11, %c0_12], %12 {strides = array<i32>} : memref<16x96xf32, #tpu.memory_space<vmem>>, vector<16x96xf32>,
    } else {
    }
    %c0 = arith.constant 0 : index
    %c0_1 = arith.constant 0 : index
    %3 = vector.load %arg7[%c0, %c0_1] : memref<16x96xf32, #tpu.memory_space<vmem>>, vector<16x96xf32>
    %c0_2 = arith.constant 0 : index
    %c0_3 = arith.constant 0 : index
    %4 = vector.load %arg3[%c0_2, %c0_3] : memref<16x32xbf16, #tpu.memory_space<vmem>>, vector<16x32xbf16>
    %c0_4 = arith.constant 0 : index
    %c0_5 = arith.constant 0 : index
    %5 = vector.load %arg4[%c0_4, %c0_5] : memref<32x96xbf16, #tpu.memory_space<vmem>>, vector<32x96xbf16>
    %cst = arith.constant dense<0.000000e+00> : vector<16x96xf32>
    %6 = tpu.matmul %4, %5, %cst {dimension_numbers = #tpu.dot_dimension_numbers<[1], [0], [0], [1], [0, 0, 1, 1], [], []>} : vector<16x32xbf16>, vector<32x96xbf16>, vector<16x96xf32> -> vector<16x96xf32>
    %7 = arith.addf %3, %6 : vector<16x96xf32>
    %c0_6 = arith.constant 0 : index
    %c0_7 = arith.constant 0 : index
    %8 = vector.load %arg7[%c0_6, %c0_7] : memref<16x96xf32, #tpu.memory_space<vmem>>, vector<16x96xf32>
    tpu.vector_store %arg7[%c0_6, %c0_7], %7 {strides = array<i32>} : memref<16x96xf32, #tpu.memory_space<vmem>>, vector<16x96xf32>,
    %c0_i32_8 = arith.constant 0 : i32
    %9 = arith.cmpi eq, %arg2, %c0_i32_8 : i32
    %10 = arith.extui %9 : i1 to i32
    %c0_i32_9 = arith.constant 0 : i32
    %11 = arith.cmpi ne, %10, %c0_i32_9 : i32
    scf.if %11 {
      %c0_10 = arith.constant 0 : index
      %c0_11 = arith.constant 0 : index
      %12 = vector.load %arg7[%c0_10, %c0_11] : memref<16x96xf32, #tpu.memory_space<vmem>>, vector<16x96xf32>
      %c0_12 = arith.constant 0 : index
      %c0_13 = arith.constant 0 : index
      %13 = vector.load %arg5[%c0_12, %c0_13] : memref<1x96xf32, #tpu.memory_space<vmem>>, vector<1x96xf32>
      %14 = vector.broadcast %13 : vector<1x96xf32> to vector<16x96xf32>
      %15 = arith.addf %12, %14 : vector<16x96xf32>
      %16 = arith.truncf %15 : vector<16x96xf32> to vector<16x96xbf16>
      %c0_14 = arith.constant 0 : index
      %c0_15 = arith.constant 0 : index
      %17 = vector.load %arg6[%c0_14, %c0_15] : memref<16x96xbf16, #tpu.memory_space<vmem>>, vector<16x96xbf16>
      tpu.vector_store %arg6[%c0_14, %c0_15], %16 {strides = array<i32>} : memref<16x96xbf16, #tpu.memory_space<vmem>>, vector<16x96xbf16>,
    } else {
    }
    return
  }
  func.func @transform_0(%arg0: i32, %arg1: i32, %arg2: i32) -> (i32, i32) {
    %c0_i32 = arith.constant 0 : i32
    return %arg0, %arg2 : i32, i32
  }
  func.func @transform_1(%arg0: i32, %arg1: i32, %arg2: i32) -> (i32, i32) {
    %c0_i32 = arith.constant 0 : i32
    return %arg2, %arg1 : i32, i32
  }
  func.func @transform_2(%arg0: i32, %arg1: i32, %arg2: i32) -> (i32, i32) {
    %c0_i32 = arith.constant 0 : i32
    %c0_i32_0 = arith.constant 0 : i32
    return %c0_i32, %arg1 : i32, i32
  }
  func.func @transform_3(%arg0: i32, %arg1: i32, %arg2: i32) -> (i32, i32) {
    %c0_i32 = arith.constant 0 : i32
    return %arg0, %arg1 : i32, i32
  }
}

module attributes {stable_mosaic.version = 11 : i64} {
  func.func @_proj_add_ln_kernel(%arg0: i32, %arg1: memref<16x32xbf16, #tpu.memory_space<vmem>>, %arg2: memref<32x32xbf16, #tpu.memory_space<vmem>>, %arg3: memref<1x32xf32, #tpu.memory_space<vmem>>, %arg4: memref<16x32xbf16, #tpu.memory_space<vmem>>, %arg5: memref<1x32xf32, #tpu.memory_space<vmem>>, %arg6: memref<1x32xf32, #tpu.memory_space<vmem>>, %arg7: memref<16x32xbf16, #tpu.memory_space<vmem>>) attributes {dimension_semantics = [#tpu.dimension_semantics<parallel>], iteration_bounds = array<i64: 1>, scalar_prefetch = 0 : i64, scratch_operands = 0 : i64, tpu.core_type = #tpu.core_type<tc>, window_params = [{transform_indices = @transform_0, window_bounds = array<i64: 16, 32>}, {pipeline_mode = #tpu.pipeline_mode<synchronous>, transform_indices = @transform_1, window_bounds = array<i64: 32, 32>}, {pipeline_mode = #tpu.pipeline_mode<synchronous>, transform_indices = @transform_2, window_bounds = array<i64: 1, 32>}, {transform_indices = @transform_3, window_bounds = array<i64: 16, 32>}, {pipeline_mode = #tpu.pipeline_mode<synchronous>, transform_indices = @transform_4, window_bounds = array<i64: 1, 32>}, {pipeline_mode = #tpu.pipeline_mode<synchronous>, transform_indices = @transform_5, window_bounds = array<i64: 1, 32>}, {transform_indices = @transform_6, window_bounds = array<i64: 16, 32>}]} {
    %c0 = arith.constant 0 : index
    %c0_0 = arith.constant 0 : index
    %0 = vector.load %arg1[%c0, %c0_0] : memref<16x32xbf16, #tpu.memory_space<vmem>>, vector<16x32xbf16>
    %c0_1 = arith.constant 0 : index
    %c0_2 = arith.constant 0 : index
    %1 = vector.load %arg2[%c0_1, %c0_2] : memref<32x32xbf16, #tpu.memory_space<vmem>>, vector<32x32xbf16>
    %cst = arith.constant dense<0.000000e+00> : vector<16x32xf32>
    %2 = tpu.matmul %0, %1, %cst {dimension_numbers = #tpu.dot_dimension_numbers<[1], [0], [0], [1], [0, 0, 1, 1], [], []>} : vector<16x32xbf16>, vector<32x32xbf16>, vector<16x32xf32> -> vector<16x32xf32>
    %c0_3 = arith.constant 0 : index
    %c0_4 = arith.constant 0 : index
    %3 = vector.load %arg3[%c0_3, %c0_4] : memref<1x32xf32, #tpu.memory_space<vmem>>, vector<1x32xf32>
    %4 = vector.broadcast %3 : vector<1x32xf32> to vector<16x32xf32>
    %5 = arith.addf %2, %4 : vector<16x32xf32>
    %c0_5 = arith.constant 0 : index
    %c0_6 = arith.constant 0 : index
    %6 = vector.load %arg4[%c0_5, %c0_6] : memref<16x32xbf16, #tpu.memory_space<vmem>>, vector<16x32xbf16>
    %7 = arith.extf %6 : vector<16x32xbf16> to vector<16x32xf32>
    %8 = arith.addf %5, %7 : vector<16x32xf32>
    %cst_7 = arith.constant dense<0.000000e+00> : vector<16xf32>
    %9 = vector.multi_reduction <add>, %8, %cst_7 [1] : vector<16x32xf32> to vector<16xf32>
    %10 = vector.shape_cast %9 : vector<16xf32> to vector<16x1xf32>
    %cst_8 = arith.constant 3.200000e+01 : f32
    %11 = vector.broadcast %cst_8 : f32 to vector<16x1xf32>
    %12 = arith.divf %10, %11 : vector<16x1xf32>
    %13 = vector.broadcast %12 : vector<16x1xf32> to vector<16x32xf32>
    %14 = arith.subf %8, %13 : vector<16x32xf32>
    %15 = arith.mulf %14, %14 : vector<16x32xf32>
    %cst_9 = arith.constant dense<0.000000e+00> : vector<16xf32>
    %16 = vector.multi_reduction <add>, %15, %cst_9 [1] : vector<16x32xf32> to vector<16xf32>
    %17 = vector.shape_cast %16 : vector<16xf32> to vector<16x1xf32>
    %cst_10 = arith.constant 3.200000e+01 : f32
    %18 = vector.broadcast %cst_10 : f32 to vector<16x1xf32>
    %19 = arith.divf %17, %18 : vector<16x1xf32>
    %20 = vector.broadcast %12 : vector<16x1xf32> to vector<16x32xf32>
    %21 = arith.subf %8, %20 : vector<16x32xf32>
    %cst_11 = arith.constant 9.99999996E-13 : f32
    %22 = vector.broadcast %cst_11 : f32 to vector<16x1xf32>
    %23 = arith.addf %19, %22 : vector<16x1xf32>
    %24 = math.rsqrt %23 : vector<16x1xf32>
    %25 = vector.broadcast %24 : vector<16x1xf32> to vector<16x32xf32>
    %26 = arith.mulf %21, %25 : vector<16x32xf32>
    %c0_12 = arith.constant 0 : index
    %c0_13 = arith.constant 0 : index
    %27 = vector.load %arg5[%c0_12, %c0_13] : memref<1x32xf32, #tpu.memory_space<vmem>>, vector<1x32xf32>
    %28 = vector.broadcast %27 : vector<1x32xf32> to vector<16x32xf32>
    %29 = arith.mulf %26, %28 : vector<16x32xf32>
    %c0_14 = arith.constant 0 : index
    %c0_15 = arith.constant 0 : index
    %30 = vector.load %arg6[%c0_14, %c0_15] : memref<1x32xf32, #tpu.memory_space<vmem>>, vector<1x32xf32>
    %31 = vector.broadcast %30 : vector<1x32xf32> to vector<16x32xf32>
    %32 = arith.addf %29, %31 : vector<16x32xf32>
    %33 = arith.truncf %32 : vector<16x32xf32> to vector<16x32xbf16>
    %c0_16 = arith.constant 0 : index
    %c0_17 = arith.constant 0 : index
    %34 = vector.load %arg7[%c0_16, %c0_17] : memref<16x32xbf16, #tpu.memory_space<vmem>>, vector<16x32xbf16>
    tpu.vector_store %arg7[%c0_16, %c0_17], %33 {strides = array<i32>} : memref<16x32xbf16, #tpu.memory_space<vmem>>, vector<16x32xbf16>,
    return
  }
  func.func @transform_0(%arg0: i32) -> (i32, i32) {
    %c0_i32 = arith.constant 0 : i32
    %c0_i32_0 = arith.constant 0 : i32
    return %arg0, %c0_i32 : i32, i32
  }
  func.func @transform_1(%arg0: i32) -> (i32, i32) {
    %c0_i32 = arith.constant 0 : i32
    %c0_i32_0 = arith.constant 0 : i32
    %c0_i32_1 = arith.constant 0 : i32
    return %c0_i32, %c0_i32_0 : i32, i32
  }
  func.func @transform_2(%arg0: i32) -> (i32, i32) {
    %c0_i32 = arith.constant 0 : i32
    %c0_i32_0 = arith.constant 0 : i32
    %c0_i32_1 = arith.constant 0 : i32
    return %c0_i32, %c0_i32_0 : i32, i32
  }
  func.func @transform_3(%arg0: i32) -> (i32, i32) {
    %c0_i32 = arith.constant 0 : i32
    %c0_i32_0 = arith.constant 0 : i32
    return %arg0, %c0_i32 : i32, i32
  }
  func.func @transform_4(%arg0: i32) -> (i32, i32) {
    %c0_i32 = arith.constant 0 : i32
    %c0_i32_0 = arith.constant 0 : i32
    %c0_i32_1 = arith.constant 0 : i32
    return %c0_i32, %c0_i32_0 : i32, i32
  }
  func.func @transform_5(%arg0: i32) -> (i32, i32) {
    %c0_i32 = arith.constant 0 : i32
    %c0_i32_0 = arith.constant 0 : i32
    %c0_i32_1 = arith.constant 0 : i32
    return %c0_i32, %c0_i32_0 : i32, i32
  }
  func.func @transform_6(%arg0: i32) -> (i32, i32) {
    %c0_i32 = arith.constant 0 : i32
    %c0_i32_0 = arith.constant 0 : i32
    return %arg0, %c0_i32 : i32, i32
  }
}

module attributes {stable_mosaic.version = 11 : i64} {
  func.func @_self_attn_kernel(%arg0: i32, %arg1: memref<1x1x8xf32, #tpu.memory_space<vmem>>, %arg2: memref<1x8x96xbf16, #tpu.memory_space<vmem>>, %arg3: memref<1x8x32xbf16, #tpu.memory_space<vmem>>) attributes {dimension_semantics = [#tpu.dimension_semantics<parallel>], iteration_bounds = array<i64: 2>, scalar_prefetch = 0 : i64, scratch_operands = 0 : i64, tpu.core_type = #tpu.core_type<tc>, window_params = [{transform_indices = @transform_0, window_bounds = array<i64: 1, 1, 8>}, {transform_indices = @transform_1, window_bounds = array<i64: 1, 8, 96>}, {transform_indices = @transform_2, window_bounds = array<i64: 1, 8, 32>}]} {
    %c0 = arith.constant 0 : index
    %c0_0 = arith.constant 0 : index
    %c0_1 = arith.constant 0 : index
    %0 = vector.load %arg2[%c0, %c0_0, %c0_1] : memref<1x8x96xbf16, #tpu.memory_space<vmem>>, vector<1x8x96xbf16>
    %1 = vector.shape_cast %0 : vector<1x8x96xbf16> to vector<8x96xbf16>
    %2 = vector.extract_strided_slice %1 {offsets = [0, 0], sizes = [8, 32], strides = [1, 1]} : vector<8x96xbf16> to vector<8x32xbf16>
    %3 = vector.extract_strided_slice %1 {offsets = [0, 32], sizes = [8, 32], strides = [1, 1]} : vector<8x96xbf16> to vector<8x32xbf16>
    %4 = vector.extract_strided_slice %1 {offsets = [0, 64], sizes = [8, 32], strides = [1, 1]} : vector<8x96xbf16> to vector<8x32xbf16>
    %c0_2 = arith.constant 0 : index
    %c0_3 = arith.constant 0 : index
    %c0_4 = arith.constant 0 : index
    %5 = vector.load %arg1[%c0_2, %c0_3, %c0_4] : memref<1x1x8xf32, #tpu.memory_space<vmem>>, vector<1x1x8xf32>
    %6 = vector.shape_cast %5 : vector<1x1x8xf32> to vector<1x8xf32>
    %cst = arith.constant 0.000000e+00 : f32
    %7 = vector.broadcast %cst : f32 to vector<1x8xf32>
    %8 = arith.cmpf one, %6, %7 : vector<1x8xf32>
    %9 = vector.extract_strided_slice %2 {offsets = [0, 0], sizes = [8, 8], strides = [1, 1]} : vector<8x32xbf16> to vector<8x8xbf16>
    %cst_5 = arith.constant 3.535160e-01 : bf16
    %10 = vector.broadcast %cst_5 : bf16 to vector<8x8xbf16>
    %11 = arith.mulf %9, %10 : vector<8x8xbf16>
    %12 = vector.extract_strided_slice %3 {offsets = [0, 0], sizes = [8, 8], strides = [1, 1]} : vector<8x32xbf16> to vector<8x8xbf16>
    %13 = vector.extract_strided_slice %4 {offsets = [0, 0], sizes = [8, 8], strides = [1, 1]} : vector<8x32xbf16> to vector<8x8xbf16>
    %cst_6 = arith.constant dense<0.000000e+00> : vector<8x8xf32>
    %14 = tpu.matmul %11, %12, %cst_6 {dimension_numbers = #tpu.dot_dimension_numbers<[1], [1], [0], [0], [0, 0, 1, 0], [], []>} : vector<8x8xbf16>, vector<8x8xbf16>, vector<8x8xf32> -> vector<8x8xf32>
    %cst_7 = arith.constant -1.000000e+04 : f32
    %15 = vector.shape_cast %8 : vector<1x8xi1> to vector<1x8xi1>
    %16 = vector.broadcast %15 : vector<1x8xi1> to vector<8x8xi1>
    %17 = vector.broadcast %cst_7 : f32 to vector<8x8xf32>
    %18 = arith.select %16, %14, %17 : vector<8x8xi1>, vector<8x8xf32>
    %cst_8 = arith.constant dense<0xFF800000> : vector<8xf32>
    %19 = vector.multi_reduction <maximumf>, %18, %cst_8 [1] : vector<8x8xf32> to vector<8xf32>
    %20 = vector.shape_cast %19 : vector<8xf32> to vector<8x1xf32>
    %21 = vector.broadcast %20 : vector<8x1xf32> to vector<8x8xf32>
    %22 = arith.subf %18, %21 : vector<8x8xf32>
    %23 = math.exp %22 : vector<8x8xf32>
    %cst_9 = arith.constant dense<0.000000e+00> : vector<8xf32>
    %24 = vector.multi_reduction <add>, %23, %cst_9 [1] : vector<8x8xf32> to vector<8xf32>
    %25 = vector.shape_cast %24 : vector<8xf32> to vector<8x1xf32>
    %26 = tpu.reciprocal %25 {approx = true} : vector<8x1xf32> -> vector<8x1xf32>
    %27 = vector.broadcast %26 : vector<8x1xf32> to vector<8x8xf32>
    %28 = arith.mulf %23, %27 : vector<8x8xf32>
    %29 = arith.truncf %28 : vector<8x8xf32> to vector<8x8xbf16>
    %cst_10 = arith.constant dense<0.000000e+00> : vector<8x8xf32>
    %30 = tpu.matmul %29, %13, %cst_10 {dimension_numbers = #tpu.dot_dimension_numbers<[1], [0], [0], [1], [0, 0, 1, 1], [], []>} : vector<8x8xbf16>, vector<8x8xbf16>, vector<8x8xf32> -> vector<8x8xf32>
    %31 = vector.extract_strided_slice %2 {offsets = [0, 8], sizes = [8, 8], strides = [1, 1]} : vector<8x32xbf16> to vector<8x8xbf16>
    %cst_11 = arith.constant 3.535160e-01 : bf16
    %32 = vector.broadcast %cst_11 : bf16 to vector<8x8xbf16>
    %33 = arith.mulf %31, %32 : vector<8x8xbf16>
    %34 = vector.extract_strided_slice %3 {offsets = [0, 8], sizes = [8, 8], strides = [1, 1]} : vector<8x32xbf16> to vector<8x8xbf16>
    %35 = vector.extract_strided_slice %4 {offsets = [0, 8], sizes = [8, 8], strides = [1, 1]} : vector<8x32xbf16> to vector<8x8xbf16>
    %cst_12 = arith.constant dense<0.000000e+00> : vector<8x8xf32>
    %36 = tpu.matmul %33, %34, %cst_12 {dimension_numbers = #tpu.dot_dimension_numbers<[1], [1], [0], [0], [0, 0, 1, 0], [], []>} : vector<8x8xbf16>, vector<8x8xbf16>, vector<8x8xf32> -> vector<8x8xf32>
    %cst_13 = arith.constant -1.000000e+04 : f32
    %37 = vector.shape_cast %8 : vector<1x8xi1> to vector<1x8xi1>
    %38 = vector.broadcast %37 : vector<1x8xi1> to vector<8x8xi1>
    %39 = vector.broadcast %cst_13 : f32 to vector<8x8xf32>
    %40 = arith.select %38, %36, %39 : vector<8x8xi1>, vector<8x8xf32>
    %cst_14 = arith.constant dense<0xFF800000> : vector<8xf32>
    %41 = vector.multi_reduction <maximumf>, %40, %cst_14 [1] : vector<8x8xf32> to vector<8xf32>
    %42 = vector.shape_cast %41 : vector<8xf32> to vector<8x1xf32>
    %43 = vector.broadcast %42 : vector<8x1xf32> to vector<8x8xf32>
    %44 = arith.subf %40, %43 : vector<8x8xf32>
    %45 = math.exp %44 : vector<8x8xf32>
    %cst_15 = arith.constant dense<0.000000e+00> : vector<8xf32>
    %46 = vector.multi_reduction <add>, %45, %cst_15 [1] : vector<8x8xf32> to vector<8xf32>
    %47 = vector.shape_cast %46 : vector<8xf32> to vector<8x1xf32>
    %48 = tpu.reciprocal %47 {approx = true} : vector<8x1xf32> -> vector<8x1xf32>
    %49 = vector.broadcast %48 : vector<8x1xf32> to vector<8x8xf32>
    %50 = arith.mulf %45, %49 : vector<8x8xf32>
    %51 = arith.truncf %50 : vector<8x8xf32> to vector<8x8xbf16>
    %cst_16 = arith.constant dense<0.000000e+00> : vector<8x8xf32>
    %52 = tpu.matmul %51, %35, %cst_16 {dimension_numbers = #tpu.dot_dimension_numbers<[1], [0], [0], [1], [0, 0, 1, 1], [], []>} : vector<8x8xbf16>, vector<8x8xbf16>, vector<8x8xf32> -> vector<8x8xf32>
    %53 = vector.extract_strided_slice %2 {offsets = [0, 16], sizes = [8, 8], strides = [1, 1]} : vector<8x32xbf16> to vector<8x8xbf16>
    %cst_17 = arith.constant 3.535160e-01 : bf16
    %54 = vector.broadcast %cst_17 : bf16 to vector<8x8xbf16>
    %55 = arith.mulf %53, %54 : vector<8x8xbf16>
    %56 = vector.extract_strided_slice %3 {offsets = [0, 16], sizes = [8, 8], strides = [1, 1]} : vector<8x32xbf16> to vector<8x8xbf16>
    %57 = vector.extract_strided_slice %4 {offsets = [0, 16], sizes = [8, 8], strides = [1, 1]} : vector<8x32xbf16> to vector<8x8xbf16>
    %cst_18 = arith.constant dense<0.000000e+00> : vector<8x8xf32>
    %58 = tpu.matmul %55, %56, %cst_18 {dimension_numbers = #tpu.dot_dimension_numbers<[1], [1], [0], [0], [0, 0, 1, 0], [], []>} : vector<8x8xbf16>, vector<8x8xbf16>, vector<8x8xf32> -> vector<8x8xf32>
    %cst_19 = arith.constant -1.000000e+04 : f32
    %59 = vector.shape_cast %8 : vector<1x8xi1> to vector<1x8xi1>
    %60 = vector.broadcast %59 : vector<1x8xi1> to vector<8x8xi1>
    %61 = vector.broadcast %cst_19 : f32 to vector<8x8xf32>
    %62 = arith.select %60, %58, %61 : vector<8x8xi1>, vector<8x8xf32>
    %cst_20 = arith.constant dense<0xFF800000> : vector<8xf32>
    %63 = vector.multi_reduction <maximumf>, %62, %cst_20 [1] : vector<8x8xf32> to vector<8xf32>
    %64 = vector.shape_cast %63 : vector<8xf32> to vector<8x1xf32>
    %65 = vector.broadcast %64 : vector<8x1xf32> to vector<8x8xf32>
    %66 = arith.subf %62, %65 : vector<8x8xf32>
    %67 = math.exp %66 : vector<8x8xf32>
    %cst_21 = arith.constant dense<0.000000e+00> : vector<8xf32>
    %68 = vector.multi_reduction <add>, %67, %cst_21 [1] : vector<8x8xf32> to vector<8xf32>
    %69 = vector.shape_cast %68 : vector<8xf32> to vector<8x1xf32>
    %70 = tpu.reciprocal %69 {approx = true} : vector<8x1xf32> -> vector<8x1xf32>
    %71 = vector.broadcast %70 : vector<8x1xf32> to vector<8x8xf32>
    %72 = arith.mulf %67, %71 : vector<8x8xf32>
    %73 = arith.truncf %72 : vector<8x8xf32> to vector<8x8xbf16>
    %cst_22 = arith.constant dense<0.000000e+00> : vector<8x8xf32>
    %74 = tpu.matmul %73, %57, %cst_22 {dimension_numbers = #tpu.dot_dimension_numbers<[1], [0], [0], [1], [0, 0, 1, 1], [], []>} : vector<8x8xbf16>, vector<8x8xbf16>, vector<8x8xf32> -> vector<8x8xf32>
    %75 = vector.extract_strided_slice %2 {offsets = [0, 24], sizes = [8, 8], strides = [1, 1]} : vector<8x32xbf16> to vector<8x8xbf16>
    %cst_23 = arith.constant 3.535160e-01 : bf16
    %76 = vector.broadcast %cst_23 : bf16 to vector<8x8xbf16>
    %77 = arith.mulf %75, %76 : vector<8x8xbf16>
    %78 = vector.extract_strided_slice %3 {offsets = [0, 24], sizes = [8, 8], strides = [1, 1]} : vector<8x32xbf16> to vector<8x8xbf16>
    %79 = vector.extract_strided_slice %4 {offsets = [0, 24], sizes = [8, 8], strides = [1, 1]} : vector<8x32xbf16> to vector<8x8xbf16>
    %cst_24 = arith.constant dense<0.000000e+00> : vector<8x8xf32>
    %80 = tpu.matmul %77, %78, %cst_24 {dimension_numbers = #tpu.dot_dimension_numbers<[1], [1], [0], [0], [0, 0, 1, 0], [], []>} : vector<8x8xbf16>, vector<8x8xbf16>, vector<8x8xf32> -> vector<8x8xf32>
    %cst_25 = arith.constant -1.000000e+04 : f32
    %81 = vector.shape_cast %8 : vector<1x8xi1> to vector<1x8xi1>
    %82 = vector.broadcast %81 : vector<1x8xi1> to vector<8x8xi1>
    %83 = vector.broadcast %cst_25 : f32 to vector<8x8xf32>
    %84 = arith.select %82, %80, %83 : vector<8x8xi1>, vector<8x8xf32>
    %cst_26 = arith.constant dense<0xFF800000> : vector<8xf32>
    %85 = vector.multi_reduction <maximumf>, %84, %cst_26 [1] : vector<8x8xf32> to vector<8xf32>
    %86 = vector.shape_cast %85 : vector<8xf32> to vector<8x1xf32>
    %87 = vector.broadcast %86 : vector<8x1xf32> to vector<8x8xf32>
    %88 = arith.subf %84, %87 : vector<8x8xf32>
    %89 = math.exp %88 : vector<8x8xf32>
    %cst_27 = arith.constant dense<0.000000e+00> : vector<8xf32>
    %90 = vector.multi_reduction <add>, %89, %cst_27 [1] : vector<8x8xf32> to vector<8xf32>
    %91 = vector.shape_cast %90 : vector<8xf32> to vector<8x1xf32>
    %92 = tpu.reciprocal %91 {approx = true} : vector<8x1xf32> -> vector<8x1xf32>
    %93 = vector.broadcast %92 : vector<8x1xf32> to vector<8x8xf32>
    %94 = arith.mulf %89, %93 : vector<8x8xf32>
    %95 = arith.truncf %94 : vector<8x8xf32> to vector<8x8xbf16>
    %cst_28 = arith.constant dense<0.000000e+00> : vector<8x8xf32>
    %96 = tpu.matmul %95, %79, %cst_28 {dimension_numbers = #tpu.dot_dimension_numbers<[1], [0], [0], [1], [0, 0, 1, 1], [], []>} : vector<8x8xbf16>, vector<8x8xbf16>, vector<8x8xf32> -> vector<8x8xf32>
    %97 = tpu.concatenate %30, %52, %74, %96 in 1 : vector<8x8xf32>, vector<8x8xf32>, vector<8x8xf32>, vector<8x8xf32> -> vector<8x32xf32>
    %98 = arith.truncf %97 : vector<8x32xf32> to vector<8x32xbf16>
    %c0_29 = arith.constant 0 : index
    %c0_30 = arith.constant 0 : index
    %c0_31 = arith.constant 0 : index
    %99 = vector.load %arg3[%c0_29, %c0_30, %c0_31] : memref<1x8x32xbf16, #tpu.memory_space<vmem>>, vector<1x8x32xbf16>
    %100 = vector.shape_cast %99 : vector<1x8x32xbf16> to vector<8x32xbf16>
    %101 = vector.shape_cast %98 : vector<8x32xbf16> to vector<1x8x32xbf16>
    tpu.vector_store %arg3[%c0_29, %c0_30, %c0_31], %101 {strides = array<i32>} : memref<1x8x32xbf16, #tpu.memory_space<vmem>>, vector<1x8x32xbf16>,
    return
  }
  func.func @transform_0(%arg0: i32) -> (i32, i32, i32) {
    %c0_i32 = arith.constant 0 : i32
    %c0_i32_0 = arith.constant 0 : i32
    %c0_i32_1 = arith.constant 0 : i32
    return %arg0, %c0_i32, %c0_i32_0 : i32, i32, i32
  }
  func.func @transform_1(%arg0: i32) -> (i32, i32, i32) {
    %c0_i32 = arith.constant 0 : i32
    %c0_i32_0 = arith.constant 0 : i32
    %c0_i32_1 = arith.constant 0 : i32
    return %arg0, %c0_i32, %c0_i32_0 : i32, i32, i32
  }
  func.func @transform_2(%arg0: i32) -> (i32, i32, i32) {
    %c0_i32 = arith.constant 0 : i32
    %c0_i32_0 = arith.constant 0 : i32
    %c0_i32_1 = arith.constant 0 : i32
    return %arg0, %c0_i32, %c0_i32_0 : i32, i32, i32
  }
}

module attributes {stable_mosaic.version = 11 : i64} {
  func.func @_ffn_add_ln_kernel(%arg0: i32, %arg1: memref<16x32xbf16, #tpu.memory_space<vmem>>, %arg2: memref<32x64xbf16, #tpu.memory_space<vmem>>, %arg3: memref<1x64xf32, #tpu.memory_space<vmem>>, %arg4: memref<64x32xbf16, #tpu.memory_space<vmem>>, %arg5: memref<1x32xf32, #tpu.memory_space<vmem>>, %arg6: memref<1x32xf32, #tpu.memory_space<vmem>>, %arg7: memref<1x32xf32, #tpu.memory_space<vmem>>, %arg8: memref<16x32xbf16, #tpu.memory_space<vmem>>) attributes {dimension_semantics = [#tpu.dimension_semantics<parallel>], iteration_bounds = array<i64: 1>, scalar_prefetch = 0 : i64, scratch_operands = 0 : i64, tpu.core_type = #tpu.core_type<tc>, window_params = [{transform_indices = @transform_0, window_bounds = array<i64: 16, 32>}, {pipeline_mode = #tpu.pipeline_mode<synchronous>, transform_indices = @transform_1, window_bounds = array<i64: 32, 64>}, {pipeline_mode = #tpu.pipeline_mode<synchronous>, transform_indices = @transform_2, window_bounds = array<i64: 1, 64>}, {pipeline_mode = #tpu.pipeline_mode<synchronous>, transform_indices = @transform_3, window_bounds = array<i64: 64, 32>}, {pipeline_mode = #tpu.pipeline_mode<synchronous>, transform_indices = @transform_4, window_bounds = array<i64: 1, 32>}, {pipeline_mode = #tpu.pipeline_mode<synchronous>, transform_indices = @transform_5, window_bounds = array<i64: 1, 32>}, {pipeline_mode = #tpu.pipeline_mode<synchronous>, transform_indices = @transform_6, window_bounds = array<i64: 1, 32>}, {transform_indices = @transform_7, window_bounds = array<i64: 16, 32>}]} {
    %c0 = arith.constant 0 : index
    %c0_0 = arith.constant 0 : index
    %0 = vector.load %arg1[%c0, %c0_0] : memref<16x32xbf16, #tpu.memory_space<vmem>>, vector<16x32xbf16>
    %c0_1 = arith.constant 0 : index
    %c0_2 = arith.constant 0 : index
    %1 = vector.load %arg2[%c0_1, %c0_2] : memref<32x64xbf16, #tpu.memory_space<vmem>>, vector<32x64xbf16>
    %cst = arith.constant dense<0.000000e+00> : vector<16x64xf32>
    %2 = tpu.matmul %0, %1, %cst {dimension_numbers = #tpu.dot_dimension_numbers<[1], [0], [0], [1], [0, 0, 1, 1], [], []>} : vector<16x32xbf16>, vector<32x64xbf16>, vector<16x64xf32> -> vector<16x64xf32>
    %c0_3 = arith.constant 0 : index
    %c0_4 = arith.constant 0 : index
    %3 = vector.load %arg3[%c0_3, %c0_4] : memref<1x64xf32, #tpu.memory_space<vmem>>, vector<1x64xf32>
    %4 = vector.broadcast %3 : vector<1x64xf32> to vector<16x64xf32>
    %5 = arith.addf %2, %4 : vector<16x64xf32>
    %cst_5 = arith.constant 0.000000e+00 : f32
    %6 = vector.broadcast %cst_5 : f32 to vector<16x64xf32>
    %7 = arith.maximumf %5, %6 : vector<16x64xf32>
    %8 = arith.truncf %7 : vector<16x64xf32> to vector<16x64xbf16>
    %c0_6 = arith.constant 0 : index
    %c0_7 = arith.constant 0 : index
    %9 = vector.load %arg4[%c0_6, %c0_7] : memref<64x32xbf16, #tpu.memory_space<vmem>>, vector<64x32xbf16>
    %cst_8 = arith.constant dense<0.000000e+00> : vector<16x32xf32>
    %10 = tpu.matmul %8, %9, %cst_8 {dimension_numbers = #tpu.dot_dimension_numbers<[1], [0], [0], [1], [0, 0, 1, 1], [], []>} : vector<16x64xbf16>, vector<64x32xbf16>, vector<16x32xf32> -> vector<16x32xf32>
    %c0_9 = arith.constant 0 : index
    %c0_10 = arith.constant 0 : index
    %11 = vector.load %arg5[%c0_9, %c0_10] : memref<1x32xf32, #tpu.memory_space<vmem>>, vector<1x32xf32>
    %12 = vector.broadcast %11 : vector<1x32xf32> to vector<16x32xf32>
    %13 = arith.addf %10, %12 : vector<16x32xf32>
    %14 = arith.extf %0 : vector<16x32xbf16> to vector<16x32xf32>
    %15 = arith.addf %13, %14 : vector<16x32xf32>
    %cst_11 = arith.constant dense<0.000000e+00> : vector<16xf32>
    %16 = vector.multi_reduction <add>, %15, %cst_11 [1] : vector<16x32xf32> to vector<16xf32>
    %17 = vector.shape_cast %16 : vector<16xf32> to vector<16x1xf32>
    %cst_12 = arith.constant 3.200000e+01 : f32
    %18 = vector.broadcast %cst_12 : f32 to vector<16x1xf32>
    %19 = arith.divf %17, %18 : vector<16x1xf32>
    %20 = vector.broadcast %19 : vector<16x1xf32> to vector<16x32xf32>
    %21 = arith.subf %15, %20 : vector<16x32xf32>
    %22 = arith.mulf %21, %21 : vector<16x32xf32>
    %cst_13 = arith.constant dense<0.000000e+00> : vector<16xf32>
    %23 = vector.multi_reduction <add>, %22, %cst_13 [1] : vector<16x32xf32> to vector<16xf32>
    %24 = vector.shape_cast %23 : vector<16xf32> to vector<16x1xf32>
    %cst_14 = arith.constant 3.200000e+01 : f32
    %25 = vector.broadcast %cst_14 : f32 to vector<16x1xf32>
    %26 = arith.divf %24, %25 : vector<16x1xf32>
    %27 = vector.broadcast %19 : vector<16x1xf32> to vector<16x32xf32>
    %28 = arith.subf %15, %27 : vector<16x32xf32>
    %cst_15 = arith.constant 9.99999996E-13 : f32
    %29 = vector.broadcast %cst_15 : f32 to vector<16x1xf32>
    %30 = arith.addf %26, %29 : vector<16x1xf32>
    %31 = math.rsqrt %30 : vector<16x1xf32>
    %32 = vector.broadcast %31 : vector<16x1xf32> to vector<16x32xf32>
    %33 = arith.mulf %28, %32 : vector<16x32xf32>
    %c0_16 = arith.constant 0 : index
    %c0_17 = arith.constant 0 : index
    %34 = vector.load %arg6[%c0_16, %c0_17] : memref<1x32xf32, #tpu.memory_space<vmem>>, vector<1x32xf32>
    %35 = vector.broadcast %34 : vector<1x32xf32> to vector<16x32xf32>
    %36 = arith.mulf %33, %35 : vector<16x32xf32>
    %c0_18 = arith.constant 0 : index
    %c0_19 = arith.constant 0 : index
    %37 = vector.load %arg7[%c0_18, %c0_19] : memref<1x32xf32, #tpu.memory_space<vmem>>, vector<1x32xf32>
    %38 = vector.broadcast %37 : vector<1x32xf32> to vector<16x32xf32>
    %39 = arith.addf %36, %38 : vector<16x32xf32>
    %40 = arith.truncf %39 : vector<16x32xf32> to vector<16x32xbf16>
    %c0_20 = arith.constant 0 : index
    %c0_21 = arith.constant 0 : index
    %41 = vector.load %arg8[%c0_20, %c0_21] : memref<16x32xbf16, #tpu.memory_space<vmem>>, vector<16x32xbf16>
    tpu.vector_store %arg8[%c0_20, %c0_21], %40 {strides = array<i32>} : memref<16x32xbf16, #tpu.memory_space<vmem>>, vector<16x32xbf16>,
    return
  }
  func.func @transform_0(%arg0: i32) -> (i32, i32) {
    %c0_i32 = arith.constant 0 : i32
    %c0_i32_0 = arith.constant 0 : i32
    return %arg0, %c0_i32 : i32, i32
  }
  func.func @transform_1(%arg0: i32) -> (i32, i32) {
    %c0_i32 = arith.constant 0 : i32
    %c0_i32_0 = arith.constant 0 : i32
    %c0_i32_1 = arith.constant 0 : i32
    return %c0_i32, %c0_i32_0 : i32, i32
  }
  func.func @transform_2(%arg0: i32) -> (i32, i32) {
    %c0_i32 = arith.constant 0 : i32
    %c0_i32_0 = arith.constant 0 : i32
    %c0_i32_1 = arith.constant 0 : i32
    return %c0_i32, %c0_i32_0 : i32, i32
  }
  func.func @transform_3(%arg0: i32) -> (i32, i32) {
    %c0_i32 = arith.constant 0 : i32
    %c0_i32_0 = arith.constant 0 : i32
    %c0_i32_1 = arith.constant 0 : i32
    return %c0_i32, %c0_i32_0 : i32, i32
  }
  func.func @transform_4(%arg0: i32) -> (i32, i32) {
    %c0_i32 = arith.constant 0 : i32
    %c0_i32_0 = arith.constant 0 : i32
    %c0_i32_1 = arith.constant 0 : i32
    return %c0_i32, %c0_i32_0 : i32, i32
  }
  func.func @transform_5(%arg0: i32) -> (i32, i32) {
    %c0_i32 = arith.constant 0 : i32
    %c0_i32_0 = arith.constant 0 : i32
    %c0_i32_1 = arith.constant 0 : i32
    return %c0_i32, %c0_i32_0 : i32, i32
  }
  func.func @transform_6(%arg0: i32) -> (i32, i32) {
    %c0_i32 = arith.constant 0 : i32
    %c0_i32_0 = arith.constant 0 : i32
    %c0_i32_1 = arith.constant 0 : i32
    return %c0_i32, %c0_i32_0 : i32, i32
  }
  func.func @transform_7(%arg0: i32) -> (i32, i32) {
    %c0_i32 = arith.constant 0 : i32
    %c0_i32_0 = arith.constant 0 : i32
    return %arg0, %c0_i32 : i32, i32
  }
}

module attributes {stable_mosaic.version = 11 : i64} {
  func.func @_matmul_bias_kernel(%arg0: i32, %arg1: i32, %arg2: i32, %arg3: memref<16x32xbf16, #tpu.memory_space<vmem>>, %arg4: memref<32x64xbf16, #tpu.memory_space<vmem>>, %arg5: memref<1x64xf32, #tpu.memory_space<vmem>>, %arg6: memref<16x64xbf16, #tpu.memory_space<vmem>>, %arg7: memref<16x64xf32, #tpu.memory_space<vmem>>) attributes {dimension_semantics = [#tpu.dimension_semantics<parallel>, #tpu.dimension_semantics<parallel>, #tpu.dimension_semantics<arbitrary>], iteration_bounds = array<i64: 1, 1, 1>, scalar_prefetch = 0 : i64, scratch_operands = 1 : i64, tpu.core_type = #tpu.core_type<tc>, window_params = [{transform_indices = @transform_0, window_bounds = array<i64: 16, 32>}, {transform_indices = @transform_1, window_bounds = array<i64: 32, 64>}, {transform_indices = @transform_2, window_bounds = array<i64: 1, 64>}, {transform_indices = @transform_3, window_bounds = array<i64: 16, 64>}]} {
    %c0_i32 = arith.constant 0 : i32
    %0 = arith.cmpi eq, %arg2, %c0_i32 : i32
    %1 = arith.extui %0 : i1 to i32
    %c0_i32_0 = arith.constant 0 : i32
    %2 = arith.cmpi ne, %1, %c0_i32_0 : i32
    scf.if %2 {
      %cst_10 = arith.constant 0.000000e+00 : f32
      %12 = vector.broadcast %cst_10 : f32 to vector<16x64xf32>
      %c0_11 = arith.constant 0 : index
      %c0_12 = arith.constant 0 : index
      %13 = vector.load %arg7[%c0_11, %c0_12] : memref<16x64xf32, #tpu.memory_space<vmem>>, vector<16x64xf32>
      tpu.vector_store %arg7[%c0_11, %c0_12], %12 {strides = array<i32>} : memref<16x64xf32, #tpu.memory_space<vmem>>, vector<16x64xf32>,
    } else {
    }
    %c0 = arith.constant 0 : index
    %c0_1 = arith.constant 0 : index
    %3 = vector.load %arg7[%c0, %c0_1] : memref<16x64xf32, #tpu.memory_space<vmem>>, vector<16x64xf32>
    %c0_2 = arith.constant 0 : index
    %c0_3 = arith.constant 0 : index
    %4 = vector.load %arg3[%c0_2, %c0_3] : memref<16x32xbf16, #tpu.memory_space<vmem>>, vector<16x32xbf16>
    %c0_4 = arith.constant 0 : index
    %c0_5 = arith.constant 0 : index
    %5 = vector.load %arg4[%c0_4, %c0_5] : memref<32x64xbf16, #tpu.memory_space<vmem>>, vector<32x64xbf16>
    %cst = arith.constant dense<0.000000e+00> : vector<16x64xf32>
    %6 = tpu.matmul %4, %5, %cst {dimension_numbers = #tpu.dot_dimension_numbers<[1], [0], [0], [1], [0, 0, 1, 1], [], []>} : vector<16x32xbf16>, vector<32x64xbf16>, vector<16x64xf32> -> vector<16x64xf32>
    %7 = arith.addf %3, %6 : vector<16x64xf32>
    %c0_6 = arith.constant 0 : index
    %c0_7 = arith.constant 0 : index
    %8 = vector.load %arg7[%c0_6, %c0_7] : memref<16x64xf32, #tpu.memory_space<vmem>>, vector<16x64xf32>
    tpu.vector_store %arg7[%c0_6, %c0_7], %7 {strides = array<i32>} : memref<16x64xf32, #tpu.memory_space<vmem>>, vector<16x64xf32>,
    %c0_i32_8 = arith.constant 0 : i32
    %9 = arith.cmpi eq, %arg2, %c0_i32_8 : i32
    %10 = arith.extui %9 : i1 to i32
    %c0_i32_9 = arith.constant 0 : i32
    %11 = arith.cmpi ne, %10, %c0_i32_9 : i32
    scf.if %11 {
      %c0_10 = arith.constant 0 : index
      %c0_11 = arith.constant 0 : index
      %12 = vector.load %arg7[%c0_10, %c0_11] : memref<16x64xf32, #tpu.memory_space<vmem>>, vector<16x64xf32>
      %c0_12 = arith.constant 0 : index
      %c0_13 = arith.constant 0 : index
      %13 = vector.load %arg5[%c0_12, %c0_13] : memref<1x64xf32, #tpu.memory_space<vmem>>, vector<1x64xf32>
      %14 = vector.broadcast %13 : vector<1x64xf32> to vector<16x64xf32>
      %15 = arith.addf %12, %14 : vector<16x64xf32>
      %16 = arith.truncf %15 : vector<16x64xf32> to vector<16x64xbf16>
      %c0_14 = arith.constant 0 : index
      %c0_15 = arith.constant 0 : index
      %17 = vector.load %arg6[%c0_14, %c0_15] : memref<16x64xbf16, #tpu.memory_space<vmem>>, vector<16x64xbf16>
      tpu.vector_store %arg6[%c0_14, %c0_15], %16 {strides = array<i32>} : memref<16x64xbf16, #tpu.memory_space<vmem>>, vector<16x64xbf16>,
    } else {
    }
    return
  }
  func.func @transform_0(%arg0: i32, %arg1: i32, %arg2: i32) -> (i32, i32) {
    %c0_i32 = arith.constant 0 : i32
    return %arg0, %arg2 : i32, i32
  }
  func.func @transform_1(%arg0: i32, %arg1: i32, %arg2: i32) -> (i32, i32) {
    %c0_i32 = arith.constant 0 : i32
    return %arg2, %arg1 : i32, i32
  }
  func.func @transform_2(%arg0: i32, %arg1: i32, %arg2: i32) -> (i32, i32) {
    %c0_i32 = arith.constant 0 : i32
    %c0_i32_0 = arith.constant 0 : i32
    return %c0_i32, %arg1 : i32, i32
  }
  func.func @transform_3(%arg0: i32, %arg1: i32, %arg2: i32) -> (i32, i32) {
    %c0_i32 = arith.constant 0 : i32
    return %arg0, %arg1 : i32, i32
  }
}

module attributes {stable_mosaic.version = 11 : i64} {
  func.func @_self_attn_kernel(%arg0: i32, %arg1: memref<1x8x1xf32, #tpu.memory_space<vmem>>, %arg2: memref<1x8x96xbf16, #tpu.memory_space<vmem>>, %arg3: memref<1x8x32xbf16, #tpu.memory_space<vmem>>) attributes {dimension_semantics = [#tpu.dimension_semantics<parallel>], iteration_bounds = array<i64: 2>, scalar_prefetch = 0 : i64, scratch_operands = 0 : i64, tpu.core_type = #tpu.core_type<tc>, window_params = [{transform_indices = @transform_0, window_bounds = array<i64: 1, 8, 1>}, {transform_indices = @transform_1, window_bounds = array<i64: 1, 8, 96>}, {transform_indices = @transform_2, window_bounds = array<i64: 1, 8, 32>}]} {
    %c0 = arith.constant 0 : index
    %c0_0 = arith.constant 0 : index
    %c0_1 = arith.constant 0 : index
    %0 = vector.load %arg2[%c0, %c0_0, %c0_1] : memref<1x8x96xbf16, #tpu.memory_space<vmem>>, vector<1x8x96xbf16>
    %1 = vector.shape_cast %0 : vector<1x8x96xbf16> to vector<8x96xbf16>
    %2 = vector.extract_strided_slice %1 {offsets = [0, 0], sizes = [8, 32], strides = [1, 1]} : vector<8x96xbf16> to vector<8x32xbf16>
    %3 = vector.extract_strided_slice %1 {offsets = [0, 32], sizes = [8, 32], strides = [1, 1]} : vector<8x96xbf16> to vector<8x32xbf16>
    %4 = vector.extract_strided_slice %1 {offsets = [0, 64], sizes = [8, 32], strides = [1, 1]} : vector<8x96xbf16> to vector<8x32xbf16>
    %c0_2 = arith.constant 0 : index
    %c0_3 = arith.constant 0 : index
    %c0_4 = arith.constant 0 : index
    %5 = vector.load %arg1[%c0_2, %c0_3, %c0_4] : memref<1x8x1xf32, #tpu.memory_space<vmem>>, vector<1x8x1xf32>
    %6 = vector.shape_cast %5 : vector<1x8x1xf32> to vector<8x1xf32>
    %cst = arith.constant 0.000000e+00 : f32
    %7 = vector.broadcast %cst : f32 to vector<8x1xf32>
    %8 = arith.cmpf one, %6, %7 : vector<8x1xf32>
    %9 = tpu.iota {dimensions = array<i32: 0>} : vector<8x8xi32>
    %10 = tpu.iota {dimensions = array<i32: 1>} : vector<8x8xi32>
    %11 = arith.cmpi sle, %10, %9 : vector<8x8xi32>
    %12 = vector.broadcast %8 : vector<8x1xi1> to vector<8x8xi1>
    %13 = arith.andi %12, %11 : vector<8x8xi1>
    %14 = vector.extract_strided_slice %2 {offsets = [0, 0], sizes = [8, 8], strides = [1, 1]} : vector<8x32xbf16> to vector<8x8xbf16>
    %cst_5 = arith.constant 3.535160e-01 : bf16
    %15 = vector.broadcast %cst_5 : bf16 to vector<8x8xbf16>
    %16 = arith.mulf %14, %15 : vector<8x8xbf16>
    %17 = vector.extract_strided_slice %3 {offsets = [0, 0], sizes = [8, 8], strides = [1, 1]} : vector<8x32xbf16> to vector<8x8xbf16>
    %18 = vector.extract_strided_slice %4 {offsets = [0, 0], sizes = [8, 8], strides = [1, 1]} : vector<8x32xbf16> to vector<8x8xbf16>
    %cst_6 = arith.constant dense<0.000000e+00> : vector<8x8xf32>
    %19 = tpu.matmul %16, %17, %cst_6 {dimension_numbers = #tpu.dot_dimension_numbers<[1], [1], [0], [0], [0, 0, 1, 0], [], []>} : vector<8x8xbf16>, vector<8x8xbf16>, vector<8x8xf32> -> vector<8x8xf32>
    %cst_7 = arith.constant -1.000000e+04 : f32
    %20 = vector.broadcast %cst_7 : f32 to vector<8x8xf32>
    %21 = arith.select %13, %19, %20 : vector<8x8xi1>, vector<8x8xf32>
    %cst_8 = arith.constant dense<0xFF800000> : vector<8xf32>
    %22 = vector.multi_reduction <maximumf>, %21, %cst_8 [1] : vector<8x8xf32> to vector<8xf32>
    %23 = vector.shape_cast %22 : vector<8xf32> to vector<8x1xf32>
    %24 = vector.broadcast %23 : vector<8x1xf32> to vector<8x8xf32>
    %25 = arith.subf %21, %24 : vector<8x8xf32>
    %26 = math.exp %25 : vector<8x8xf32>
    %cst_9 = arith.constant dense<0.000000e+00> : vector<8xf32>
    %27 = vector.multi_reduction <add>, %26, %cst_9 [1] : vector<8x8xf32> to vector<8xf32>
    %28 = vector.shape_cast %27 : vector<8xf32> to vector<8x1xf32>
    %29 = tpu.reciprocal %28 {approx = true} : vector<8x1xf32> -> vector<8x1xf32>
    %30 = vector.broadcast %29 : vector<8x1xf32> to vector<8x8xf32>
    %31 = arith.mulf %26, %30 : vector<8x8xf32>
    %32 = arith.truncf %31 : vector<8x8xf32> to vector<8x8xbf16>
    %cst_10 = arith.constant dense<0.000000e+00> : vector<8x8xf32>
    %33 = tpu.matmul %32, %18, %cst_10 {dimension_numbers = #tpu.dot_dimension_numbers<[1], [0], [0], [1], [0, 0, 1, 1], [], []>} : vector<8x8xbf16>, vector<8x8xbf16>, vector<8x8xf32> -> vector<8x8xf32>
    %34 = vector.extract_strided_slice %2 {offsets = [0, 8], sizes = [8, 8], strides = [1, 1]} : vector<8x32xbf16> to vector<8x8xbf16>
    %cst_11 = arith.constant 3.535160e-01 : bf16
    %35 = vector.broadcast %cst_11 : bf16 to vector<8x8xbf16>
    %36 = arith.mulf %34, %35 : vector<8x8xbf16>
    %37 = vector.extract_strided_slice %3 {offsets = [0, 8], sizes = [8, 8], strides = [1, 1]} : vector<8x32xbf16> to vector<8x8xbf16>
    %38 = vector.extract_strided_slice %4 {offsets = [0, 8], sizes = [8, 8], strides = [1, 1]} : vector<8x32xbf16> to vector<8x8xbf16>
    %cst_12 = arith.constant dense<0.000000e+00> : vector<8x8xf32>
    %39 = tpu.matmul %36, %37, %cst_12 {dimension_numbers = #tpu.dot_dimension_numbers<[1], [1], [0], [0], [0, 0, 1, 0], [], []>} : vector<8x8xbf16>, vector<8x8xbf16>, vector<8x8xf32> -> vector<8x8xf32>
    %cst_13 = arith.constant -1.000000e+04 : f32
    %40 = vector.broadcast %cst_13 : f32 to vector<8x8xf32>
    %41 = arith.select %13, %39, %40 : vector<8x8xi1>, vector<8x8xf32>
    %cst_14 = arith.constant dense<0xFF800000> : vector<8xf32>
    %42 = vector.multi_reduction <maximumf>, %41, %cst_14 [1] : vector<8x8xf32> to vector<8xf32>
    %43 = vector.shape_cast %42 : vector<8xf32> to vector<8x1xf32>
    %44 = vector.broadcast %43 : vector<8x1xf32> to vector<8x8xf32>
    %45 = arith.subf %41, %44 : vector<8x8xf32>
    %46 = math.exp %45 : vector<8x8xf32>
    %cst_15 = arith.constant dense<0.000000e+00> : vector<8xf32>
    %47 = vector.multi_reduction <add>, %46, %cst_15 [1] : vector<8x8xf32> to vector<8xf32>
    %48 = vector.shape_cast %47 : vector<8xf32> to vector<8x1xf32>
    %49 = tpu.reciprocal %48 {approx = true} : vector<8x1xf32> -> vector<8x1xf32>
    %50 = vector.broadcast %49 : vector<8x1xf32> to vector<8x8xf32>
    %51 = arith.mulf %46, %50 : vector<8x8xf32>
    %52 = arith.truncf %51 : vector<8x8xf32> to vector<8x8xbf16>
    %cst_16 = arith.constant dense<0.000000e+00> : vector<8x8xf32>
    %53 = tpu.matmul %52, %38, %cst_16 {dimension_numbers = #tpu.dot_dimension_numbers<[1], [0], [0], [1], [0, 0, 1, 1], [], []>} : vector<8x8xbf16>, vector<8x8xbf16>, vector<8x8xf32> -> vector<8x8xf32>
    %54 = vector.extract_strided_slice %2 {offsets = [0, 16], sizes = [8, 8], strides = [1, 1]} : vector<8x32xbf16> to vector<8x8xbf16>
    %cst_17 = arith.constant 3.535160e-01 : bf16
    %55 = vector.broadcast %cst_17 : bf16 to vector<8x8xbf16>
    %56 = arith.mulf %54, %55 : vector<8x8xbf16>
    %57 = vector.extract_strided_slice %3 {offsets = [0, 16], sizes = [8, 8], strides = [1, 1]} : vector<8x32xbf16> to vector<8x8xbf16>
    %58 = vector.extract_strided_slice %4 {offsets = [0, 16], sizes = [8, 8], strides = [1, 1]} : vector<8x32xbf16> to vector<8x8xbf16>
    %cst_18 = arith.constant dense<0.000000e+00> : vector<8x8xf32>
    %59 = tpu.matmul %56, %57, %cst_18 {dimension_numbers = #tpu.dot_dimension_numbers<[1], [1], [0], [0], [0, 0, 1, 0], [], []>} : vector<8x8xbf16>, vector<8x8xbf16>, vector<8x8xf32> -> vector<8x8xf32>
    %cst_19 = arith.constant -1.000000e+04 : f32
    %60 = vector.broadcast %cst_19 : f32 to vector<8x8xf32>
    %61 = arith.select %13, %59, %60 : vector<8x8xi1>, vector<8x8xf32>
    %cst_20 = arith.constant dense<0xFF800000> : vector<8xf32>
    %62 = vector.multi_reduction <maximumf>, %61, %cst_20 [1] : vector<8x8xf32> to vector<8xf32>
    %63 = vector.shape_cast %62 : vector<8xf32> to vector<8x1xf32>
    %64 = vector.broadcast %63 : vector<8x1xf32> to vector<8x8xf32>
    %65 = arith.subf %61, %64 : vector<8x8xf32>
    %66 = math.exp %65 : vector<8x8xf32>
    %cst_21 = arith.constant dense<0.000000e+00> : vector<8xf32>
    %67 = vector.multi_reduction <add>, %66, %cst_21 [1] : vector<8x8xf32> to vector<8xf32>
    %68 = vector.shape_cast %67 : vector<8xf32> to vector<8x1xf32>
    %69 = tpu.reciprocal %68 {approx = true} : vector<8x1xf32> -> vector<8x1xf32>
    %70 = vector.broadcast %69 : vector<8x1xf32> to vector<8x8xf32>
    %71 = arith.mulf %66, %70 : vector<8x8xf32>
    %72 = arith.truncf %71 : vector<8x8xf32> to vector<8x8xbf16>
    %cst_22 = arith.constant dense<0.000000e+00> : vector<8x8xf32>
    %73 = tpu.matmul %72, %58, %cst_22 {dimension_numbers = #tpu.dot_dimension_numbers<[1], [0], [0], [1], [0, 0, 1, 1], [], []>} : vector<8x8xbf16>, vector<8x8xbf16>, vector<8x8xf32> -> vector<8x8xf32>
    %74 = vector.extract_strided_slice %2 {offsets = [0, 24], sizes = [8, 8], strides = [1, 1]} : vector<8x32xbf16> to vector<8x8xbf16>
    %cst_23 = arith.constant 3.535160e-01 : bf16
    %75 = vector.broadcast %cst_23 : bf16 to vector<8x8xbf16>
    %76 = arith.mulf %74, %75 : vector<8x8xbf16>
    %77 = vector.extract_strided_slice %3 {offsets = [0, 24], sizes = [8, 8], strides = [1, 1]} : vector<8x32xbf16> to vector<8x8xbf16>
    %78 = vector.extract_strided_slice %4 {offsets = [0, 24], sizes = [8, 8], strides = [1, 1]} : vector<8x32xbf16> to vector<8x8xbf16>
    %cst_24 = arith.constant dense<0.000000e+00> : vector<8x8xf32>
    %79 = tpu.matmul %76, %77, %cst_24 {dimension_numbers = #tpu.dot_dimension_numbers<[1], [1], [0], [0], [0, 0, 1, 0], [], []>} : vector<8x8xbf16>, vector<8x8xbf16>, vector<8x8xf32> -> vector<8x8xf32>
    %cst_25 = arith.constant -1.000000e+04 : f32
    %80 = vector.broadcast %cst_25 : f32 to vector<8x8xf32>
    %81 = arith.select %13, %79, %80 : vector<8x8xi1>, vector<8x8xf32>
    %cst_26 = arith.constant dense<0xFF800000> : vector<8xf32>
    %82 = vector.multi_reduction <maximumf>, %81, %cst_26 [1] : vector<8x8xf32> to vector<8xf32>
    %83 = vector.shape_cast %82 : vector<8xf32> to vector<8x1xf32>
    %84 = vector.broadcast %83 : vector<8x1xf32> to vector<8x8xf32>
    %85 = arith.subf %81, %84 : vector<8x8xf32>
    %86 = math.exp %85 : vector<8x8xf32>
    %cst_27 = arith.constant dense<0.000000e+00> : vector<8xf32>
    %87 = vector.multi_reduction <add>, %86, %cst_27 [1] : vector<8x8xf32> to vector<8xf32>
    %88 = vector.shape_cast %87 : vector<8xf32> to vector<8x1xf32>
    %89 = tpu.reciprocal %88 {approx = true} : vector<8x1xf32> -> vector<8x1xf32>
    %90 = vector.broadcast %89 : vector<8x1xf32> to vector<8x8xf32>
    %91 = arith.mulf %86, %90 : vector<8x8xf32>
    %92 = arith.truncf %91 : vector<8x8xf32> to vector<8x8xbf16>
    %cst_28 = arith.constant dense<0.000000e+00> : vector<8x8xf32>
    %93 = tpu.matmul %92, %78, %cst_28 {dimension_numbers = #tpu.dot_dimension_numbers<[1], [0], [0], [1], [0, 0, 1, 1], [], []>} : vector<8x8xbf16>, vector<8x8xbf16>, vector<8x8xf32> -> vector<8x8xf32>
    %94 = tpu.concatenate %33, %53, %73, %93 in 1 : vector<8x8xf32>, vector<8x8xf32>, vector<8x8xf32>, vector<8x8xf32> -> vector<8x32xf32>
    %95 = arith.truncf %94 : vector<8x32xf32> to vector<8x32xbf16>
    %c0_29 = arith.constant 0 : index
    %c0_30 = arith.constant 0 : index
    %c0_31 = arith.constant 0 : index
    %96 = vector.load %arg3[%c0_29, %c0_30, %c0_31] : memref<1x8x32xbf16, #tpu.memory_space<vmem>>, vector<1x8x32xbf16>
    %97 = vector.shape_cast %96 : vector<1x8x32xbf16> to vector<8x32xbf16>
    %98 = vector.shape_cast %95 : vector<8x32xbf16> to vector<1x8x32xbf16>
    tpu.vector_store %arg3[%c0_29, %c0_30, %c0_31], %98 {strides = array<i32>} : memref<1x8x32xbf16, #tpu.memory_space<vmem>>, vector<1x8x32xbf16>,
    return
  }
  func.func @transform_0(%arg0: i32) -> (i32, i32, i32) {
    %c0_i32 = arith.constant 0 : i32
    %c0_i32_0 = arith.constant 0 : i32
    %c0_i32_1 = arith.constant 0 : i32
    return %arg0, %c0_i32, %c0_i32_0 : i32, i32, i32
  }
  func.func @transform_1(%arg0: i32) -> (i32, i32, i32) {
    %c0_i32 = arith.constant 0 : i32
    %c0_i32_0 = arith.constant 0 : i32
    %c0_i32_1 = arith.constant 0 : i32
    return %arg0, %c0_i32, %c0_i32_0 : i32, i32, i32
  }
  func.func @transform_2(%arg0: i32) -> (i32, i32, i32) {
    %c0_i32 = arith.constant 0 : i32
    %c0_i32_0 = arith.constant 0 : i32
    %c0_i32_1 = arith.constant 0 : i32
    return %arg0, %c0_i32, %c0_i32_0 : i32, i32, i32
  }
}

module attributes {stable_mosaic.version = 11 : i64} {
  func.func @_matmul_bias_kernel(%arg0: i32, %arg1: i32, %arg2: i32, %arg3: memref<16x32xbf16, #tpu.memory_space<vmem>>, %arg4: memref<32x32xbf16, #tpu.memory_space<vmem>>, %arg5: memref<1x32xf32, #tpu.memory_space<vmem>>, %arg6: memref<16x32xbf16, #tpu.memory_space<vmem>>, %arg7: memref<16x32xf32, #tpu.memory_space<vmem>>) attributes {dimension_semantics = [#tpu.dimension_semantics<parallel>, #tpu.dimension_semantics<parallel>, #tpu.dimension_semantics<arbitrary>], iteration_bounds = array<i64: 1, 1, 1>, scalar_prefetch = 0 : i64, scratch_operands = 1 : i64, tpu.core_type = #tpu.core_type<tc>, window_params = [{transform_indices = @transform_0, window_bounds = array<i64: 16, 32>}, {transform_indices = @transform_1, window_bounds = array<i64: 32, 32>}, {transform_indices = @transform_2, window_bounds = array<i64: 1, 32>}, {transform_indices = @transform_3, window_bounds = array<i64: 16, 32>}]} {
    %c0_i32 = arith.constant 0 : i32
    %0 = arith.cmpi eq, %arg2, %c0_i32 : i32
    %1 = arith.extui %0 : i1 to i32
    %c0_i32_0 = arith.constant 0 : i32
    %2 = arith.cmpi ne, %1, %c0_i32_0 : i32
    scf.if %2 {
      %cst_10 = arith.constant 0.000000e+00 : f32
      %12 = vector.broadcast %cst_10 : f32 to vector<16x32xf32>
      %c0_11 = arith.constant 0 : index
      %c0_12 = arith.constant 0 : index
      %13 = vector.load %arg7[%c0_11, %c0_12] : memref<16x32xf32, #tpu.memory_space<vmem>>, vector<16x32xf32>
      tpu.vector_store %arg7[%c0_11, %c0_12], %12 {strides = array<i32>} : memref<16x32xf32, #tpu.memory_space<vmem>>, vector<16x32xf32>,
    } else {
    }
    %c0 = arith.constant 0 : index
    %c0_1 = arith.constant 0 : index
    %3 = vector.load %arg7[%c0, %c0_1] : memref<16x32xf32, #tpu.memory_space<vmem>>, vector<16x32xf32>
    %c0_2 = arith.constant 0 : index
    %c0_3 = arith.constant 0 : index
    %4 = vector.load %arg3[%c0_2, %c0_3] : memref<16x32xbf16, #tpu.memory_space<vmem>>, vector<16x32xbf16>
    %c0_4 = arith.constant 0 : index
    %c0_5 = arith.constant 0 : index
    %5 = vector.load %arg4[%c0_4, %c0_5] : memref<32x32xbf16, #tpu.memory_space<vmem>>, vector<32x32xbf16>
    %cst = arith.constant dense<0.000000e+00> : vector<16x32xf32>
    %6 = tpu.matmul %4, %5, %cst {dimension_numbers = #tpu.dot_dimension_numbers<[1], [0], [0], [1], [0, 0, 1, 1], [], []>} : vector<16x32xbf16>, vector<32x32xbf16>, vector<16x32xf32> -> vector<16x32xf32>
    %7 = arith.addf %3, %6 : vector<16x32xf32>
    %c0_6 = arith.constant 0 : index
    %c0_7 = arith.constant 0 : index
    %8 = vector.load %arg7[%c0_6, %c0_7] : memref<16x32xf32, #tpu.memory_space<vmem>>, vector<16x32xf32>
    tpu.vector_store %arg7[%c0_6, %c0_7], %7 {strides = array<i32>} : memref<16x32xf32, #tpu.memory_space<vmem>>, vector<16x32xf32>,
    %c0_i32_8 = arith.constant 0 : i32
    %9 = arith.cmpi eq, %arg2, %c0_i32_8 : i32
    %10 = arith.extui %9 : i1 to i32
    %c0_i32_9 = arith.constant 0 : i32
    %11 = arith.cmpi ne, %10, %c0_i32_9 : i32
    scf.if %11 {
      %c0_10 = arith.constant 0 : index
      %c0_11 = arith.constant 0 : index
      %12 = vector.load %arg7[%c0_10, %c0_11] : memref<16x32xf32, #tpu.memory_space<vmem>>, vector<16x32xf32>
      %c0_12 = arith.constant 0 : index
      %c0_13 = arith.constant 0 : index
      %13 = vector.load %arg5[%c0_12, %c0_13] : memref<1x32xf32, #tpu.memory_space<vmem>>, vector<1x32xf32>
      %14 = vector.broadcast %13 : vector<1x32xf32> to vector<16x32xf32>
      %15 = arith.addf %12, %14 : vector<16x32xf32>
      %16 = arith.truncf %15 : vector<16x32xf32> to vector<16x32xbf16>
      %c0_14 = arith.constant 0 : index
      %c0_15 = arith.constant 0 : index
      %17 = vector.load %arg6[%c0_14, %c0_15] : memref<16x32xbf16, #tpu.memory_space<vmem>>, vector<16x32xbf16>
      tpu.vector_store %arg6[%c0_14, %c0_15], %16 {strides = array<i32>} : memref<16x32xbf16, #tpu.memory_space<vmem>>, vector<16x32xbf16>,
    } else {
    }
    return
  }
  func.func @transform_0(%arg0: i32, %arg1: i32, %arg2: i32) -> (i32, i32) {
    %c0_i32 = arith.constant 0 : i32
    return %arg0, %arg2 : i32, i32
  }
  func.func @transform_1(%arg0: i32, %arg1: i32, %arg2: i32) -> (i32, i32) {
    %c0_i32 = arith.constant 0 : i32
    return %arg2, %arg1 : i32, i32
  }
  func.func @transform_2(%arg0: i32, %arg1: i32, %arg2: i32) -> (i32, i32) {
    %c0_i32 = arith.constant 0 : i32
    %c0_i32_0 = arith.constant 0 : i32
    return %c0_i32, %arg1 : i32, i32
  }
  func.func @transform_3(%arg0: i32, %arg1: i32, %arg2: i32) -> (i32, i32) {
    %c0_i32 = arith.constant 0 : i32
    return %arg0, %arg1 : i32, i32
  }
}

module attributes {stable_mosaic.version = 11 : i64} {
  func.func @_cross_attn_kernel(%arg0: i32, %arg1: memref<1x1x8xf32, #tpu.memory_space<vmem>>, %arg2: memref<1x8x32xbf16, #tpu.memory_space<vmem>>, %arg3: memref<1x8x64xbf16, #tpu.memory_space<vmem>>, %arg4: memref<1x8x32xbf16, #tpu.memory_space<vmem>>) attributes {dimension_semantics = [#tpu.dimension_semantics<parallel>], iteration_bounds = array<i64: 2>, scalar_prefetch = 0 : i64, scratch_operands = 0 : i64, tpu.core_type = #tpu.core_type<tc>, window_params = [{transform_indices = @transform_0, window_bounds = array<i64: 1, 1, 8>}, {transform_indices = @transform_1, window_bounds = array<i64: 1, 8, 32>}, {transform_indices = @transform_2, window_bounds = array<i64: 1, 8, 64>}, {transform_indices = @transform_3, window_bounds = array<i64: 1, 8, 32>}]} {
    %c0 = arith.constant 0 : index
    %c0_0 = arith.constant 0 : index
    %c0_1 = arith.constant 0 : index
    %0 = vector.load %arg2[%c0, %c0_0, %c0_1] : memref<1x8x32xbf16, #tpu.memory_space<vmem>>, vector<1x8x32xbf16>
    %1 = vector.shape_cast %0 : vector<1x8x32xbf16> to vector<8x32xbf16>
    %c0_2 = arith.constant 0 : index
    %c0_3 = arith.constant 0 : index
    %c0_4 = arith.constant 0 : index
    %2 = vector.load %arg3[%c0_2, %c0_3, %c0_4] : memref<1x8x64xbf16, #tpu.memory_space<vmem>>, vector<1x8x64xbf16>
    %3 = vector.shape_cast %2 : vector<1x8x64xbf16> to vector<8x64xbf16>
    %4 = vector.extract_strided_slice %3 {offsets = [0, 0], sizes = [8, 32], strides = [1, 1]} : vector<8x64xbf16> to vector<8x32xbf16>
    %5 = vector.extract_strided_slice %3 {offsets = [0, 32], sizes = [8, 32], strides = [1, 1]} : vector<8x64xbf16> to vector<8x32xbf16>
    %c0_5 = arith.constant 0 : index
    %c0_6 = arith.constant 0 : index
    %c0_7 = arith.constant 0 : index
    %6 = vector.load %arg1[%c0_5, %c0_6, %c0_7] : memref<1x1x8xf32, #tpu.memory_space<vmem>>, vector<1x1x8xf32>
    %7 = vector.shape_cast %6 : vector<1x1x8xf32> to vector<1x8xf32>
    %cst = arith.constant 0.000000e+00 : f32
    %8 = vector.broadcast %cst : f32 to vector<1x8xf32>
    %9 = arith.cmpf one, %7, %8 : vector<1x8xf32>
    %10 = vector.extract_strided_slice %1 {offsets = [0, 0], sizes = [8, 8], strides = [1, 1]} : vector<8x32xbf16> to vector<8x8xbf16>
    %cst_8 = arith.constant 3.535160e-01 : bf16
    %11 = vector.broadcast %cst_8 : bf16 to vector<8x8xbf16>
    %12 = arith.mulf %10, %11 : vector<8x8xbf16>
    %13 = vector.extract_strided_slice %4 {offsets = [0, 0], sizes = [8, 8], strides = [1, 1]} : vector<8x32xbf16> to vector<8x8xbf16>
    %14 = vector.extract_strided_slice %5 {offsets = [0, 0], sizes = [8, 8], strides = [1, 1]} : vector<8x32xbf16> to vector<8x8xbf16>
    %cst_9 = arith.constant dense<0.000000e+00> : vector<8x8xf32>
    %15 = tpu.matmul %12, %13, %cst_9 {dimension_numbers = #tpu.dot_dimension_numbers<[1], [1], [0], [0], [0, 0, 1, 0], [], []>} : vector<8x8xbf16>, vector<8x8xbf16>, vector<8x8xf32> -> vector<8x8xf32>
    %cst_10 = arith.constant -1.000000e+04 : f32
    %16 = vector.shape_cast %9 : vector<1x8xi1> to vector<1x8xi1>
    %17 = vector.broadcast %16 : vector<1x8xi1> to vector<8x8xi1>
    %18 = vector.broadcast %cst_10 : f32 to vector<8x8xf32>
    %19 = arith.select %17, %15, %18 : vector<8x8xi1>, vector<8x8xf32>
    %cst_11 = arith.constant dense<0xFF800000> : vector<8xf32>
    %20 = vector.multi_reduction <maximumf>, %19, %cst_11 [1] : vector<8x8xf32> to vector<8xf32>
    %21 = vector.shape_cast %20 : vector<8xf32> to vector<8x1xf32>
    %22 = vector.broadcast %21 : vector<8x1xf32> to vector<8x8xf32>
    %23 = arith.subf %19, %22 : vector<8x8xf32>
    %24 = math.exp %23 : vector<8x8xf32>
    %cst_12 = arith.constant dense<0.000000e+00> : vector<8xf32>
    %25 = vector.multi_reduction <add>, %24, %cst_12 [1] : vector<8x8xf32> to vector<8xf32>
    %26 = vector.shape_cast %25 : vector<8xf32> to vector<8x1xf32>
    %27 = tpu.reciprocal %26 {approx = true} : vector<8x1xf32> -> vector<8x1xf32>
    %28 = vector.broadcast %27 : vector<8x1xf32> to vector<8x8xf32>
    %29 = arith.mulf %24, %28 : vector<8x8xf32>
    %30 = arith.truncf %29 : vector<8x8xf32> to vector<8x8xbf16>
    %cst_13 = arith.constant dense<0.000000e+00> : vector<8x8xf32>
    %31 = tpu.matmul %30, %14, %cst_13 {dimension_numbers = #tpu.dot_dimension_numbers<[1], [0], [0], [1], [0, 0, 1, 1], [], []>} : vector<8x8xbf16>, vector<8x8xbf16>, vector<8x8xf32> -> vector<8x8xf32>
    %32 = vector.extract_strided_slice %1 {offsets = [0, 8], sizes = [8, 8], strides = [1, 1]} : vector<8x32xbf16> to vector<8x8xbf16>
    %cst_14 = arith.constant 3.535160e-01 : bf16
    %33 = vector.broadcast %cst_14 : bf16 to vector<8x8xbf16>
    %34 = arith.mulf %32, %33 : vector<8x8xbf16>
    %35 = vector.extract_strided_slice %4 {offsets = [0, 8], sizes = [8, 8], strides = [1, 1]} : vector<8x32xbf16> to vector<8x8xbf16>
    %36 = vector.extract_strided_slice %5 {offsets = [0, 8], sizes = [8, 8], strides = [1, 1]} : vector<8x32xbf16> to vector<8x8xbf16>
    %cst_15 = arith.constant dense<0.000000e+00> : vector<8x8xf32>
    %37 = tpu.matmul %34, %35, %cst_15 {dimension_numbers = #tpu.dot_dimension_numbers<[1], [1], [0], [0], [0, 0, 1, 0], [], []>} : vector<8x8xbf16>, vector<8x8xbf16>, vector<8x8xf32> -> vector<8x8xf32>
    %cst_16 = arith.constant -1.000000e+04 : f32
    %38 = vector.shape_cast %9 : vector<1x8xi1> to vector<1x8xi1>
    %39 = vector.broadcast %38 : vector<1x8xi1> to vector<8x8xi1>
    %40 = vector.broadcast %cst_16 : f32 to vector<8x8xf32>
    %41 = arith.select %39, %37, %40 : vector<8x8xi1>, vector<8x8xf32>
    %cst_17 = arith.constant dense<0xFF800000> : vector<8xf32>
    %42 = vector.multi_reduction <maximumf>, %41, %cst_17 [1] : vector<8x8xf32> to vector<8xf32>
    %43 = vector.shape_cast %42 : vector<8xf32> to vector<8x1xf32>
    %44 = vector.broadcast %43 : vector<8x1xf32> to vector<8x8xf32>
    %45 = arith.subf %41, %44 : vector<8x8xf32>
    %46 = math.exp %45 : vector<8x8xf32>
    %cst_18 = arith.constant dense<0.000000e+00> : vector<8xf32>
    %47 = vector.multi_reduction <add>, %46, %cst_18 [1] : vector<8x8xf32> to vector<8xf32>
    %48 = vector.shape_cast %47 : vector<8xf32> to vector<8x1xf32>
    %49 = tpu.reciprocal %48 {approx = true} : vector<8x1xf32> -> vector<8x1xf32>
    %50 = vector.broadcast %49 : vector<8x1xf32> to vector<8x8xf32>
    %51 = arith.mulf %46, %50 : vector<8x8xf32>
    %52 = arith.truncf %51 : vector<8x8xf32> to vector<8x8xbf16>
    %cst_19 = arith.constant dense<0.000000e+00> : vector<8x8xf32>
    %53 = tpu.matmul %52, %36, %cst_19 {dimension_numbers = #tpu.dot_dimension_numbers<[1], [0], [0], [1], [0, 0, 1, 1], [], []>} : vector<8x8xbf16>, vector<8x8xbf16>, vector<8x8xf32> -> vector<8x8xf32>
    %54 = vector.extract_strided_slice %1 {offsets = [0, 16], sizes = [8, 8], strides = [1, 1]} : vector<8x32xbf16> to vector<8x8xbf16>
    %cst_20 = arith.constant 3.535160e-01 : bf16
    %55 = vector.broadcast %cst_20 : bf16 to vector<8x8xbf16>
    %56 = arith.mulf %54, %55 : vector<8x8xbf16>
    %57 = vector.extract_strided_slice %4 {offsets = [0, 16], sizes = [8, 8], strides = [1, 1]} : vector<8x32xbf16> to vector<8x8xbf16>
    %58 = vector.extract_strided_slice %5 {offsets = [0, 16], sizes = [8, 8], strides = [1, 1]} : vector<8x32xbf16> to vector<8x8xbf16>
    %cst_21 = arith.constant dense<0.000000e+00> : vector<8x8xf32>
    %59 = tpu.matmul %56, %57, %cst_21 {dimension_numbers = #tpu.dot_dimension_numbers<[1], [1], [0], [0], [0, 0, 1, 0], [], []>} : vector<8x8xbf16>, vector<8x8xbf16>, vector<8x8xf32> -> vector<8x8xf32>
    %cst_22 = arith.constant -1.000000e+04 : f32
    %60 = vector.shape_cast %9 : vector<1x8xi1> to vector<1x8xi1>
    %61 = vector.broadcast %60 : vector<1x8xi1> to vector<8x8xi1>
    %62 = vector.broadcast %cst_22 : f32 to vector<8x8xf32>
    %63 = arith.select %61, %59, %62 : vector<8x8xi1>, vector<8x8xf32>
    %cst_23 = arith.constant dense<0xFF800000> : vector<8xf32>
    %64 = vector.multi_reduction <maximumf>, %63, %cst_23 [1] : vector<8x8xf32> to vector<8xf32>
    %65 = vector.shape_cast %64 : vector<8xf32> to vector<8x1xf32>
    %66 = vector.broadcast %65 : vector<8x1xf32> to vector<8x8xf32>
    %67 = arith.subf %63, %66 : vector<8x8xf32>
    %68 = math.exp %67 : vector<8x8xf32>
    %cst_24 = arith.constant dense<0.000000e+00> : vector<8xf32>
    %69 = vector.multi_reduction <add>, %68, %cst_24 [1] : vector<8x8xf32> to vector<8xf32>
    %70 = vector.shape_cast %69 : vector<8xf32> to vector<8x1xf32>
    %71 = tpu.reciprocal %70 {approx = true} : vector<8x1xf32> -> vector<8x1xf32>
    %72 = vector.broadcast %71 : vector<8x1xf32> to vector<8x8xf32>
    %73 = arith.mulf %68, %72 : vector<8x8xf32>
    %74 = arith.truncf %73 : vector<8x8xf32> to vector<8x8xbf16>
    %cst_25 = arith.constant dense<0.000000e+00> : vector<8x8xf32>
    %75 = tpu.matmul %74, %58, %cst_25 {dimension_numbers = #tpu.dot_dimension_numbers<[1], [0], [0], [1], [0, 0, 1, 1], [], []>} : vector<8x8xbf16>, vector<8x8xbf16>, vector<8x8xf32> -> vector<8x8xf32>
    %76 = vector.extract_strided_slice %1 {offsets = [0, 24], sizes = [8, 8], strides = [1, 1]} : vector<8x32xbf16> to vector<8x8xbf16>
    %cst_26 = arith.constant 3.535160e-01 : bf16
    %77 = vector.broadcast %cst_26 : bf16 to vector<8x8xbf16>
    %78 = arith.mulf %76, %77 : vector<8x8xbf16>
    %79 = vector.extract_strided_slice %4 {offsets = [0, 24], sizes = [8, 8], strides = [1, 1]} : vector<8x32xbf16> to vector<8x8xbf16>
    %80 = vector.extract_strided_slice %5 {offsets = [0, 24], sizes = [8, 8], strides = [1, 1]} : vector<8x32xbf16> to vector<8x8xbf16>
    %cst_27 = arith.constant dense<0.000000e+00> : vector<8x8xf32>
    %81 = tpu.matmul %78, %79, %cst_27 {dimension_numbers = #tpu.dot_dimension_numbers<[1], [1], [0], [0], [0, 0, 1, 0], [], []>} : vector<8x8xbf16>, vector<8x8xbf16>, vector<8x8xf32> -> vector<8x8xf32>
    %cst_28 = arith.constant -1.000000e+04 : f32
    %82 = vector.shape_cast %9 : vector<1x8xi1> to vector<1x8xi1>
    %83 = vector.broadcast %82 : vector<1x8xi1> to vector<8x8xi1>
    %84 = vector.broadcast %cst_28 : f32 to vector<8x8xf32>
    %85 = arith.select %83, %81, %84 : vector<8x8xi1>, vector<8x8xf32>
    %cst_29 = arith.constant dense<0xFF800000> : vector<8xf32>
    %86 = vector.multi_reduction <maximumf>, %85, %cst_29 [1] : vector<8x8xf32> to vector<8xf32>
    %87 = vector.shape_cast %86 : vector<8xf32> to vector<8x1xf32>
    %88 = vector.broadcast %87 : vector<8x1xf32> to vector<8x8xf32>
    %89 = arith.subf %85, %88 : vector<8x8xf32>
    %90 = math.exp %89 : vector<8x8xf32>
    %cst_30 = arith.constant dense<0.000000e+00> : vector<8xf32>
    %91 = vector.multi_reduction <add>, %90, %cst_30 [1] : vector<8x8xf32> to vector<8xf32>
    %92 = vector.shape_cast %91 : vector<8xf32> to vector<8x1xf32>
    %93 = tpu.reciprocal %92 {approx = true} : vector<8x1xf32> -> vector<8x1xf32>
    %94 = vector.broadcast %93 : vector<8x1xf32> to vector<8x8xf32>
    %95 = arith.mulf %90, %94 : vector<8x8xf32>
    %96 = arith.truncf %95 : vector<8x8xf32> to vector<8x8xbf16>
    %cst_31 = arith.constant dense<0.000000e+00> : vector<8x8xf32>
    %97 = tpu.matmul %96, %80, %cst_31 {dimension_numbers = #tpu.dot_dimension_numbers<[1], [0], [0], [1], [0, 0, 1, 1], [], []>} : vector<8x8xbf16>, vector<8x8xbf16>, vector<8x8xf32> -> vector<8x8xf32>
    %98 = tpu.concatenate %31, %53, %75, %97 in 1 : vector<8x8xf32>, vector<8x8xf32>, vector<8x8xf32>, vector<8x8xf32> -> vector<8x32xf32>
    %99 = arith.truncf %98 : vector<8x32xf32> to vector<8x32xbf16>
    %c0_32 = arith.constant 0 : index
    %c0_33 = arith.constant 0 : index
    %c0_34 = arith.constant 0 : index
    %100 = vector.load %arg4[%c0_32, %c0_33, %c0_34] : memref<1x8x32xbf16, #tpu.memory_space<vmem>>, vector<1x8x32xbf16>
    %101 = vector.shape_cast %100 : vector<1x8x32xbf16> to vector<8x32xbf16>
    %102 = vector.shape_cast %99 : vector<8x32xbf16> to vector<1x8x32xbf16>
    tpu.vector_store %arg4[%c0_32, %c0_33, %c0_34], %102 {strides = array<i32>} : memref<1x8x32xbf16, #tpu.memory_space<vmem>>, vector<1x8x32xbf16>,
    return
  }
  func.func @transform_0(%arg0: i32) -> (i32, i32, i32) {
    %c0_i32 = arith.constant 0 : i32
    %c0_i32_0 = arith.constant 0 : i32
    %c0_i32_1 = arith.constant 0 : i32
    return %arg0, %c0_i32, %c0_i32_0 : i32, i32, i32
  }
  func.func @transform_1(%arg0: i32) -> (i32, i32, i32) {
    %c0_i32 = arith.constant 0 : i32
    %c0_i32_0 = arith.constant 0 : i32
    %c0_i32_1 = arith.constant 0 : i32
    return %arg0, %c0_i32, %c0_i32_0 : i32, i32, i32
  }
  func.func @transform_2(%arg0: i32) -> (i32, i32, i32) {
    %c0_i32 = arith.constant 0 : i32
    %c0_i32_0 = arith.constant 0 : i32
    %c0_i32_1 = arith.constant 0 : i32
    return %arg0, %c0_i32, %c0_i32_0 : i32, i32, i32
  }
  func.func @transform_3(%arg0: i32) -> (i32, i32, i32) {
    %c0_i32 = arith.constant 0 : i32
    %c0_i32_0 = arith.constant 0 : i32
    %c0_i32_1 = arith.constant 0 : i32
    return %arg0, %c0_i32, %c0_i32_0 : i32, i32, i32
  }
}

module attributes {stable_mosaic.version = 11 : i64} {
  func.func @_matmul_bias_kernel(%arg0: i32, %arg1: i32, %arg2: i32, %arg3: memref<16x32xbf16, #tpu.memory_space<vmem>>, %arg4: memref<32x16xbf16, #tpu.memory_space<vmem>>, %arg5: memref<1x16xf32, #tpu.memory_space<vmem>>, %arg6: memref<16x16xf32, #tpu.memory_space<vmem>>, %arg7: memref<16x16xf32, #tpu.memory_space<vmem>>) attributes {dimension_semantics = [#tpu.dimension_semantics<parallel>, #tpu.dimension_semantics<parallel>, #tpu.dimension_semantics<arbitrary>], iteration_bounds = array<i64: 1, 1, 1>, scalar_prefetch = 0 : i64, scratch_operands = 1 : i64, tpu.core_type = #tpu.core_type<tc>, window_params = [{transform_indices = @transform_0, window_bounds = array<i64: 16, 32>}, {transform_indices = @transform_1, window_bounds = array<i64: 32, 16>}, {transform_indices = @transform_2, window_bounds = array<i64: 1, 16>}, {transform_indices = @transform_3, window_bounds = array<i64: 16, 16>}]} {
    %c0_i32 = arith.constant 0 : i32
    %0 = arith.cmpi eq, %arg2, %c0_i32 : i32
    %1 = arith.extui %0 : i1 to i32
    %c0_i32_0 = arith.constant 0 : i32
    %2 = arith.cmpi ne, %1, %c0_i32_0 : i32
    scf.if %2 {
      %cst_10 = arith.constant 0.000000e+00 : f32
      %12 = vector.broadcast %cst_10 : f32 to vector<16x16xf32>
      %c0_11 = arith.constant 0 : index
      %c0_12 = arith.constant 0 : index
      %13 = vector.load %arg7[%c0_11, %c0_12] : memref<16x16xf32, #tpu.memory_space<vmem>>, vector<16x16xf32>
      tpu.vector_store %arg7[%c0_11, %c0_12], %12 {strides = array<i32>} : memref<16x16xf32, #tpu.memory_space<vmem>>, vector<16x16xf32>,
    } else {
    }
    %c0 = arith.constant 0 : index
    %c0_1 = arith.constant 0 : index
    %3 = vector.load %arg7[%c0, %c0_1] : memref<16x16xf32, #tpu.memory_space<vmem>>, vector<16x16xf32>
    %c0_2 = arith.constant 0 : index
    %c0_3 = arith.constant 0 : index
    %4 = vector.load %arg3[%c0_2, %c0_3] : memref<16x32xbf16, #tpu.memory_space<vmem>>, vector<16x32xbf16>
    %c0_4 = arith.constant 0 : index
    %c0_5 = arith.constant 0 : index
    %5 = vector.load %arg4[%c0_4, %c0_5] : memref<32x16xbf16, #tpu.memory_space<vmem>>, vector<32x16xbf16>
    %cst = arith.constant dense<0.000000e+00> : vector<16x16xf32>
    %6 = tpu.matmul %4, %5, %cst {dimension_numbers = #tpu.dot_dimension_numbers<[1], [0], [0], [1], [0, 0, 1, 1], [], []>} : vector<16x32xbf16>, vector<32x16xbf16>, vector<16x16xf32> -> vector<16x16xf32>
    %7 = arith.addf %3, %6 : vector<16x16xf32>
    %c0_6 = arith.constant 0 : index
    %c0_7 = arith.constant 0 : index
    %8 = vector.load %arg7[%c0_6, %c0_7] : memref<16x16xf32, #tpu.memory_space<vmem>>, vector<16x16xf32>
    tpu.vector_store %arg7[%c0_6, %c0_7], %7 {strides = array<i32>} : memref<16x16xf32, #tpu.memory_space<vmem>>, vector<16x16xf32>,
    %c0_i32_8 = arith.constant 0 : i32
    %9 = arith.cmpi eq, %arg2, %c0_i32_8 : i32
    %10 = arith.extui %9 : i1 to i32
    %c0_i32_9 = arith.constant 0 : i32
    %11 = arith.cmpi ne, %10, %c0_i32_9 : i32
    scf.if %11 {
      %c0_10 = arith.constant 0 : index
      %c0_11 = arith.constant 0 : index
      %12 = vector.load %arg7[%c0_10, %c0_11] : memref<16x16xf32, #tpu.memory_space<vmem>>, vector<16x16xf32>
      %c0_12 = arith.constant 0 : index
      %c0_13 = arith.constant 0 : index
      %13 = vector.load %arg5[%c0_12, %c0_13] : memref<1x16xf32, #tpu.memory_space<vmem>>, vector<1x16xf32>
      %14 = vector.broadcast %13 : vector<1x16xf32> to vector<16x16xf32>
      %15 = arith.addf %12, %14 : vector<16x16xf32>
      %c0_14 = arith.constant 0 : index
      %c0_15 = arith.constant 0 : index
      %16 = vector.load %arg6[%c0_14, %c0_15] : memref<16x16xf32, #tpu.memory_space<vmem>>, vector<16x16xf32>
      tpu.vector_store %arg6[%c0_14, %c0_15], %15 {strides = array<i32>} : memref<16x16xf32, #tpu.memory_space<vmem>>, vector<16x16xf32>,
    } else {
    }
    return
  }
  func.func @transform_0(%arg0: i32, %arg1: i32, %arg2: i32) -> (i32, i32) {
    %c0_i32 = arith.constant 0 : i32
    return %arg0, %arg2 : i32, i32
  }
  func.func @transform_1(%arg0: i32, %arg1: i32, %arg2: i32) -> (i32, i32) {
    %c0_i32 = arith.constant 0 : i32
    return %arg2, %arg1 : i32, i32
  }
  func.func @transform_2(%arg0: i32, %arg1: i32, %arg2: i32) -> (i32, i32) {
    %c0_i32 = arith.constant 0 : i32
    %c0_i32_0 = arith.constant 0 : i32
    return %c0_i32, %arg1 : i32, i32
  }
  func.func @transform_3(%arg0: i32, %arg1: i32, %arg2: i32) -> (i32, i32) {
    %c0_i32 = arith.constant 0 : i32
    return %arg0, %arg1 : i32, i32
  }
}

</mosaic_0001>

<bundles_post_ra>
// kernel: transformer_apply.27
= control target key start
LH: loop header
LB: loop body
LE: loop exit
PB: predicated region body
PF: predicated region fallthrough
CT: control target
= control target key end

     0   :  { %v200_v0 = vmov 0.0   ;;  %vm201_vm0 = vmmov 0   ;;  %vm54_vm1 = vcmask 261120   ;;  %vm158_vm2 = vcmask 257024   ;;  %s269_s1 = inlined_call_operand.vmem [shape: bf16[32,32], index: 1, kind: input, shape index: {}]   ;;  %s270_s0 = inlined_call_operand.vmem [shape: bf16[16,32], index: 0, kind: input, shape index: {}]   ;;  %s271_s3 = inlined_call_operand.vmem [shape: bf16[16,32], index: 3, kind: input, shape index: {}]   ;;  %s272_s2 = inlined_call_operand.vmem [shape: f32[1,32], index: 2, kind: input, shape index: {}]   ;;  %s273_s4 = inlined_call_operand.vmem [shape: f32[1,32], index: 4, kind: input, shape index: {}]   ;;  %s274_s5 = inlined_call_operand.vmem [shape: f32[1,32], index: 5, kind: input, shape index: {}]   ;;  %s275_s6 = inlined_call_operand.vmem [shape: bf16[16,32], index: 6, kind: output, shape index: {}]  }
   0x1   :  { %183 = vmatprep.subr.bf16.mxu0 %v200_v0  ;;  %v193_v1 = vld [vmem:[%s269_s1] sm:$0xff]   ;;  %187 = vmatprep.mubr.msk.bf16.mxu0 %vm201_vm0, %v200_v0  ;;  %v194_v2 = vld [vmem:[%s269_s1 + $0x8] sm:$0xff]  }
   0x2   :  { %184 = vmatpush3.bf16.msra.mxu0 %v193_v1  ;;  %v195_v3 = vld [vmem:[%s270_s0] sm:$0xff]  }
   0x3   :  { %185 = vmatprep.subr.bf16.mxu0 %v200_v0  ;;  %v177_v4 = vld [vmem:[%s271_s3] sm:$0xff]  }
   0x4   :  { %v165_v5 = vld [vmem:[%s272_s2] ss:$0 sm:$0xff]  ;;  %v178_v6 = vunpack.c.l.bf16 %v177_v4  ;;  %v179_v10 = vunpack.c.h.bf16 %v177_v4 }
   0x5   :  { %v170_v35 = vld [vmem:[%s273_s4] ss:$0 sm:$0xff] }
   0x6   :  { %186 = vmatpush3.bf16.msra.mxu0 %v194_v2  ;;  %v171_v37 = vld [vmem:[%s274_s5] ss:$0 sm:$0xff] }
   0x9   :  { %188 = vmatmul.mubr.msk.bf16.vlgmr.msra.gmra.mrb[0].mxu0 %vm54_vm1, %v195_v3 }
  0xdc   :  { %v92_v7 = vpop.f32.mrb[0].mxu0 }
  0xdd   :  { %v93_v8 = vadd.f32 %v165_v5, %v92_v7  ;;  %v189_v9 = vpop.f32.mrb[1].mxu0 }
  0xde   :  { %v95_v11 = vpop.f32.mrb[2].mxu0 }
  0xdf   :  { %v96_v12 = vadd.f32 %v165_v5, %v95_v11  ;;  %v190_v13 = vpop.f32.mrb[3].mxu0  ;;  %v103_v14 = vadd.f32 %v178_v6, %v93_v8 }
  0xe1   :  { %v105_v15 = vsel %vm54_vm1, %v103_v14, 0.0  ;;  %v104_v16 = vadd.f32 %v179_v10, %v96_v12 }
  0xe2   :  { %106 = vadd.xlane.f32.xlu0 %v105_v15 }
  0xe3   :  { %v108_v17 = vsel %vm54_vm1, %v104_v16, 0.0 }
  0xe6   :  { %109 = vadd.xlane.f32.xlu0 %v108_v17 }
 0x16f   :  { %v107_v18 = vpop.xlane.xlu0 %106 }
 0x170   :  { %v112_v19 = vmul.f32 0.03125, %v107_v18 }
 0x172   :  { %v114_v20 = vsub.f32 %v103_v14, %v112_v19 }
 0x173   :  { %v110_v21 = vpop.xlane.xlu0 %109 }
 0x174   :  { %v113_v22 = vmul.f32 0.03125, %v110_v21  ;;  %v116_v23 = vmul.f32 %v114_v20, %v114_v20 }
 0x176   :  { %v115_v24 = vsub.f32 %v104_v16, %v113_v22  ;;  %v118_v25 = vsel %vm54_vm1, %v116_v23, 0.0 }
 0x177   :  { %119 = vadd.xlane.f32.xlu1 %v118_v25 }
 0x178   :  { %v117_v26 = vmul.f32 %v115_v24, %v115_v24 }
 0x17a   :  { %v121_v27 = vsel %vm54_vm1, %v117_v26, 0.0 }
 0x17b   :  { %122 = vadd.xlane.f32.xlu1 %v121_v27 }
 0x204   :  { %v120_v28 = vpop.xlane.xlu1 %119 }
 0x205   :  { %v124_v29 = vmul.f32 0.03125, %v120_v28 }
 0x207   :  { %v126_v30 = vadd.f32 1e-12, %v124_v29 }
 0x208   :  { %v123_v31 = vpop.xlane.xlu1 %122 }
 0x209   :  { %196 = vrsqrt.f32 %v126_v30  ;;  %v125_v32 = vmul.f32 0.03125, %v123_v31 }
 0x20b   :  { %v127_v33 = vadd.f32 1e-12, %v125_v32 }
 0x20d   :  { %198 = vrsqrt.f32 %v127_v33 }
 0x213   :  { %v197_v34 = vpop.eup %196 }
 0x214   :  { %v130_v36 = vmul.f32 %v197_v34, %v114_v20 }
 0x216   :  { %v139_v38 = vmul.f32 %v170_v35, %v130_v36 }
 0x217   :  { %v199_v39 = vpop.eup %198 }
 0x218   :  { %v148_v40 = vadd.f32 %v171_v37, %v139_v38  ;;  %v131_v41 = vmul.f32 %v199_v39, %v115_v24 }
 0x21a   :  { %v174_v42 = vpack.c.bf16 %v148_v40, %v148_v40  ;;  %v140_v43 = vmul.f32 %v170_v35, %v131_v41 }
 0x21c   :  { %159 = vst.msk [vmem:[%s275_s6] sm:$0xf] %vm158_vm2, %v174_v42  ;;  %v149_v44 = vadd.f32 %v171_v37, %v140_v43 }
 0x21e   :  { %v175_v45 = vpack.c.bf16 %v149_v44, %v149_v44 }
 0x220   :  { %160 = vst.msk [vmem:[%s275_s6 + $0x4] sm:$0xf] %vm158_vm2, %v175_v45 }

// kernel: transformer_apply.25
= control target key start
LH: loop header
LB: loop body
LE: loop exit
PB: predicated region body
PF: predicated region fallthrough
CT: control target
= control target key end

     0   :  { %vm19_vm0 = vcmask 785408   ;;  %v151_v0 = vmov 0.0   ;;  %vm152_vm1 = vmmov 0   ;;  %vm47_vm2 = vcmask 261120   ;;  %s195_s1 = inlined_call_operand.vmem [shape: bf16[32,96], index: 1, kind: input, shape index: {}]   ;;  %s196_s0 = inlined_call_operand.vmem [shape: bf16[16,32], index: 0, kind: input, shape index: {}]   ;;  %s197_s2 = inlined_call_operand.vmem [shape: f32[1,96], index: 2, kind: input, shape index: {}]   ;;  %s198_s3 = inlined_call_operand.vmem [shape: bf16[16,96], index: 3, kind: output, shape index: {}]  }
   0x1   :  { %138 = vmatprep.subr.bf16.mxu0 %v151_v0  ;;  %v148_v1 = vld [vmem:[%s195_s1] sm:$0xff]   ;;  %142 = vmatprep.mubr.msk.bf16.mxu0 %vm152_vm1, %v151_v0  ;;  %20 = vst.msk [vmem:[#allocation2] sm:$0xff] %vm19_vm0, %v151_v0  ;;  %21 = vst.msk [vmem:[#allocation2 + $0x8] sm:$0xff] %vm19_vm0, %v151_v0  ;;  %v149_v2 = vld [vmem:[%s195_s1 + $0x8] sm:$0xff]   ;;  %vm119_vm3 = vcmask 781312  }
   0x2   :  { %139 = vmatpush3.bf16.msra.mxu0 %v148_v1  ;;  %v150_v3 = vld [vmem:[%s196_s0] sm:$0xff]  }
   0x3   :  { %140 = vmatprep.subr.bf16.mxu0 %v151_v0  ;;  %v130_v12 = vld [vmem:[%s197_s2] ss:$0 sm:$0xff] }
   0x6   :  { %141 = vmatpush3.bf16.msra.mxu0 %v149_v2 }
   0x8   :  { %v22_v4 = vld [vmem:[#allocation2] sm:$0xff]  ;;  %v23_v6 = vld [vmem:[#allocation2 + $0x8] sm:$0xff] }
   0x9   :  { %143 = vmatmul.mubr.msk.bf16.vlgmr.msra.gmra.mrb[0].mxu0 %vm47_vm2, %v150_v3 }
  0xdc   :  { %v85_v5 = vpop.f32.mrb[0].mxu0 }
  0xdd   :  { %v92_v7 = vadd.f32 %v85_v5, %v22_v4  ;;  %v144_v8 = vpop.f32.mrb[1].mxu0 }
  0xde   :  { %v88_v9 = vpop.f32.mrb[2].mxu0 }
  0xdf   :  { %95 = vst.msk [vmem:[#allocation2] sm:$0xff] %vm19_vm0, %v92_v7  ;;  %v93_v10 = vadd.f32 %v88_v9, %v23_v6  ;;  %v145_v11 = vpop.f32.mrb[3].mxu0 }
  0xe1   :  { %96 = vst.msk [vmem:[#allocation2 + $0x8] sm:$0xff] %vm19_vm0, %v93_v10 }
  0xe6   :  { %v100_v13 = vld [vmem:[#allocation2] sm:$0xff] }
  0xe7   :  { %v109_v14 = vadd.f32 %v130_v12, %v100_v13 }
  0xe8   :  { %v101_v15 = vld [vmem:[#allocation2 + $0x8] sm:$0xff] }
  0xe9   :  { %v133_v16 = vpack.c.bf16 %v109_v14, %v109_v14  ;;  %v110_v17 = vadd.f32 %v130_v12, %v101_v15 }
  0xeb   :  { %120 = vst.msk [vmem:[%s198_s3] sm:$0xf] %vm119_vm3, %v133_v16  ;;  %v134_v18 = vpack.c.bf16 %v110_v17, %v110_v17 }
  0xed   :  { %121 = vst.msk [vmem:[%s198_s3 + $0x4] sm:$0xf] %vm119_vm3, %v134_v18 }

// kernel: transformer_apply.26
= control target key start
LH: loop header
LB: loop body
LE: loop exit
PB: predicated region body
PF: predicated region fallthrough
CT: control target
= control target key end

     0   :  { %s862_s9 = smov 0   ;;  %s963_s0 = inlined_call_operand.vmem [shape: f32[2,1,8], index: 0, kind: input, shape index: {}]   ;;  %s964_s1 = inlined_call_operand.vmem [shape: bf16[2,8,96], index: 1, kind: input, shape index: {}]   ;;  %s965_s2 = inlined_call_operand.vmem [shape: bf16[2,8,32], index: 2, kind: output, shape index: {}]  }
   0x1 LB: > { %s697_s10 = sadd.s32 4294967295, %s828_s9   ;;  %p701_p0 = scmp.ge.s32.totalorder %s828_s9, 1  ;;  %s828_s9 = sphi %s862_s9, %s12_s9  }
   0x2   : > { %p119_p1 = scmp.lt.s32.totalorder %s828_s9, 3 }
   0x4   : > { %p120_p2 = pnand %p701_p0, %p119_p1 }
   0x5   : > { %p142_p3 = scmp.lt.s32.totalorder (!%p120_p2), %s697_s10, 1  ;;  %v830_v0 = vmov (!%p120_p2), 0.0   ;;  %vm831_vm0 = vmmov (!%p120_p2), 0   ;;  %s832_s15 = smov (!%p120_p2), 96   ;;  %vm164_vm1 = vcmask (!%p120_p2), 64512   ;;  %v212_v6 = vlaneseq (!%p120_p2) }
   0x6   : > { %123 = sbr.rel (%p120_p2) target bundleno = 1600 (0x640), region = 28  ;;  %732 = vmatprep.subr.bf16.mxu0 (!%p120_p2), %v830_v0  ;;  %734 = vmatprep.mubr.msk.bf16.mxu0 (!%p120_p2), %vm831_vm0, %v830_v0  ;;  %s833_s16 = smov (!%p120_p2), 64   ;;  %v835_v10 = vmov (!%p120_p2), 0   ;;  %vm235_vm4 = vcmask (!%p120_p2), 1043456   ;;  %vm628_vm5 = vcmask (!%p120_p2), 130048   ;;  %vm630_vm6 = vcmask (!%p120_p2), 195584  }
   0x7   : > { %738 = vmatprep.subr.bf16.mxu1 (!%p120_p2), %v830_v0  ;;  %740 = vmatprep.mubr.msk.bf16.mxu1 (!%p120_p2), %vm831_vm0, %v830_v0  ;;  %s834_s17 = smov (!%p120_p2), 88   ;;  %v213_v8 = vshrl.u32 (!%p120_p2), %v212_v6, 7  ;;  %s836_s21 = smov (!%p120_p2), 72   ;;  %vm633_vm7 = vcmask (!%p120_p2), 257024  }
   0x8   : > { %s837_s22 = smov (!%p120_p2), 120   ;;  %s838_s23 = smov (!%p120_p2), 80  }
   0x9   : > { %v214_v9 = vsub.s32 (!%p120_p2), 0, %v213_v8  ;;  %s839_s24 = smov (!%p120_p2), 112   ;;  %s840_s25 = smov (!%p120_p2), 104  }
   0xa   : > { %s841_s26 = smov (!%p120_p2), 56   ;;  %s842_s27 = smov (!%p120_p2), 48  }
   0xb   : > { %s843_s28 = smov (!%p120_p2), 40   ;;  %s844_s29 = smov (!%p120_p2), 8  }
   0xc   : > { %s845_s30 = smov (!%p120_p2), 16   ;;  %s846_s3 = smov (!%p120_p2), 24  }
   0xd   : > { %s967_s10 = smov (!%p142_p3, %s697_s10), 1 }
   0xe   : > { %s702_s11 = sshll.u32 %s967_s10, 2  ;;  %s144_s20 = scalar_lea.vmem %s963_s0, %s967_s10 }
   0xf   : > { %s148_s14 = scalar_lea.vmem %s964_s1, %s702_s11  ;;  %v156_v7 = vld [vmem:[%s144_s20] sm:$0x1]  ;;  %s152_s6 = scalar_lea.vmem %s965_s2, %s702_s11 }
  0x10   : > { %v155_v1 = vld [vmem:[%s148_s14] sm:$0xf]  ;;  %vm157_vm2 = vcmp.ne.f32.partialorder %v156_v7, 0.0 }
  0x11   : > { %v884_v2 = vcombine.low %v155_v1, %v155_v1  ;;  %v158_v5 = vmul.bf16 1052065461, %v155_v1  ;;  %v211_v11 = vsel %vm157_vm2, 1, %v835_v10 }
  0x12   : > { %v898_v12 = vrot.slane %v211_v11, %v214_v9 }
  0x13   : > { %162 = vrot.lane.b32.xlu0 %v884_v2, %s832_s15  ;;  %230 = vrot.lane.b32.xlu1 %v884_v2, %s833_s16  ;;  %v707_v26 = vcombine.low %v158_v5, %v158_v5 }
  0x14   : > { %vm216_vm3 = vcmp.eq.s32.totalorder %v898_v12, 1 }
  0x17   : > { %284 = vrot.lane.b32.xlu1 %v884_v2, %s834_s17 }
  0x85   : > { %v163_v3 = vpop.permute.xlu0 %162  ;;  %v231_v19 = vpop.permute.xlu1 %230 }
  0x86   : > { %v169_v4 = vsel %vm164_vm1, %v163_v3, 0  ;;  %v237_v20 = vsel %vm235_vm4, %v231_v19, 0 }
  0x87   : > { %733 = vmatpush3.bf16.xpose.msra.mxu0 %v169_v4  ;;  %739 = vmatpush3.bf16.msra.mxu1 %v237_v20 }
  0x88   : > { %750 = vmatprep.subr.bf16.mxu0 %v830_v0  ;;  %744 = vmatprep.subr.bf16.mxu1 %v830_v0 }
  0x89   : > { %v285_v27 = vpop.permute.xlu1 %284 }
  0x8a   : > { %v290_v33 = vsel %vm164_vm1, %v285_v27, 0 }
  0x8e   : > { %735 = vmatmul.mubr.msk.bf16.vlgmr.msra.gmra.mrb[0].mxu0 %vm164_vm1, %v158_v5 }
  0x8f   : > { %752 = vmatprep.mubr.msk.bf16.mxu0 %vm831_vm0, %v830_v0 }
 0x161   : > { %v205_v13 = vpop.f32.mrb[0].mxu0 }
 0x162   : > { %v217_v14 = vsel %vm216_vm3, %v205_v13, -10000.0  ;;  %v736_v15 = vpop.f32.mrb[1].mxu0 }
 0x163   : > { %v208_v16 = vpop.f32.mrb[2].mxu0  ;;  %v218_v17 = vsel %vm164_vm1, %v217_v14, -inf }
 0x164   : > { %v737_v18 = vpop.f32.mrb[3].mxu0  ;;  %219 = vmax.xlane.f32.xlu0 %v218_v17 }
 0x17a   : > { %506 = vrot.lane.b32.xlu0 %v884_v2, %s836_s21 }
 0x1f1   : > { %v220_v21 = vpop.xlane.xlu0 %219 }
 0x1f2   : > { %v221_v22 = vsub.f32 %v217_v14, %v220_v21 }
 0x1f4   : > { %v222_v23 = vmul.f32 1.442695, %v221_v22 }
 0x1f5   : > { %v507_v36 = vpop.permute.xlu0 %506 }
 0x1f6   : > { %806 = vpow2.f32 %v222_v23  ;;  %v512_v38 = vsel %vm164_vm1, %v507_v36, 0 }
 0x200   : > { %v807_v24 = vpop.eup %806 }
 0x201   : > { %v224_v25 = vsel %vm164_vm1, %v807_v24, 0.0 }
 0x202   : > { %225 = vadd.xlane.f32.xlu1 %v224_v25 }
 0x213   : > { %282 = vrot.lane.b32.xlu1 %v707_v26, %s837_s22 }
 0x217   : > { %395 = vrot.lane.b32.xlu1 %v884_v2, %s838_s23 }
 0x21b   : > { %393 = vrot.lane.b32.xlu1 %v707_v26, %s839_s24 }
 0x21f   : > { %504 = vrot.lane.b32.xlu1 %v707_v26, %s840_s25 }
 0x28f   : > { %v226_v28 = vpop.xlane.xlu1 %225 }
 0x290   : > { %808 = vrcp.f32 %v226_v28 }
 0x293   : > { %v283_v31 = vpop.permute.xlu1 %282 }
 0x297   : > { %v396_v34 = vpop.permute.xlu1 %395 }
 0x298   : > { %v401_v35 = vsel %vm164_vm1, %v396_v34, 0 }
 0x29a   : > { %v809_v29 = vpop.eup %808 }
 0x29b   : > { %v228_v30 = vmul.f32 %v809_v29, %v807_v24  ;;  %v394_v37 = vpop.permute.xlu1 %393 }
 0x29d   : > { %v229_v32 = vpack.c.bf16 %v228_v30, %v228_v30 }
 0x29f   : > { %741 = vmatmul.mubr.msk.bf16.vlgmr.msra.gmra.mrb[0].mxu1 %vm164_vm1, %v229_v32  ;;  %v505_v39 = vpop.permute.xlu1 %504 }
 0x2a0   : > { %745 = vmatpush3.bf16.xpose.msra.mxu1 %v290_v33  ;;  %746 = vmatprep.mubr.msk.bf16.mxu1 %vm831_vm0, %v830_v0 }
 0x2a1   : > { %756 = vmatprep.subr.bf16.mxu1 %v830_v0 }
 0x2a7   : > { %747 = vmatmul.mubr.msk.bf16.vlgmr.msra.gmra.mrb[4].mxu1 %vm164_vm1, %v283_v31 }
 0x2a8   : > { %757 = vmatpush3.bf16.xpose.msra.mxu1 %v401_v35  ;;  %758 = vmatprep.mubr.msk.bf16.mxu1 %vm831_vm0, %v830_v0 }
 0x2a9   : > { %768 = vmatprep.subr.bf16.mxu1 %v830_v0 }
 0x2af   : > { %759 = vmatmul.mubr.msk.bf16.vlgmr.msra.gmra.mrb[8].mxu1 %vm164_vm1, %v394_v37 }
 0x2b0   : > { %769 = vmatpush3.bf16.xpose.msra.mxu1 %v512_v38  ;;  %770 = vmatprep.mubr.msk.bf16.mxu1 %vm831_vm0, %v830_v0 }
 0x2b7   : > { %771 = vmatmul.mubr.msk.bf16.vlgmr.msra.gmra.mrb[12].mxu1 %vm164_vm1, %v505_v39 }
 0x372   : > { %v924_v40 = vpop.f32.mrb[0].mxu1 }
 0x373   : > { %v742_v41 = vpop.f32.mrb[1].mxu1 }
 0x374   : > { %v276_v42 = vpop.f32.mrb[2].mxu1 }
 0x375   : > { %v743_v43 = vpop.f32.mrb[3].mxu1 }
 0x37a   : > { %v326_v44 = vpop.f32.mrb[4].mxu1 }
 0x37b   : > { %v332_v45 = vsel %vm216_vm3, %v326_v44, -10000.0  ;;  %v748_v46 = vpop.f32.mrb[5].mxu1 }
 0x37c   : > { %v329_v47 = vpop.f32.mrb[6].mxu1  ;;  %v333_v48 = vsel %vm164_vm1, %v332_v45, -inf }
 0x37d   : > { %334 = vmax.xlane.f32.xlu1 %v333_v48  ;;  %v749_v49 = vpop.f32.mrb[7].mxu1 }
 0x382   : > { %v437_v50 = vpop.f32.mrb[8].mxu1 }
 0x383   : > { %v443_v51 = vsel %vm216_vm3, %v437_v50, -10000.0  ;;  %v760_v52 = vpop.f32.mrb[9].mxu1 }
 0x384   : > { %v444_v53 = vsel %vm164_vm1, %v443_v51, -inf  ;;  %v440_v54 = vpop.f32.mrb[10].mxu1 }
 0x385   : > { %445 = vmax.xlane.f32.xlu0 %v444_v53  ;;  %v761_v55 = vpop.f32.mrb[11].mxu1 }
 0x38a   : > { %v548_v56 = vpop.f32.mrb[12].mxu1 }
 0x38b   : > { %v554_v57 = vsel %vm216_vm3, %v548_v56, -10000.0  ;;  %v772_v58 = vpop.f32.mrb[13].mxu1 }
 0x38c   : > { %v555_v59 = vsel %vm164_vm1, %v554_v57, -inf  ;;  %v551_v60 = vpop.f32.mrb[14].mxu1 }
 0x38d   : > { %556 = vmax.xlane.f32.xlu1 %v555_v59  ;;  %v773_v61 = vpop.f32.mrb[15].mxu1 }
 0x40a   : > { %v335_v62 = vpop.xlane.xlu1 %334 }
 0x40b   : > { %v336_v63 = vsub.f32 %v332_v45, %v335_v62 }
 0x40d   : > { %v337_v1 = vmul.f32 1.442695, %v336_v63 }
 0x40f   : > { %810 = vpow2.f32 %v337_v1 }
 0x412   : > { %v446_v10 = vpop.xlane.xlu0 %445 }
 0x413   : > { %v447_v11 = vsub.f32 %v443_v51, %v446_v10 }
 0x415   : > { %v448_v12 = vmul.f32 1.442695, %v447_v11 }
 0x419   : > { %v811_v3 = vpop.eup %810 }
 0x41a   : > { %v557_v4 = vpop.xlane.xlu1 %556  ;;  %v339_v5 = vsel %vm164_vm1, %v811_v3, 0.0 }
 0x41b   : > { %v558_v6 = vsub.f32 %v554_v57, %v557_v4  ;;  %340 = vadd.xlane.f32.xlu1 %v339_v5 }
 0x41d   : > { %v559_v7 = vmul.f32 1.442695, %v558_v6 }
 0x41f   : > { %812 = vpow2.f32 %v559_v7 }
 0x420   : > { %814 = vpow2.f32 %v448_v12 }
 0x429   : > { %v813_v8 = vpop.eup %812 }
 0x42a   : > { %v561_v9 = vsel %vm164_vm1, %v813_v8, 0.0  ;;  %v815_v13 = vpop.eup %814 }
 0x42b   : > { %562 = vadd.xlane.f32.xlu0 %v561_v9  ;;  %v450_v14 = vsel %vm164_vm1, %v815_v13, 0.0 }
 0x42c   : > { %345 = vrot.lane.b32.xlu1 %v884_v2, %s841_s26 }
 0x441   : > { %456 = vrot.lane.b32.xlu0 %v884_v2, %s842_s27 }
 0x450   : > { %451 = vadd.xlane.f32.xlu1 %v450_v14 }
 0x461   : > { %567 = vrot.lane.b32.xlu1 %v884_v2, %s843_s28 }
 0x4a8   : > { %v341_v15 = vpop.xlane.xlu1 %340 }
 0x4a9   : > { %816 = vrcp.f32 %v341_v15 }
 0x4ac   : > { %v346_v16 = vpop.permute.xlu1 %345 }
 0x4ad   : > { %v351_v17 = vsel %vm235_vm4, %v346_v16, 0 }
 0x4ae   : > { %751 = vmatpush3.bf16.msra.mxu0 %v351_v17 }
 0x4af   : > { %762 = vmatprep.subr.bf16.mxu0 %v830_v0 }
 0x4b3   : > { %v817_v18 = vpop.eup %816 }
 0x4b4   : > { %v343_v19 = vmul.f32 %v817_v18, %v811_v3 }
 0x4b6   : > { %v344_v20 = vpack.c.bf16 %v343_v19, %v343_v19 }
 0x4b8   : > { %753 = vmatmul.mubr.msk.bf16.vlgmr.msra.gmra.mrb[4].mxu0 %vm164_vm1, %v344_v20  ;;  %v563_v21 = vpop.xlane.xlu0 %562 }
 0x4b9   : > { %764 = vmatprep.mubr.msk.bf16.mxu0 %vm831_vm0, %v830_v0 }
 0x4bc   : > { %v457_v22 = vpop.permute.xlu0 %456 }
 0x4bd   : > { %v462_v2 = vsel %vm235_vm4, %v457_v22, 0 }
 0x4be   : > { %763 = vmatpush3.bf16.msra.mxu0 %v462_v2 }
 0x4bf   : > { %774 = vmatprep.subr.bf16.mxu0 %v830_v0 }
 0x4dd   : > { %v452_v23 = vpop.xlane.xlu1 %451 }
 0x4de   : > { %818 = vrcp.f32 %v452_v23 }
 0x4df   : > { %820 = vrcp.f32 %v563_v21 }
 0x4e1   : > { %v568_v25 = vpop.permute.xlu1 %567 }
 0x4e2   : > { %v573_v27 = vsel %vm235_vm4, %v568_v25, 0 }
 0x4e8   : > { %v819_v24 = vpop.eup %818 }
 0x4e9   : > { %v454_v26 = vmul.f32 %v819_v24, %v815_v13  ;;  %v821_v29 = vpop.eup %820 }
 0x4ea   : > { %v565_v30 = vmul.f32 %v821_v29, %v813_v8 }
 0x4eb   : > { %v455_v28 = vpack.c.bf16 %v454_v26, %v454_v26 }
 0x4ec   : > { %v566_v31 = vpack.c.bf16 %v565_v30, %v565_v30 }
 0x4ed   : > { %765 = vmatmul.mubr.msk.bf16.vlgmr.msra.gmra.mrb[8].mxu0 %vm164_vm1, %v455_v28 }
 0x4ee   : > { %775 = vmatpush3.bf16.msra.mxu0 %v573_v27  ;;  %776 = vmatprep.mubr.msk.bf16.mxu0 %vm831_vm0, %v830_v0 }
 0x4f5   : > { %777 = vmatmul.mubr.msk.bf16.vlgmr.msra.gmra.mrb[12].mxu0 %vm164_vm1, %v566_v31 }
 0x58b   : > { %v387_v32 = vpop.f32.mrb[4].mxu0 }
 0x58c   : > { %v754_v33 = vpop.f32.mrb[5].mxu0  ;;  %616 = vrot.lane.b32.xlu1 %v387_v32, %s844_s29 }
 0x58d   : > { %v390_v34 = vpop.f32.mrb[6].mxu0 }
 0x58e   : > { %v755_v35 = vpop.f32.mrb[7].mxu0 }
 0x5c0   : > { %v498_v36 = vpop.f32.mrb[8].mxu0 }
 0x5c1   : > { %620 = vrot.lane.b32.xlu0 %v498_v36, %s845_s30  ;;  %v766_v37 = vpop.f32.mrb[9].mxu0 }
 0x5c2   : > { %v501_v38 = vpop.f32.mrb[10].mxu0 }
 0x5c3   : > { %v767_v39 = vpop.f32.mrb[11].mxu0 }
 0x5c8   : > { %v609_v41 = vpop.f32.mrb[12].mxu0 }
 0x5c9   : > { %624 = vrot.lane.b32.xlu1 %v609_v41, %s846_s3  ;;  %v778_v0 = vpop.f32.mrb[13].mxu0 }
 0x5ca   : > { %v612_v42 = vpop.f32.mrb[14].mxu0 }
 0x5cb   : > { %v779_v43 = vpop.f32.mrb[15].mxu0 }
 0x5fe   : > { %v617_v44 = vpop.permute.xlu1 %616 }
 0x5ff   : > { %v627_v46 = vsel %vm164_vm1, %v924_v40, %v617_v44 }
 0x633   : > { %v621_v45 = vpop.permute.xlu0 %620 }
 0x634   : > { %v629_v47 = vsel %vm628_vm5, %v627_v46, %v621_v45 }
 0x63b   : > { %v625_v48 = vpop.permute.xlu1 %624 }
 0x63c   : > { %v631_v49 = vsel %vm630_vm6, %v629_v47, %v625_v48 }
 0x63d   : > { %v632_v50 = vpack.c.bf16 %v631_v49, %v631_v49 }
 0x63f   : > { %634 = vst.msk [vmem:[%s152_s6] sm:$0xf] %vm633_vm7, %v632_v50 }
 0x640 PF: > { %s12_s9 = sadd.s32 1, %s828_s9  }
 0x641   : > { %p9_p4 = scmp.ge.s32.totalorder %s12_s9, 4  }
 0x643   :  { %11 = sbr.rel (!%p9_p4) target bundleno = 1 (0x1), region = 61 }

// kernel: transformer_apply.28
= control target key start
LH: loop header
LB: loop body
LE: loop exit
PB: predicated region body
PF: predicated region fallthrough
CT: control target
= control target key end

     0   :  { %v312_v0 = vmov 0.0   ;;  %vm313_vm0 = vmmov 0   ;;  %vm57_vm1 = vcmask 261120   ;;  %vm144_vm2 = vcmask 523264   ;;  %s398_s1 = inlined_call_operand.vmem [shape: bf16[32,64], index: 1, kind: input, shape index: {}]   ;;  %s399_s0 = inlined_call_operand.vmem [shape: bf16[16,32], index: 0, kind: input, shape index: {}]   ;;  %s400_s3 = inlined_call_operand.vmem [shape: bf16[64,32], index: 3, kind: input, shape index: {}]   ;;  %s401_s2 = inlined_call_operand.vmem [shape: f32[1,64], index: 2, kind: input, shape index: {}]   ;;  %s402_s4 = inlined_call_operand.vmem [shape: f32[1,32], index: 4, kind: input, shape index: {}]   ;;  %s403_s5 = inlined_call_operand.vmem [shape: f32[1,32], index: 5, kind: input, shape index: {}]   ;;  %s404_s6 = inlined_call_operand.vmem [shape: f32[1,32], index: 6, kind: input, shape index: {}]   ;;  %s405_s7 = inlined_call_operand.vmem [shape: bf16[16,32], index: 7, kind: output, shape index: {}]  }
   0x1   :  { %278 = vmatprep.subr.bf16.mxu0 %v312_v0  ;;  %v300_v1 = vld [vmem:[%s398_s1] sm:$0xff]   ;;  %282 = vmatprep.mubr.msk.bf16.mxu0 %vm313_vm0, %v312_v0  ;;  %v301_v2 = vld [vmem:[%s398_s1 + $0x8] sm:$0xff]   ;;  %v305_v6 = vld [vmem:[%s400_s3 + $0x10] sm:$0xff]   ;;  %vm246_vm3 = vcmask 257024  }
   0x2   :  { %286 = vmatprep.subr.bf16.mxu1 %v312_v0  ;;  %294 = vmatprep.mubr.msk.bf16.mxu1 %vm313_vm0, %v312_v0  ;;  %v27_v3 = vld [vmem:[%s399_s0] sm:$0xff]   ;;  %v304_v5 = vld [vmem:[%s400_s3 + $0x8] sm:$0xff]   ;;  %v306_v7 = vld [vmem:[%s400_s3 + $0x18] sm:$0xff]  }
   0x3   :  { %279 = vmatpush3.bf16.msra.mxu0 %v300_v1  ;;  %v303_v4 = vld [vmem:[%s400_s3] sm:$0xff]   ;;  %v189_v19 = vunpack.c.l.bf16 %v27_v3  ;;  %v190_v23 = vunpack.c.h.bf16 %v27_v3 }
   0x4   :  { %280 = vmatprep.subr.bf16.mxu0 %v312_v0  ;;  %287 = vmatpush3.bf16.msra.mxu1 %v303_v4  ;;  %v253_v8 = vld [vmem:[%s401_s2] ss:$0 sm:$0xff] }
   0x5   :  { %288 = vmatprep.subr.bf16.mxu1 %v312_v0  ;;  %v258_v18 = vld [vmem:[%s402_s4] ss:$0 sm:$0xff] }
   0x6   :  { %v264_v48 = vld [vmem:[%s403_s5] ss:$0 sm:$0xff] }
   0x7   :  { %281 = vmatpush3.bf16.msra.mxu0 %v301_v2  ;;  %v265_v50 = vld [vmem:[%s404_s6] ss:$0 sm:$0xff] }
   0x8   :  { %289 = vmatpush3.bf16.msra.mxu1 %v304_v5 }
   0x9   :  { %290 = vmatprep.subr.bf16.mxu1 %v312_v0 }
   0xa   :  { %283 = vmatmul.mubr.msk.bf16.vlgmr.msra.gmra.mrb[0].mxu0 %vm57_vm1, %v27_v3 }
   0xc   :  { %291 = vmatpush3.bf16.msra.mxu1 %v305_v6 }
   0xd   :  { %292 = vmatprep.subr.bf16.mxu1 %v312_v0 }
  0x10   :  { %293 = vmatpush3.bf16.msra.mxu1 %v306_v7 }
  0xdd   :  { %v95_v9 = vpop.f32.mrb[0].mxu0 }
  0xde   :  { %v96_v10 = vadd.f32 %v253_v8, %v95_v9  ;;  %v284_v11 = vpop.f32.mrb[1].mxu0 }
  0xdf   :  { %v98_v12 = vpop.f32.mrb[2].mxu0 }
  0xe0   :  { %v99_v13 = vadd.f32 %v253_v8, %v98_v12  ;;  %v285_v14 = vpop.f32.mrb[3].mxu0  ;;  %v102_v15 = vmax.f32 %v96_v10, 0.0 }
  0xe2   :  { %v103_v16 = vmax.f32 %v99_v13, 0.0 }
  0xe4   :  { %v104_v17 = vpack.c.bf16 %v103_v16, %v102_v15 }
  0xe6   :  { %295 = vmatmul.mubr.msk.bf16.vlgmr.msra.gmra.mrb[0].mxu1 %vm144_vm2, %v104_v17 }
 0x1b9   :  { %v182_v20 = vpop.f32.mrb[0].mxu1 }
 0x1ba   :  { %v183_v21 = vadd.f32 %v258_v18, %v182_v20  ;;  %v296_v22 = vpop.f32.mrb[1].mxu1 }
 0x1bb   :  { %v185_v24 = vpop.f32.mrb[2].mxu1 }
 0x1bc   :  { %v186_v25 = vadd.f32 %v258_v18, %v185_v24  ;;  %v297_v26 = vpop.f32.mrb[3].mxu1  ;;  %v191_v27 = vadd.f32 %v189_v19, %v183_v21 }
 0x1be   :  { %v193_v28 = vsel %vm57_vm1, %v191_v27, 0.0  ;;  %v192_v29 = vadd.f32 %v190_v23, %v186_v25 }
 0x1bf   :  { %194 = vadd.xlane.f32.xlu0 %v193_v28 }
 0x1c0   :  { %v196_v30 = vsel %vm57_vm1, %v192_v29, 0.0 }
 0x1c3   :  { %197 = vadd.xlane.f32.xlu0 %v196_v30 }
 0x24c   :  { %v195_v31 = vpop.xlane.xlu0 %194 }
 0x24d   :  { %v200_v32 = vmul.f32 0.03125, %v195_v31 }
 0x24f   :  { %v202_v33 = vsub.f32 %v191_v27, %v200_v32 }
 0x250   :  { %v198_v34 = vpop.xlane.xlu0 %197 }
 0x251   :  { %v201_v35 = vmul.f32 0.03125, %v198_v34  ;;  %v204_v36 = vmul.f32 %v202_v33, %v202_v33 }
 0x253   :  { %v203_v37 = vsub.f32 %v192_v29, %v201_v35  ;;  %v206_v38 = vsel %vm57_vm1, %v204_v36, 0.0 }
 0x254   :  { %207 = vadd.xlane.f32.xlu1 %v206_v38 }
 0x255   :  { %v205_v39 = vmul.f32 %v203_v37, %v203_v37 }
 0x257   :  { %v209_v40 = vsel %vm57_vm1, %v205_v39, 0.0 }
 0x258   :  { %210 = vadd.xlane.f32.xlu1 %v209_v40 }
 0x2e1   :  { %v208_v41 = vpop.xlane.xlu1 %207 }
 0x2e2   :  { %v212_v42 = vmul.f32 0.03125, %v208_v41 }
 0x2e4   :  { %v214_v43 = vadd.f32 1e-12, %v212_v42 }
 0x2e5   :  { %v211_v44 = vpop.xlane.xlu1 %210 }
 0x2e6   :  { %308 = vrsqrt.f32 %v214_v43  ;;  %v213_v45 = vmul.f32 0.03125, %v211_v44 }
 0x2e8   :  { %v215_v46 = vadd.f32 1e-12, %v213_v45 }
 0x2ea   :  { %310 = vrsqrt.f32 %v215_v46 }
 0x2f0   :  { %v309_v47 = vpop.eup %308 }
 0x2f1   :  { %v218_v49 = vmul.f32 %v309_v47, %v202_v33 }
 0x2f3   :  { %v227_v51 = vmul.f32 %v264_v48, %v218_v49 }
 0x2f4   :  { %v311_v52 = vpop.eup %310 }
 0x2f5   :  { %v236_v53 = vadd.f32 %v265_v50, %v227_v51  ;;  %v219_v54 = vmul.f32 %v311_v52, %v203_v37 }
 0x2f7   :  { %v268_v55 = vpack.c.bf16 %v236_v53, %v236_v53  ;;  %v228_v56 = vmul.f32 %v264_v48, %v219_v54 }
 0x2f9   :  { %247 = vst.msk [vmem:[%s405_s7] sm:$0xf] %vm246_vm3, %v268_v55  ;;  %v237_v57 = vadd.f32 %v265_v50, %v228_v56 }
 0x2fb   :  { %v269_v58 = vpack.c.bf16 %v237_v57, %v237_v57 }
 0x2fd   :  { %248 = vst.msk [vmem:[%s405_s7 + $0x4] sm:$0xf] %vm246_vm3, %v269_v58 }

// kernel: transformer_apply.37
= control target key start
LH: loop header
LB: loop body
LE: loop exit
PB: predicated region body
PF: predicated region fallthrough
CT: control target
= control target key end

     0   :  { %vm19_vm0 = vcmask 523264   ;;  %v151_v0 = vmov 0.0   ;;  %vm152_vm1 = vmmov 0   ;;  %vm47_vm2 = vcmask 261120   ;;  %s195_s1 = inlined_call_operand.vmem [shape: bf16[32,64], index: 1, kind: input, shape index: {}]   ;;  %s196_s0 = inlined_call_operand.vmem [shape: bf16[16,32], index: 0, kind: input, shape index: {}]   ;;  %s197_s2 = inlined_call_operand.vmem [shape: f32[1,64], index: 2, kind: input, shape index: {}]   ;;  %s198_s3 = inlined_call_operand.vmem [shape: bf16[16,64], index: 3, kind: output, shape index: {}]  }
   0x1   :  { %138 = vmatprep.subr.bf16.mxu0 %v151_v0  ;;  %v148_v1 = vld [vmem:[%s195_s1] sm:$0xff]   ;;  %142 = vmatprep.mubr.msk.bf16.mxu0 %vm152_vm1, %v151_v0  ;;  %20 = vst.msk [vmem:[#allocation2] sm:$0xff] %vm19_vm0, %v151_v0  ;;  %21 = vst.msk [vmem:[#allocation2 + $0x8] sm:$0xff] %vm19_vm0, %v151_v0  ;;  %v149_v2 = vld [vmem:[%s195_s1 + $0x8] sm:$0xff]   ;;  %vm119_vm3 = vcmask 519168  }
   0x2   :  { %139 = vmatpush3.bf16.msra.mxu0 %v148_v1  ;;  %v150_v3 = vld [vmem:[%s196_s0] sm:$0xff]  }
   0x3   :  { %140 = vmatprep.subr.bf16.mxu0 %v151_v0  ;;  %v130_v12 = vld [vmem:[%s197_s2] ss:$0 sm:$0xff] }
   0x6   :  { %141 = vmatpush3.bf16.msra.mxu0 %v149_v2 }
   0x8   :  { %v22_v4 = vld [vmem:[#allocation2] sm:$0xff]  ;;  %v23_v6 = vld [vmem:[#allocation2 + $0x8] sm:$0xff] }
   0x9   :  { %143 = vmatmul.mubr.msk.bf16.vlgmr.msra.gmra.mrb[0].mxu0 %vm47_vm2, %v150_v3 }
  0xdc   :  { %v85_v5 = vpop.f32.mrb[0].mxu0 }
  0xdd   :  { %v92_v7 = vadd.f32 %v85_v5, %v22_v4  ;;  %v144_v8 = vpop.f32.mrb[1].mxu0 }
  0xde   :  { %v88_v9 = vpop.f32.mrb[2].mxu0 }
  0xdf   :  { %95 = vst.msk [vmem:[#allocation2] sm:$0xff] %vm19_vm0, %v92_v7  ;;  %v93_v10 = vadd.f32 %v88_v9, %v23_v6  ;;  %v145_v11 = vpop.f32.mrb[3].mxu0 }
  0xe1   :  { %96 = vst.msk [vmem:[#allocation2 + $0x8] sm:$0xff] %vm19_vm0, %v93_v10 }
  0xe6   :  { %v100_v13 = vld [vmem:[#allocation2] sm:$0xff] }
  0xe7   :  { %v109_v14 = vadd.f32 %v130_v12, %v100_v13 }
  0xe8   :  { %v101_v15 = vld [vmem:[#allocation2 + $0x8] sm:$0xff] }
  0xe9   :  { %v133_v16 = vpack.c.bf16 %v109_v14, %v109_v14  ;;  %v110_v17 = vadd.f32 %v130_v12, %v101_v15 }
  0xeb   :  { %120 = vst.msk [vmem:[%s198_s3] sm:$0xf] %vm119_vm3, %v133_v16  ;;  %v134_v18 = vpack.c.bf16 %v110_v17, %v110_v17 }
  0xed   :  { %121 = vst.msk [vmem:[%s198_s3 + $0x4] sm:$0xf] %vm119_vm3, %v134_v18 }

// kernel: transformer_apply.36
= control target key start
LH: loop header
LB: loop body
LE: loop exit
PB: predicated region body
PF: predicated region fallthrough
CT: control target
= control target key end

     0   :  { %vm19_vm0 = vcmask 261120   ;;  %v150_v0 = vmov 0.0   ;;  %vm151_vm1 = vmmov 0   ;;  %vm118_vm2 = vcmask 257024   ;;  %s195_s1 = inlined_call_operand.vmem [shape: bf16[32,32], index: 1, kind: input, shape index: {}]   ;;  %s196_s0 = inlined_call_operand.vmem [shape: bf16[16,32], index: 0, kind: input, shape index: {}]   ;;  %s197_s2 = inlined_call_operand.vmem [shape: f32[1,32], index: 2, kind: input, shape index: {}]   ;;  %s198_s3 = inlined_call_operand.vmem [shape: bf16[16,32], index: 3, kind: output, shape index: {}]  }
   0x1   :  { %137 = vmatprep.subr.bf16.mxu0 %v150_v0  ;;  %v147_v1 = vld [vmem:[%s195_s1] sm:$0xff]   ;;  %141 = vmatprep.mubr.msk.bf16.mxu0 %vm151_vm1, %v150_v0  ;;  %20 = vst.msk [vmem:[#allocation2] sm:$0xff] %vm19_vm0, %v150_v0  ;;  %21 = vst.msk [vmem:[#allocation2 + $0x8] sm:$0xff] %vm19_vm0, %v150_v0  ;;  %v148_v2 = vld [vmem:[%s195_s1 + $0x8] sm:$0xff]  }
   0x2   :  { %138 = vmatpush3.bf16.msra.mxu0 %v147_v1  ;;  %v149_v3 = vld [vmem:[%s196_s0] sm:$0xff]  }
   0x3   :  { %139 = vmatprep.subr.bf16.mxu0 %v150_v0  ;;  %v129_v12 = vld [vmem:[%s197_s2] ss:$0 sm:$0xff] }
   0x6   :  { %140 = vmatpush3.bf16.msra.mxu0 %v148_v2 }
   0x8   :  { %v22_v4 = vld [vmem:[#allocation2] sm:$0xff]  ;;  %v23_v6 = vld [vmem:[#allocation2 + $0x8] sm:$0xff] }
   0x9   :  { %142 = vmatmul.mubr.msk.bf16.vlgmr.msra.gmra.mrb[0].mxu0 %vm19_vm0, %v149_v3 }
  0xdc   :  { %v85_v5 = vpop.f32.mrb[0].mxu0 }
  0xdd   :  { %v92_v7 = vadd.f32 %v85_v5, %v22_v4  ;;  %v143_v8 = vpop.f32.mrb[1].mxu0 }
  0xde   :  { %v88_v9 = vpop.f32.mrb[2].mxu0 }
  0xdf   :  { %94 = vst.msk [vmem:[#allocation2] sm:$0xff] %vm19_vm0, %v92_v7  ;;  %v93_v10 = vadd.f32 %v88_v9, %v23_v6  ;;  %v144_v11 = vpop.f32.mrb[3].mxu0 }
  0xe1   :  { %95 = vst.msk [vmem:[#allocation2 + $0x8] sm:$0xff] %vm19_vm0, %v93_v10 }
  0xe6   :  { %v99_v13 = vld [vmem:[#allocation2] sm:$0xff] }
  0xe7   :  { %v108_v14 = vadd.f32 %v129_v12, %v99_v13 }
  0xe8   :  { %v100_v15 = vld [vmem:[#allocation2 + $0x8] sm:$0xff] }
  0xe9   :  { %v132_v16 = vpack.c.bf16 %v108_v14, %v108_v14  ;;  %v109_v17 = vadd.f32 %v129_v12, %v100_v15 }
  0xeb   :  { %119 = vst.msk [vmem:[%s198_s3] sm:$0xf] %vm118_vm2, %v132_v16  ;;  %v133_v18 = vpack.c.bf16 %v109_v17, %v109_v17 }
  0xed   :  { %120 = vst.msk [vmem:[%s198_s3 + $0x4] sm:$0xf] %vm118_vm2, %v133_v18 }

// kernel: transformer_apply.34
= control target key start
LH: loop header
LB: loop body
LE: loop exit
PB: predicated region body
PF: predicated region fallthrough
CT: control target
= control target key end

     0   :  { %s875_s9 = smov 0   ;;  %s977_s0 = inlined_call_operand.vmem [shape: f32[2,8,1], index: 0, kind: input, shape index: {}]   ;;  %s978_s1 = inlined_call_operand.vmem [shape: bf16[2,8,96], index: 1, kind: input, shape index: {}]   ;;  %s979_s2 = inlined_call_operand.vmem [shape: bf16[2,8,32], index: 2, kind: output, shape index: {}]  }
   0x1 LB: > { %s708_s10 = sadd.s32 4294967295, %s841_s9   ;;  %p712_p0 = scmp.ge.s32.totalorder %s841_s9, 1  ;;  %s841_s9 = sphi %s875_s9, %s12_s9  }
   0x2   : > { %p120_p1 = scmp.lt.s32.totalorder %s841_s9, 3 }
   0x4   : > { %p121_p2 = pnand %p712_p0, %p120_p1 }
   0x5   : > { %p144_p3 = scmp.lt.s32.totalorder (!%p121_p2), %s708_s10, 1  ;;  %v843_v0 = vmov (!%p121_p2), 0.0   ;;  %vm844_vm0 = vmmov (!%p121_p2), 0   ;;  %v845_v1 = vmov (!%p121_p2), 0   ;;  %s846_s19 = smov (!%p121_p2), 96   ;;  %vm178_vm2 = vcmask (!%p121_p2), 64512  }
   0x6   : > { %124 = sbr.rel (%p121_p2) target bundleno = 1592 (0x638), region = 28  ;;  %744 = vmatprep.subr.bf16.mxu0 (!%p121_p2), %v843_v0  ;;  %746 = vmatprep.mubr.msk.bf16.mxu0 (!%p121_p2), %vm844_vm0, %v843_v0  ;;  %v161_v9 = vlaneseq (!%p121_p2)  ;;  %s847_s20 = smov (!%p121_p2), 88   ;;  %vm243_vm6 = vcmask (!%p121_p2), 1043456   ;;  %vm636_vm7 = vcmask (!%p121_p2), 130048   ;;  %vm638_vm8 = vcmask (!%p121_p2), 195584  }
   0x7   : > { %750 = vmatprep.subr.bf16.mxu1 (!%p121_p2), %v843_v0  ;;  %752 = vmatprep.mubr.msk.bf16.mxu1 (!%p121_p2), %vm844_vm0, %v843_v0  ;;  %s848_s21 = smov (!%p121_p2), 120   ;;  %s849_s22 = smov (!%p121_p2), 80   ;;  %vm641_vm9 = vcmask (!%p121_p2), 257024  }
   0x8   : > { %817 = vset.pattern.permute.xlu0 (!%p121_p2), %v845_v1  ;;  %v162_v10 = vshrl.u32 (!%p121_p2), %v161_v9, 7  ;;  %v164_v11 = vand.u32 (!%p121_p2), 127, %v161_v9  ;;  %s850_s23 = smov (!%p121_p2), 112   ;;  %s851_s24 = smov (!%p121_p2), 104  }
   0x9   : > { %s852_s25 = smov (!%p121_p2), 64   ;;  %s853_s26 = smov (!%p121_p2), 72  }
   0xa   : > { %vm165_vm3 = vcmp.le.s32.totalorder (!%p121_p2), %v164_v11, %v162_v10  ;;  %s854_s27 = smov (!%p121_p2), 48   ;;  %s855_s28 = smov (!%p121_p2), 56  }
   0xb   : > { %s856_s29 = smov (!%p121_p2), 40   ;;  %s857_s30 = smov (!%p121_p2), 8  }
   0xc   : > { %s858_s3 = smov (!%p121_p2), 16   ;;  %s859_s4 = smov (!%p121_p2), 24  }
   0xd   : > { %s983_s10 = smov (!%p144_p3, %s708_s10), 1 }
   0xe   : > { %s714_s11 = sshll.u32 %s983_s10, 2  ;;  %s713_s12 = sshll.u32 %s983_s10, 3 }
   0xf   : > { %s151_s15 = scalar_lea.vmem %s978_s1, %s714_s11  ;;  %s147_s18 = scalar_lea.vmem %s977_s0, %s713_s12 }
  0x10   : > { %v158_v2 = vld [vmem:[%s151_s15] sm:$0xf]  ;;  %s155_s7 = scalar_lea.vmem %s979_s2, %s714_s11 }
  0x11   : > { %v159_v3 = vld [vmem:[%s147_s18] sm:$0xff]  ;;  %v901_v4 = vcombine.low %v158_v2, %v158_v2  ;;  %v172_v8 = vmul.bf16 1052065461, %v158_v2 }
  0x12   : > { %vm160_vm1 = vcmp.ne.f32.partialorder %v159_v3, 0.0 }
  0x13   : > { %176 = vrot.lane.b32.xlu0 %v901_v4, %s846_s19  ;;  %v166_v5 = vsel %vm160_vm1, 1, %v845_v1  ;;  %v719_v20 = vcombine.low %v172_v8, %v172_v8 }
  0x17   : > { %168 = vperm.xlu0 %817, %v166_v5  }
  0x1b   : > { %292 = vrot.lane.b32.xlu0 %v901_v4, %s847_s20 }
  0x1f   : > { %290 = vrot.lane.b32.xlu0 %v719_v20, %s848_s21 }
  0x23   : > { %403 = vrot.lane.b32.xlu0 %v901_v4, %s849_s22 }
  0x27   : > { %401 = vrot.lane.b32.xlu0 %v719_v20, %s850_s23 }
  0x2b   : > { %512 = vrot.lane.b32.xlu0 %v719_v20, %s851_s24 }
  0x85   : > { %v177_v6 = vpop.permute.xlu0 %176 }
  0x86   : > { %v183_v7 = vsel %vm178_vm2, %v177_v6, 0 }
  0x87   : > { %745 = vmatpush3.bf16.xpose.msra.mxu0 %v183_v7 }
  0x88   : > { %762 = vmatprep.subr.bf16.mxu0 %v843_v0 }
  0x8e   : > { %747 = vmatmul.mubr.msk.bf16.vlgmr.msra.gmra.mrb[0].mxu0 %vm178_vm2, %v172_v8 }
  0x8f   : > { %764 = vmatprep.mubr.msk.bf16.mxu0 %vm844_vm0, %v843_v0 }
  0x96   : > { %v169_v12 = vpop.permute.xlu0 %168 }
  0x97   : > { %vm170_vm4 = vcmp.eq.s32.totalorder %v169_v12, 1 }
  0x98   : > { %vm909_vm5 = vmand %vm170_vm4, %vm165_vm3 }
  0x9a   : > { %v293_v29 = vpop.permute.xlu0 %292 }
  0x9b   : > { %v298_v33 = vsel %vm178_vm2, %v293_v29, 0 }
  0x9e   : > { %v291_v32 = vpop.permute.xlu0 %290 }
  0xa2   : > { %v404_v35 = vpop.permute.xlu0 %403 }
  0xa3   : > { %v409_v36 = vsel %vm178_vm2, %v404_v35, 0 }
  0xa6   : > { %v402_v38 = vpop.permute.xlu0 %401 }
  0xaa   : > { %v513_v40 = vpop.permute.xlu0 %512 }
 0x161   : > { %v219_v14 = vpop.f32.mrb[0].mxu0 }
 0x162   : > { %v225_v15 = vsel %vm909_vm5, %v219_v14, -10000.0  ;;  %v748_v16 = vpop.f32.mrb[1].mxu0 }
 0x163   : > { %v222_v17 = vpop.f32.mrb[2].mxu0  ;;  %v226_v18 = vsel %vm178_vm2, %v225_v15, -inf }
 0x164   : > { %v749_v19 = vpop.f32.mrb[3].mxu0  ;;  %227 = vmax.xlane.f32.xlu1 %v226_v18 }
 0x1f1   : > { %v228_v21 = vpop.xlane.xlu1 %227 }
 0x1f2   : > { %v229_v22 = vsub.f32 %v225_v15, %v228_v21 }
 0x1f4   : > { %v230_v23 = vmul.f32 1.442695, %v229_v22 }
 0x1f6   : > { %819 = vpow2.f32 %v230_v23 }
 0x200   : > { %v820_v24 = vpop.eup %819 }
 0x201   : > { %v232_v25 = vsel %vm178_vm2, %v820_v24, 0.0 }
 0x202   : > { %233 = vadd.xlane.f32.xlu1 %v232_v25 }
 0x213   : > { %238 = vrot.lane.b32.xlu1 %v901_v4, %s852_s25 }
 0x217   : > { %514 = vrot.lane.b32.xlu1 %v901_v4, %s853_s26 }
 0x28f   : > { %v234_v26 = vpop.xlane.xlu1 %233 }
 0x290   : > { %821 = vrcp.f32 %v234_v26 }
 0x293   : > { %v239_v27 = vpop.permute.xlu1 %238 }
 0x294   : > { %v245_v28 = vsel %vm243_vm6, %v239_v27, 0 }
 0x295   : > { %751 = vmatpush3.bf16.msra.mxu1 %v245_v28 }
 0x296   : > { %756 = vmatprep.subr.bf16.mxu1 %v843_v0 }
 0x297   : > { %v515_v37 = vpop.permute.xlu1 %514 }
 0x298   : > { %v520_v39 = vsel %vm178_vm2, %v515_v37, 0 }
 0x29a   : > { %v822_v30 = vpop.eup %821 }
 0x29b   : > { %v236_v31 = vmul.f32 %v822_v30, %v820_v24 }
 0x29d   : > { %v237_v34 = vpack.c.bf16 %v236_v31, %v236_v31 }
 0x29f   : > { %753 = vmatmul.mubr.msk.bf16.vlgmr.msra.gmra.mrb[0].mxu1 %vm178_vm2, %v237_v34 }
 0x2a0   : > { %757 = vmatpush3.bf16.xpose.msra.mxu1 %v298_v33  ;;  %758 = vmatprep.mubr.msk.bf16.mxu1 %vm844_vm0, %v843_v0 }
 0x2a1   : > { %768 = vmatprep.subr.bf16.mxu1 %v843_v0 }
 0x2a7   : > { %759 = vmatmul.mubr.msk.bf16.vlgmr.msra.gmra.mrb[4].mxu1 %vm178_vm2, %v291_v32 }
 0x2a8   : > { %769 = vmatpush3.bf16.xpose.msra.mxu1 %v409_v36  ;;  %770 = vmatprep.mubr.msk.bf16.mxu1 %vm844_vm0, %v843_v0 }
 0x2a9   : > { %780 = vmatprep.subr.bf16.mxu1 %v843_v0 }
 0x2af   : > { %771 = vmatmul.mubr.msk.bf16.vlgmr.msra.gmra.mrb[8].mxu1 %vm178_vm2, %v402_v38 }
 0x2b0   : > { %781 = vmatpush3.bf16.xpose.msra.mxu1 %v520_v39  ;;  %782 = vmatprep.mubr.msk.bf16.mxu1 %vm844_vm0, %v843_v0 }
 0x2b7   : > { %783 = vmatmul.mubr.msk.bf16.vlgmr.msra.gmra.mrb[12].mxu1 %vm178_vm2, %v513_v40 }
 0x372   : > { %v938_v41 = vpop.f32.mrb[0].mxu1 }
 0x373   : > { %v754_v42 = vpop.f32.mrb[1].mxu1 }
 0x374   : > { %v284_v43 = vpop.f32.mrb[2].mxu1 }
 0x375   : > { %v755_v44 = vpop.f32.mrb[3].mxu1 }
 0x37a   : > { %v334_v45 = vpop.f32.mrb[4].mxu1 }
 0x37b   : > { %v340_v46 = vsel %vm909_vm5, %v334_v45, -10000.0  ;;  %v760_v47 = vpop.f32.mrb[5].mxu1 }
 0x37c   : > { %v337_v48 = vpop.f32.mrb[6].mxu1  ;;  %v341_v49 = vsel %vm178_vm2, %v340_v46, -inf }
 0x37d   : > { %342 = vmax.xlane.f32.xlu1 %v341_v49  ;;  %v761_v50 = vpop.f32.mrb[7].mxu1 }
 0x382   : > { %v445_v51 = vpop.f32.mrb[8].mxu1 }
 0x383   : > { %v451_v52 = vsel %vm909_vm5, %v445_v51, -10000.0  ;;  %v772_v53 = vpop.f32.mrb[9].mxu1 }
 0x384   : > { %v452_v54 = vsel %vm178_vm2, %v451_v52, -inf  ;;  %v448_v55 = vpop.f32.mrb[10].mxu1 }
 0x385   : > { %453 = vmax.xlane.f32.xlu0 %v452_v54  ;;  %v773_v56 = vpop.f32.mrb[11].mxu1 }
 0x38a   : > { %v556_v57 = vpop.f32.mrb[12].mxu1 }
 0x38b   : > { %v562_v58 = vsel %vm909_vm5, %v556_v57, -10000.0  ;;  %v784_v59 = vpop.f32.mrb[13].mxu1 }
 0x38c   : > { %v563_v60 = vsel %vm178_vm2, %v562_v58, -inf  ;;  %v559_v61 = vpop.f32.mrb[14].mxu1 }
 0x38d   : > { %564 = vmax.xlane.f32.xlu0 %v563_v60  ;;  %v785_v62 = vpop.f32.mrb[15].mxu1 }
 0x40a   : > { %v343_v63 = vpop.xlane.xlu1 %342 }
 0x40b   : > { %v344_v1 = vsub.f32 %v340_v46, %v343_v63 }
 0x40d   : > { %v345_v2 = vmul.f32 1.442695, %v344_v1 }
 0x40f   : > { %823 = vpow2.f32 %v345_v2 }
 0x412   : > { %v454_v3 = vpop.xlane.xlu0 %453 }
 0x413   : > { %v455_v5 = vsub.f32 %v451_v52, %v454_v3 }
 0x415   : > { %v456_v6 = vmul.f32 1.442695, %v455_v5 }
 0x417   : > { %825 = vpow2.f32 %v456_v6 }
 0x419   : > { %v824_v7 = vpop.eup %823 }
 0x41a   : > { %v347_v8 = vsel %vm178_vm2, %v824_v7, 0.0  ;;  %v565_v11 = vpop.xlane.xlu0 %564 }
 0x41b   : > { %348 = vadd.xlane.f32.xlu1 %v347_v8  ;;  %v566_v12 = vsub.f32 %v562_v58, %v565_v11 }
 0x41d   : > { %v567_v13 = vmul.f32 1.442695, %v566_v12 }
 0x41f   : > { %827 = vpow2.f32 %v567_v13 }
 0x421   : > { %v826_v9 = vpop.eup %825 }
 0x422   : > { %v458_v10 = vsel %vm178_vm2, %v826_v9, 0.0 }
 0x423   : > { %459 = vadd.xlane.f32.xlu0 %v458_v10 }
 0x429   : > { %v828_v14 = vpop.eup %827 }
 0x42a   : > { %v569_v15 = vsel %vm178_vm2, %v828_v14, 0.0 }
 0x42c   : > { %464 = vrot.lane.b32.xlu1 %v901_v4, %s854_s27 }
 0x439   : > { %353 = vrot.lane.b32.xlu0 %v901_v4, %s855_s28 }
 0x450   : > { %570 = vadd.xlane.f32.xlu1 %v569_v15 }
 0x461   : > { %575 = vrot.lane.b32.xlu1 %v901_v4, %s856_s29 }
 0x4a8   : > { %v349_v16 = vpop.xlane.xlu1 %348 }
 0x4a9   : > { %829 = vrcp.f32 %v349_v16 }
 0x4ac   : > { %v465_v22 = vpop.permute.xlu1 %464 }
 0x4ad   : > { %v470_v24 = vsel %vm243_vm6, %v465_v22, 0 }
 0x4b0   : > { %v460_v17 = vpop.xlane.xlu0 %459 }
 0x4b1   : > { %831 = vrcp.f32 %v460_v17 }
 0x4b3   : > { %v830_v18 = vpop.eup %829 }
 0x4b4   : > { %v351_v19 = vmul.f32 %v830_v18, %v824_v7  ;;  %v354_v20 = vpop.permute.xlu0 %353 }
 0x4b5   : > { %v359_v21 = vsel %vm243_vm6, %v354_v20, 0 }
 0x4b6   : > { %763 = vmatpush3.bf16.msra.mxu0 %v359_v21  ;;  %v352_v23 = vpack.c.bf16 %v351_v19, %v351_v19 }
 0x4b7   : > { %774 = vmatprep.subr.bf16.mxu0 %v843_v0 }
 0x4b9   : > { %765 = vmatmul.mubr.msk.bf16.vlgmr.msra.gmra.mrb[4].mxu0 %vm178_vm2, %v352_v23 }
 0x4ba   : > { %775 = vmatpush3.bf16.msra.mxu0 %v470_v24  ;;  %776 = vmatprep.mubr.msk.bf16.mxu0 %vm844_vm0, %v843_v0 }
 0x4bb   : > { %v832_v4 = vpop.eup %831  ;;  %786 = vmatprep.subr.bf16.mxu0 %v843_v0 }
 0x4bc   : > { %v462_v25 = vmul.f32 %v832_v4, %v826_v9 }
 0x4be   : > { %v463_v26 = vpack.c.bf16 %v462_v25, %v462_v25 }
 0x4c1   : > { %777 = vmatmul.mubr.msk.bf16.vlgmr.msra.gmra.mrb[8].mxu0 %vm178_vm2, %v463_v26 }
 0x4c2   : > { %788 = vmatprep.mubr.msk.bf16.mxu0 %vm844_vm0, %v843_v0 }
 0x4dd   : > { %v571_v27 = vpop.xlane.xlu1 %570 }
 0x4de   : > { %833 = vrcp.f32 %v571_v27 }
 0x4e1   : > { %v576_v28 = vpop.permute.xlu1 %575 }
 0x4e2   : > { %v581_v29 = vsel %vm243_vm6, %v576_v28, 0 }
 0x4e3   : > { %787 = vmatpush3.bf16.msra.mxu0 %v581_v29 }
 0x4e8   : > { %v834_v30 = vpop.eup %833 }
 0x4e9   : > { %v573_v31 = vmul.f32 %v834_v30, %v828_v14 }
 0x4eb   : > { %v574_v32 = vpack.c.bf16 %v573_v31, %v573_v31 }
 0x4ed   : > { %789 = vmatmul.mubr.msk.bf16.vlgmr.msra.gmra.mrb[12].mxu0 %vm178_vm2, %v574_v32 }
 0x58c   : > { %v395_v33 = vpop.f32.mrb[4].mxu0 }
 0x58d   : > { %624 = vrot.lane.b32.xlu0 %v395_v33, %s857_s30  ;;  %v766_v34 = vpop.f32.mrb[5].mxu0 }
 0x58e   : > { %v398_v35 = vpop.f32.mrb[6].mxu0 }
 0x58f   : > { %v767_v36 = vpop.f32.mrb[7].mxu0 }
 0x594   : > { %v506_v37 = vpop.f32.mrb[8].mxu0 }
 0x595   : > { %628 = vrot.lane.b32.xlu1 %v506_v37, %s858_s3  ;;  %v778_v0 = vpop.f32.mrb[9].mxu0 }
 0x596   : > { %v509_v38 = vpop.f32.mrb[10].mxu0 }
 0x597   : > { %v779_v39 = vpop.f32.mrb[11].mxu0 }
 0x5c0   : > { %v617_v40 = vpop.f32.mrb[12].mxu0 }
 0x5c1   : > { %632 = vrot.lane.b32.xlu0 %v617_v40, %s859_s4  ;;  %v790_v42 = vpop.f32.mrb[13].mxu0 }
 0x5c2   : > { %v620_v43 = vpop.f32.mrb[14].mxu0 }
 0x5c3   : > { %v791_v44 = vpop.f32.mrb[15].mxu0 }
 0x5ff   : > { %v625_v45 = vpop.permute.xlu0 %624 }
 0x600   : > { %v635_v47 = vsel %vm178_vm2, %v938_v41, %v625_v45 }
 0x607   : > { %v629_v46 = vpop.permute.xlu1 %628 }
 0x608   : > { %v637_v48 = vsel %vm636_vm7, %v635_v47, %v629_v46 }
 0x633   : > { %v633_v49 = vpop.permute.xlu0 %632 }
 0x634   : > { %v639_v50 = vsel %vm638_vm8, %v637_v48, %v633_v49 }
 0x635   : > { %v640_v51 = vpack.c.bf16 %v639_v50, %v639_v50 }
 0x637   : > { %642 = vst.msk [vmem:[%s155_s7] sm:$0xf] %vm641_vm9, %v640_v51 }
 0x638 PF: > { %s12_s9 = sadd.s32 1, %s841_s9  }
 0x639   : > { %p9_p4 = scmp.ge.s32.totalorder %s12_s9, 4  }
 0x63b   :  { %11 = sbr.rel (!%p9_p4) target bundleno = 1 (0x1), region = 61 }

// kernel: transformer_apply.38
= control target key start
LH: loop header
LB: loop body
LE: loop exit
PB: predicated region body
PF: predicated region fallthrough
CT: control target
= control target key end

     0   :  { %s915_s12 = smov 0   ;;  %s1015_s0 = inlined_call_operand.vmem [shape: f32[2,1,8], index: 0, kind: input, shape index: {}]   ;;  %s1016_s1 = inlined_call_operand.vmem [shape: bf16[2,8,32], index: 1, kind: input, shape index: {}]   ;;  %s1017_s2 = inlined_call_operand.vmem [shape: bf16[2,8,64], index: 2, kind: input, shape index: {}]   ;;  %s1018_s3 = inlined_call_operand.vmem [shape: bf16[2,8,32], index: 3, kind: output, shape index: {}]  }
   0x1 LB: > { %s752_s13 = sadd.s32 4294967295, %s880_s12   ;;  %p756_p0 = scmp.ge.s32.totalorder %s880_s12, 1  ;;  %s880_s12 = sphi %s915_s12, %s13_s12  }
   0x2   : > { %p153_p1 = scmp.lt.s32.totalorder %s880_s12, 3 }
   0x4   : > { %p154_p2 = pnand %p756_p0, %p153_p1 }
   0x5   : > { %p182_p3 = scmp.lt.s32.totalorder (!%p154_p2), %s752_s13, 1  ;;  %v882_v0 = vmov (!%p154_p2), 0.0   ;;  %vm883_vm0 = vmmov (!%p154_p2), 0   ;;  %vm204_vm1 = vcmask (!%p154_p2), 64512   ;;  %v252_v5 = vlaneseq (!%p154_p2)  ;;  %s885_s24 = smov (!%p154_p2), 96  }
   0x6   : > { %157 = sbr.rel (%p154_p2) target bundleno = 1439 (0x59f), region = 32  ;;  %788 = vmatprep.subr.bf16.mxu0 (!%p154_p2), %v882_v0  ;;  %790 = vmatprep.mubr.msk.bf16.mxu0 (!%p154_p2), %vm883_vm0, %v882_v0  ;;  %v884_v9 = vmov (!%p154_p2), 0   ;;  %s886_s25 = smov (!%p154_p2), 120   ;;  %vm278_vm4 = vcmask (!%p154_p2), 1043456   ;;  %vm671_vm5 = vcmask (!%p154_p2), 130048   ;;  %vm673_vm6 = vcmask (!%p154_p2), 195584  }
   0x7   : > { %794 = vmatprep.subr.bf16.mxu1 (!%p154_p2), %v882_v0  ;;  %796 = vmatprep.mubr.msk.bf16.mxu1 (!%p154_p2), %vm883_vm0, %v882_v0  ;;  %v253_v7 = vshrl.u32 (!%p154_p2), %v252_v5, 7  ;;  %s887_s26 = smov (!%p154_p2), 112   ;;  %s888_s27 = smov (!%p154_p2), 104   ;;  %vm676_vm7 = vcmask (!%p154_p2), 257024  }
   0x8   : > { %s889_s28 = smov (!%p154_p2), 88   ;;  %s890_s29 = smov (!%p154_p2), 72  }
   0x9   : > { %v254_v8 = vsub.s32 (!%p154_p2), 0, %v253_v7  ;;  %s891_s30 = smov (!%p154_p2), 80   ;;  %s892_s4 = smov (!%p154_p2), 8  }
   0xa   : > { %s893_s5 = smov (!%p154_p2), 16   ;;  %s894_s6 = smov (!%p154_p2), 24  }
   0xd   : > { %s1020_s13 = smov (!%p182_p3, %s752_s13), 1 }
   0xe   : > { %s929_s14 = sshll.u32 %s1020_s13, 2  ;;  %s184_s23 = scalar_lea.vmem %s1015_s0, %s1020_s13 }
   0xf   : > { %s188_s17 = scalar_lea.vmem %s1016_s1, %s929_s14  ;;  %s192_s20 = scalar_lea.vmem %s1017_s2, %s929_s14  ;;  %v201_v6 = vld [vmem:[%s184_s23] sm:$0x1] }
  0x10   : > { %v200_v1 = vld [vmem:[%s192_s20] sm:$0xf]  ;;  %vm202_vm2 = vcmp.ne.f32.partialorder %v201_v6, 0.0  ;;  %s196_s9 = scalar_lea.vmem %s1018_s3, %s929_s14 }
  0x11   : > { %v209_v2 = vsel %vm204_vm1, %v200_v1, 0  ;;  %v199_v3 = vld [vmem:[%s188_s17] sm:$0xf]  ;;  %v251_v10 = vsel %vm202_vm2, 1, %v884_v9  ;;  %v953_v18 = vcombine.low %v200_v1, %v200_v1 }
  0x12   : > { %789 = vmatpush3.bf16.xpose.msra.mxu0 %v209_v2  ;;  %v203_v4 = vmul.bf16 1052065461, %v199_v3  ;;  %v947_v11 = vrot.slane %v251_v10, %v254_v8 }
  0x13   : > { %806 = vmatprep.subr.bf16.mxu0 %v882_v0  ;;  %273 = vrot.lane.b32.xlu1 %v953_v18, %s885_s24 }
  0x14   : > { %vm256_vm3 = vcmp.eq.s32.totalorder %v947_v11, 1  ;;  %v763_v19 = vcombine.low %v203_v4, %v203_v4 }
  0x17   : > { %327 = vrot.lane.b32.xlu1 %v953_v18, %s886_s25 }
  0x19   : > { %791 = vmatmul.mubr.msk.bf16.vlgmr.msra.gmra.mrb[0].mxu0 %vm204_vm1, %v203_v4 }
  0x1a   : > { %808 = vmatprep.mubr.msk.bf16.mxu0 %vm883_vm0, %v882_v0 }
  0x1b   : > { %438 = vrot.lane.b32.xlu1 %v953_v18, %s887_s26 }
  0x1f   : > { %436 = vrot.lane.b32.xlu1 %v763_v19, %s887_s26 }
  0x23   : > { %549 = vrot.lane.b32.xlu1 %v953_v18, %s888_s27 }
  0x27   : > { %547 = vrot.lane.b32.xlu1 %v763_v19, %s888_s27 }
  0x85   : > { %v274_v25 = vpop.permute.xlu1 %273 }
  0x86   : > { %v280_v26 = vsel %vm278_vm4, %v274_v25, 0 }
  0x87   : > { %795 = vmatpush3.bf16.msra.mxu1 %v280_v26 }
  0x88   : > { %800 = vmatprep.subr.bf16.mxu1 %v882_v0 }
  0x89   : > { %v328_v29 = vpop.permute.xlu1 %327 }
  0x8a   : > { %v333_v31 = vsel %vm204_vm1, %v328_v29, 0 }
  0x8d   : > { %v439_v33 = vpop.permute.xlu1 %438 }
  0x8e   : > { %v444_v36 = vsel %vm204_vm1, %v439_v33, 0 }
  0x91   : > { %v437_v35 = vpop.permute.xlu1 %436 }
  0x95   : > { %v550_v37 = vpop.permute.xlu1 %549 }
  0x96   : > { %v555_v38 = vsel %vm204_vm1, %v550_v37, 0 }
  0x99   : > { %v548_v39 = vpop.permute.xlu1 %547 }
  0xec   : > { %v245_v12 = vpop.f32.mrb[0].mxu0 }
  0xed   : > { %v257_v13 = vsel %vm256_vm3, %v245_v12, -10000.0  ;;  %v792_v14 = vpop.f32.mrb[1].mxu0 }
  0xee   : > { %v248_v15 = vpop.f32.mrb[2].mxu0  ;;  %v258_v16 = vsel %vm204_vm1, %v257_v13, -inf }
  0xef   : > { %v793_v17 = vpop.f32.mrb[3].mxu0  ;;  %259 = vmax.xlane.f32.xlu0 %v258_v16 }
 0x17c   : > { %v260_v20 = vpop.xlane.xlu0 %259 }
 0x17d   : > { %v261_v21 = vsub.f32 %v257_v13, %v260_v20 }
 0x17f   : > { %v262_v22 = vmul.f32 1.442695, %v261_v21 }
 0x181   : > { %858 = vpow2.f32 %v262_v22 }
 0x18b   : > { %v859_v23 = vpop.eup %858 }
 0x18c   : > { %v264_v24 = vsel %vm204_vm1, %v859_v23, 0.0 }
 0x18d   : > { %265 = vadd.xlane.f32.xlu0 %v264_v24 }
 0x1a3   : > { %325 = vrot.lane.b32.xlu0 %v763_v19, %s886_s25 }
 0x21a   : > { %v266_v27 = vpop.xlane.xlu0 %265 }
 0x21b   : > { %860 = vrcp.f32 %v266_v27 }
 0x21e   : > { %v326_v34 = vpop.permute.xlu0 %325 }
 0x225   : > { %v861_v28 = vpop.eup %860 }
 0x226   : > { %v268_v30 = vmul.f32 %v861_v28, %v859_v23 }
 0x228   : > { %v269_v32 = vpack.c.bf16 %v268_v30, %v268_v30 }
 0x22a   : > { %797 = vmatmul.mubr.msk.bf16.vlgmr.msra.gmra.mrb[0].mxu1 %vm204_vm1, %v269_v32 }
 0x22b   : > { %801 = vmatpush3.bf16.xpose.msra.mxu1 %v333_v31  ;;  %802 = vmatprep.mubr.msk.bf16.mxu1 %vm883_vm0, %v882_v0 }
 0x22c   : > { %812 = vmatprep.subr.bf16.mxu1 %v882_v0 }
 0x232   : > { %803 = vmatmul.mubr.msk.bf16.vlgmr.msra.gmra.mrb[4].mxu1 %vm204_vm1, %v326_v34 }
 0x233   : > { %813 = vmatpush3.bf16.xpose.msra.mxu1 %v444_v36  ;;  %814 = vmatprep.mubr.msk.bf16.mxu1 %vm883_vm0, %v882_v0 }
 0x234   : > { %824 = vmatprep.subr.bf16.mxu1 %v882_v0 }
 0x23a   : > { %815 = vmatmul.mubr.msk.bf16.vlgmr.msra.gmra.mrb[8].mxu1 %vm204_vm1, %v437_v35 }
 0x23b   : > { %825 = vmatpush3.bf16.xpose.msra.mxu1 %v555_v38  ;;  %826 = vmatprep.mubr.msk.bf16.mxu1 %vm883_vm0, %v882_v0 }
 0x242   : > { %827 = vmatmul.mubr.msk.bf16.vlgmr.msra.gmra.mrb[12].mxu1 %vm204_vm1, %v548_v39 }
 0x2fd   : > { %v977_v40 = vpop.f32.mrb[0].mxu1 }
 0x2fe   : > { %v798_v41 = vpop.f32.mrb[1].mxu1 }
 0x2ff   : > { %v319_v42 = vpop.f32.mrb[2].mxu1 }
 0x300   : > { %v799_v43 = vpop.f32.mrb[3].mxu1 }
 0x305   : > { %v369_v44 = vpop.f32.mrb[4].mxu1 }
 0x306   : > { %v375_v45 = vsel %vm256_vm3, %v369_v44, -10000.0  ;;  %v804_v46 = vpop.f32.mrb[5].mxu1 }
 0x307   : > { %v372_v47 = vpop.f32.mrb[6].mxu1  ;;  %v376_v48 = vsel %vm204_vm1, %v375_v45, -inf }
 0x308   : > { %377 = vmax.xlane.f32.xlu1 %v376_v48  ;;  %v805_v49 = vpop.f32.mrb[7].mxu1 }
 0x30d   : > { %v480_v50 = vpop.f32.mrb[8].mxu1 }
 0x30e   : > { %v486_v51 = vsel %vm256_vm3, %v480_v50, -10000.0  ;;  %v816_v52 = vpop.f32.mrb[9].mxu1 }
 0x30f   : > { %v483_v53 = vpop.f32.mrb[10].mxu1  ;;  %v487_v54 = vsel %vm204_vm1, %v486_v51, -inf }
 0x310   : > { %488 = vmax.xlane.f32.xlu0 %v487_v54  ;;  %v817_v55 = vpop.f32.mrb[11].mxu1 }
 0x315   : > { %v591_v56 = vpop.f32.mrb[12].mxu1 }
 0x316   : > { %v597_v57 = vsel %vm256_vm3, %v591_v56, -10000.0  ;;  %v828_v58 = vpop.f32.mrb[13].mxu1 }
 0x317   : > { %v594_v59 = vpop.f32.mrb[14].mxu1  ;;  %v598_v60 = vsel %vm204_vm1, %v597_v57, -inf }
 0x318   : > { %599 = vmax.xlane.f32.xlu1 %v598_v60  ;;  %v829_v61 = vpop.f32.mrb[15].mxu1 }
 0x329   : > { %388 = vrot.lane.b32.xlu1 %v953_v18, %s889_s28 }
 0x395   : > { %v378_v62 = vpop.xlane.xlu1 %377 }
 0x396   : > { %v379_v63 = vsub.f32 %v375_v45, %v378_v62 }
 0x398   : > { %v380_v1 = vmul.f32 1.442695, %v379_v63 }
 0x39a   : > { %862 = vpow2.f32 %v380_v1 }
 0x39d   : > { %v489_v2 = vpop.xlane.xlu0 %488 }
 0x39e   : > { %v490_v3 = vsub.f32 %v486_v51, %v489_v2 }
 0x3a0   : > { %v491_v4 = vmul.f32 1.442695, %v490_v3 }
 0x3a2   : > { %864 = vpow2.f32 %v491_v4 }
 0x3a4   : > { %v863_v5 = vpop.eup %862 }
 0x3a5   : > { %v600_v6 = vpop.xlane.xlu1 %599  ;;  %v382_v7 = vsel %vm204_vm1, %v863_v5, 0.0 }
 0x3a6   : > { %v601_v8 = vsub.f32 %v597_v57, %v600_v6  ;;  %383 = vadd.xlane.f32.xlu0 %v382_v7 }
 0x3a8   : > { %v602_v9 = vmul.f32 1.442695, %v601_v8 }
 0x3a9   : > { %v389_v10 = vpop.permute.xlu1 %388 }
 0x3aa   : > { %866 = vpow2.f32 %v602_v9  ;;  %v394_v11 = vsel %vm278_vm4, %v389_v10, 0 }
 0x3ab   : > { %807 = vmatpush3.bf16.msra.mxu0 %v394_v11 }
 0x3ac   : > { %v865_v12 = vpop.eup %864  ;;  %818 = vmatprep.subr.bf16.mxu0 %v882_v0 }
 0x3ad   : > { %v493_v13 = vsel %vm204_vm1, %v865_v12, 0.0 }
 0x3ae   : > { %494 = vadd.xlane.f32.xlu1 %v493_v13 }
 0x3b4   : > { %v867_v14 = vpop.eup %866 }
 0x3b5   : > { %v604_v15 = vsel %vm204_vm1, %v867_v14, 0.0 }
 0x3b6   : > { %605 = vadd.xlane.f32.xlu0 %v604_v15 }
 0x3bf   : > { %610 = vrot.lane.b32.xlu1 %v953_v18, %s890_s29 }
 0x3cc   : > { %499 = vrot.lane.b32.xlu0 %v953_v18, %s891_s30 }
 0x433   : > { %v384_v16 = vpop.xlane.xlu0 %383 }
 0x434   : > { %868 = vrcp.f32 %v384_v16 }
 0x43b   : > { %v495_v17 = vpop.xlane.xlu1 %494 }
 0x43c   : > { %870 = vrcp.f32 %v495_v17 }
 0x43e   : > { %v869_v19 = vpop.eup %868 }
 0x43f   : > { %v386_v20 = vmul.f32 %v869_v19, %v863_v5  ;;  %v611_v26 = vpop.permute.xlu1 %610 }
 0x440   : > { %v616_v28 = vsel %vm278_vm4, %v611_v26, 0 }
 0x441   : > { %v387_v21 = vpack.c.bf16 %v386_v20, %v386_v20 }
 0x443   : > { %v606_v22 = vpop.xlane.xlu0 %605  ;;  %809 = vmatmul.mubr.msk.bf16.vlgmr.msra.gmra.mrb[4].mxu0 %vm204_vm1, %v387_v21 }
 0x444   : > { %872 = vrcp.f32 %v606_v22  ;;  %820 = vmatprep.mubr.msk.bf16.mxu0 %vm883_vm0, %v882_v0 }
 0x446   : > { %v871_v23 = vpop.eup %870 }
 0x447   : > { %v497_v24 = vmul.f32 %v871_v23, %v865_v12  ;;  %v500_v25 = vpop.permute.xlu0 %499 }
 0x448   : > { %v505_v18 = vsel %vm278_vm4, %v500_v25, 0 }
 0x449   : > { %819 = vmatpush3.bf16.msra.mxu0 %v505_v18  ;;  %v498_v27 = vpack.c.bf16 %v497_v24, %v497_v24 }
 0x44a   : > { %830 = vmatprep.subr.bf16.mxu0 %v882_v0 }
 0x44c   : > { %821 = vmatmul.mubr.msk.bf16.vlgmr.msra.gmra.mrb[8].mxu0 %vm204_vm1, %v498_v27 }
 0x44d   : > { %831 = vmatpush3.bf16.msra.mxu0 %v616_v28  ;;  %832 = vmatprep.mubr.msk.bf16.mxu0 %vm883_vm0, %v882_v0 }
 0x44e   : > { %v873_v29 = vpop.eup %872 }
 0x44f   : > { %v608_v30 = vmul.f32 %v873_v29, %v867_v14 }
 0x451   : > { %v609_v31 = vpack.c.bf16 %v608_v30, %v608_v30 }
 0x454   : > { %833 = vmatmul.mubr.msk.bf16.vlgmr.msra.gmra.mrb[12].mxu0 %vm204_vm1, %v609_v31 }
 0x516   : > { %v430_v32 = vpop.f32.mrb[4].mxu0 }
 0x517   : > { %659 = vrot.lane.b32.xlu1 %v430_v32, %s892_s4  ;;  %v810_v33 = vpop.f32.mrb[5].mxu0 }
 0x518   : > { %v433_v34 = vpop.f32.mrb[6].mxu0 }
 0x519   : > { %v811_v35 = vpop.f32.mrb[7].mxu0 }
 0x51f   : > { %v541_v36 = vpop.f32.mrb[8].mxu0 }
 0x520   : > { %663 = vrot.lane.b32.xlu0 %v541_v36, %s893_s5  ;;  %v822_v37 = vpop.f32.mrb[9].mxu0 }
 0x521   : > { %v544_v38 = vpop.f32.mrb[10].mxu0 }
 0x522   : > { %v823_v39 = vpop.f32.mrb[11].mxu0 }
 0x527   : > { %v652_v41 = vpop.f32.mrb[12].mxu0 }
 0x528   : > { %667 = vrot.lane.b32.xlu1 %v652_v41, %s894_s6  ;;  %v834_v0 = vpop.f32.mrb[13].mxu0 }
 0x529   : > { %v655_v42 = vpop.f32.mrb[14].mxu0 }
 0x52a   : > { %v835_v43 = vpop.f32.mrb[15].mxu0 }
 0x589   : > { %v660_v44 = vpop.permute.xlu1 %659 }
 0x58a   : > { %v670_v46 = vsel %vm204_vm1, %v977_v40, %v660_v44 }
 0x592   : > { %v664_v45 = vpop.permute.xlu0 %663 }
 0x593   : > { %v672_v47 = vsel %vm671_vm5, %v670_v46, %v664_v45 }
 0x59a   : > { %v668_v48 = vpop.permute.xlu1 %667 }
 0x59b   : > { %v674_v49 = vsel %vm673_vm6, %v672_v47, %v668_v48 }
 0x59c   : > { %v675_v50 = vpack.c.bf16 %v674_v49, %v674_v49 }
 0x59e   : > { %677 = vst.msk [vmem:[%s196_s9] sm:$0xf] %vm676_vm7, %v675_v50 }
 0x59f PF: > { %s13_s12 = sadd.s32 1, %s880_s12  }
 0x5a0   : > { %p10_p4 = scmp.ge.s32.totalorder %s13_s12, 4  }
 0x5a2   :  { %12 = sbr.rel (!%p10_p4) target bundleno = 1 (0x1), region = 68 }

// kernel: transformer_apply.49
= control target key start
LH: loop header
LB: loop body
LE: loop exit
PB: predicated region body
PF: predicated region fallthrough
CT: control target
= control target key end

     0   :  { %v178_v1 = vmov 0.0   ;;  %vm179_vm0 = vmmov 0   ;;  %vm20_vm1 = vcmask 130048   ;;  %s233_s0 = inlined_call_operand.vmem [shape: bf16[16,32], index: 0, kind: input, shape index: {}]   ;;  %s234_s1 = inlined_call_operand.vmem [shape: bf16[32,16], index: 1, kind: input, shape index: {}]   ;;  %s235_s2 = inlined_call_operand.vmem [shape: f32[1,16], index: 2, kind: input, shape index: {}]   ;;  %s236_s3 = inlined_call_operand.hbm [shape: f32[16,16], index: 3, kind: output, shape index: {}]  }
   0x1   :  { %v151_v0 = vld [vmem:[%s234_s1] sm:$0xff]   ;;  %138 = vmatprep.subr.bf16.mxu0 %v178_v1  ;;  %v152_v2 = vld [vmem:[%s234_s1 + $0x8] sm:$0xff]   ;;  %142 = vmatprep.mubr.msk.bf16.mxu0 %vm179_vm0, %v178_v1 }
   0x2   :  { %139 = vmatpush3.bf16.msra.mxu0 %v151_v0 }
   0x3   :  { %140 = vmatprep.subr.bf16.mxu0 %v178_v1 }
   0x4   :  { %8 = vsyncpa [#allocation4], 0  ;;  %21 = vst.msk [vmem:[#allocation2] sm:$0xff] %vm20_vm1, %v178_v1  ;;  %v153_v3 = vld [vmem:[%s233_s0] sm:$0xff]   ;;  %vm48_vm2 = vcmask 261120   ;;  %s180_s0 = smov [#allocation3]  }
   0x5   :  { %22 = vst.msk [vmem:[#allocation2 + $0x8] sm:$0xff] %vm20_vm1, %v178_v1  ;;  %v134_v12 = vld [vmem:[%s235_s2] ss:$0 sm:$0xff]  ;;  %s119_s19 = sshll.u32 %s180_s0, 4  ;;  %s120_s19 = int_to_ptr.vmem [resolvable:$true] %s119_s19 }
   0x6   :  { %141 = vmatpush3.bf16.msra.mxu0 %v152_v2  ;;  %s154_s20 = scalar_lea.vmem %s120_s19, 256  ;;  %p159_p1 = scmp.lt.s32.totalorder %s120_s19, %s120_s19 }
   0x7   :  { %p155_p0 = scmp.ne.s32.totalorder %s120_s19, %s154_s20  ;;  %p160_p2 = scmp.lt.s32.totalorder %s154_s20, %s154_s20 }
   0x9   :  { %143 = vmatmul.mubr.msk.bf16.vlgmr.msra.gmra.mrb[0].mxu0 %vm48_vm2, %v153_v3  ;;  %p161_p3 = por %p160_p2, %p159_p1 }
   0xb   :  { %v23_v4 = vld [vmem:[#allocation2] sm:$0xff]  ;;  %p162_p4 = pnand %p161_p3, %p155_p0 }
   0xc   :  { %v24_v6 = vld [vmem:[#allocation2 + $0x8] sm:$0xff] }
  0xdc   :  { %v86_v5 = vpop.f32.mrb[0].mxu0 }
  0xdd   :  { %v93_v7 = vadd.f32 %v86_v5, %v23_v4  ;;  %v144_v8 = vpop.f32.mrb[1].mxu0 }
  0xde   :  { %v89_v9 = vpop.f32.mrb[2].mxu0 }
  0xdf   :  { %96 = vst.msk [vmem:[#allocation2] sm:$0xff] %vm20_vm1, %v93_v7  ;;  %v94_v10 = vadd.f32 %v89_v9, %v24_v6  ;;  %v145_v11 = vpop.f32.mrb[3].mxu0 }
  0xe1   :  { %97 = vst.msk [vmem:[#allocation2 + $0x8] sm:$0xff] %vm20_vm1, %v94_v10 }
  0xe6   :  { %v101_v13 = vld [vmem:[#allocation2] sm:$0xff] }
  0xe7   :  { %v110_v14 = vadd.f32 %v134_v12, %v101_v13 }
  0xe8   :  { %v102_v15 = vld [vmem:[#allocation2 + $0x8] sm:$0xff] }
  0xe9   :  { %v111_v16 = vadd.f32 %v134_v12, %v102_v15  ;;  %112 = vst.msk [vmem:[#allocation3] sm:$0xff] %vm20_vm1, %v110_v14 }
  0xeb   :  { %113 = vst.msk [vmem:[#allocation3 + $0x8] sm:$0xff] %vm20_vm1, %v111_v16 }
  0xec   :  { %165 = shalt.err (!%p162_p4)
}
  0xed   :  { %s166_s22 = scalar_lea.hbm %s236_s3, 256 }
  0xee   :  { %p167_p5 = scmp.ne.s32.totalorder %s236_s3, %s166_s22  ;;  %p170_p6 = scmp.lt.u32.totalorder %s166_s22, %s236_s3 }
  0xf0   :  { %p172_p7 = pnand %p170_p6, %p167_p5 }
  0xf2   :  { %175 = shalt.err (!%p172_p7)
}
  0xf3   :  { %s181_s27 = smov 128   ;;  %s182_s28 = smov 8  }
  0xf4   :  { %125 = dma.vmem_to_hbm [thread:$0]  %s120_s19, 256, %s236_s3, [#allocation4], %s181_s27, %s181_s27, %s182_s28  }
  0xf5   :  { %176 = dma.done.wait [#allocation4], 256  }
  0xf6   :  { %177 = vsyncadd [#allocation4], 4294967040 }
  0xf7   :  { %129 = vsyncpa [#allocation4], 1 }

</bundles_post_ra>
